<compile_context>
chip_gen: v7x
topology: tpu7x:2x2x1
jax: 0.10.0
libtpu: 0.0.40
codegen_flags: <defaults>
</compile_context>

<pallas_src>
import functools

import jax
import jax.numpy as jnp
from jax.experimental import pallas as pl
from jax.experimental.pallas import tpu as pltpu


# ----------------------------------------------------------------------------
# Generation-aware tiling / VMEM configuration
# ----------------------------------------------------------------------------
def _round_up(x, m):
    return (x + m - 1) // m * m


def _tpu_vmem_bytes():
    """Physical VMEM per core; conservative (v7x-sized) fallback on failure."""
    try:
        info = pltpu.get_tpu_info()
        cap = getattr(info, "vmem_capacity_bytes", None)
        if cap:
            return int(cap)
    except Exception:
        pass
    return 64 * 1024 * 1024


_VMEM_PHYS = _tpu_vmem_bytes()
_VMEM_LIMIT = int(min(_VMEM_PHYS * 3 // 4, 96 * 1024 * 1024))
if _VMEM_PHYS >= 96 * 1024 * 1024:     # v5e / v6e: 128 MiB VMEM -> big tiles
    TM_CAP, TN_CAP = 1024, 1024
else:                                   # v7x: 64 MiB VMEM per core
    TM_CAP, TN_CAP = 512, 512


def _pick_tn(cout, cap):
    if cout <= cap:
        return cout                     # full-extent block (lane-dense / legal)
    for tn in range(cap - cap % 128, 127, -128):
        if cout % tn == 0:
            return tn
    return cout


def _pick_tm_matmul(M, cap):
    if M <= cap:
        return M, M                     # full-extent block
    for tm in range(cap - cap % 8, 7, -8):
        if M % tm == 0:
            return tm, M
    return cap, _round_up(M, cap)


# ----------------------------------------------------------------------------
# Fused 3x3 conv + BN + LeakyReLU kernel (taps read in-kernel, no im2col)
# ----------------------------------------------------------------------------
def _conv3x3_kernel(xa_ref, xb_ref, w_ref, s_ref, o_ref, xcat_ref, *,
                    wp, apply_act):
    tm = o_ref.shape[0]

    # Assemble the row window [i*tm, i*tm + 2*tm) once per m-tile (j == 0);
    # it stays resident in scratch while we sweep the Cout tiles.
    @pl.when(pl.program_id(1) == 0)
    def _():
        xcat_ref[pl.ds(0, tm), :] = xa_ref[...]
        xcat_ref[pl.ds(tm, tm), :] = xb_ref[...]

    y = jnp.zeros(o_ref.shape, jnp.float32)
    for t in range(9):                               # unrolled taps
        off = (t // 3) * wp + (t % 3)                # static row offset kh*Wp+kw
        y = y + jnp.dot(xcat_ref[pl.ds(off, tm), :], w_ref[t],
                        preferred_element_type=jnp.float32)
    y = y + s_ref[...]
    if apply_act:
        y = jnp.maximum(y, 0.1 * y)                  # LeakyReLU(0.1)
    o_ref[...] = y.astype(o_ref.dtype)


def conv3x3_bn_act(x, wmat, shift, apply_act, out_dtype):
    """x: (N,H,W,C) bf16.  wmat: (9, Cin_p, Cout) bf16 (BN scale folded).
    Computes conv3x3(pad=1) + shift + LeakyReLU as a padded-grid shifted
    matmul; the 9 taps are row-shifted reads of the padded activation."""
    N, H, W, C = x.shape
    taps, cin_p, cout = wmat.shape
    Hp, Wp = H + 2, W + 2
    M = N * Hp * Wp                                  # padded-grid rows
    extra = 2 * Wp + 2                               # max tap row offset

    tm = min(TM_CAP, _round_up(M, 8))
    tm = max(tm, _round_up(extra, 8))                # halo must fit in next block
    gm = pl.cdiv(M, tm)
    tn = _pick_tn(cout, TN_CAP)
    gn = cout // tn

    # One cheap spatial pad (plus channel pad for the RGB stem) — this is the
    # only activation copy; no 9x im2col patches.
    xp = jnp.pad(x, ((0, 0), (1, 1), (1, 1), (0, cin_p - C)))
    xf = xp.reshape(M, cin_p)
    rows = (gm + 1) * tm                             # +1 block for the halo view
    if rows > M:
        xf = jnp.pad(xf, ((0, rows - M), (0, 0)))

    out = pl.pallas_call(
        functools.partial(_conv3x3_kernel, wp=Wp, apply_act=apply_act),
        out_shape=jax.ShapeDtypeStruct((gm * tm, cout), out_dtype),
        grid_spec=pltpu.PrefetchScalarGridSpec(
            num_scalar_prefetch=0,
            grid=(gm, gn),
            in_specs=[
                pl.BlockSpec((tm, cin_p), lambda i, j: (i, 0)),      # body rows
                pl.BlockSpec((tm, cin_p), lambda i, j: (i + 1, 0)),  # halo rows
                pl.BlockSpec((taps, cin_p, tn), lambda i, j: (0, 0, j)),
                pl.BlockSpec((1, tn), lambda i, j: (0, j)),
            ],
            out_specs=pl.BlockSpec((tm, tn), lambda i, j: (i, j)),
            scratch_shapes=[pltpu.VMEM((2 * tm, cin_p), jnp.bfloat16)],
        ),
        compiler_params=pltpu.CompilerParams(
            dimension_semantics=("parallel", "arbitrary"),
            vmem_limit_bytes=_VMEM_LIMIT),
    )(xf, xf, wmat, shift)

    # Drop the (H+2)(W+2)/(H*W) garbage rows of the padded output grid.
    return out[:M].reshape(N, Hp, Wp, cout)[:, :H, :W, :]


# ----------------------------------------------------------------------------
# Fused 1x1 conv (matmul) + BN + LeakyReLU kernel — weight-resident, full-N
# ----------------------------------------------------------------------------
def _matmul_kernel(x_ref, w_ref, s_ref, o_ref, *, apply_act):
    y = jnp.dot(x_ref[...], w_ref[...], preferred_element_type=jnp.float32)
    y = y + s_ref[...]
    if apply_act:
        y = jnp.maximum(y, 0.1 * y)                  # LeakyReLU(0.1)
    o_ref[...] = y.astype(o_ref.dtype)


def conv1x1_bn_act(x2d, wmat, shift, apply_act, out_dtype):
    M, K = x2d.shape
    Kp, cout = wmat.shape
    if Kp != K:
        x2d = jnp.pad(x2d, ((0, 0), (0, Kp - K)))
    tm, Mp = _pick_tm_matmul(M, TM_CAP)
    if Mp != M:
        x2d = jnp.pad(x2d, ((0, Mp - M), (0, 0)))
    gm = Mp // tm

    out = pl.pallas_call(
        functools.partial(_matmul_kernel, apply_act=apply_act),
        out_shape=jax.ShapeDtypeStruct((Mp, cout), out_dtype),
        grid_spec=pltpu.PrefetchScalarGridSpec(
            num_scalar_prefetch=0,
            grid=(gm,),
            in_specs=[
                pl.BlockSpec((tm, Kp), lambda i: (i, 0)),
                pl.BlockSpec((Kp, cout), lambda i: (0, 0)),   # stays resident
                pl.BlockSpec((1, cout), lambda i: (0, 0)),
            ],
            out_specs=pl.BlockSpec((tm, cout), lambda i: (i, 0)),
        ),
        compiler_params=pltpu.CompilerParams(
            dimension_semantics=("parallel",),
            vmem_limit_bytes=_VMEM_LIMIT),
    )(x2d, wmat, shift)

    if Mp != M:
        out = out[:M]
    return out


# ----------------------------------------------------------------------------
# 2x2 stride-2 MaxPool kernel
# ----------------------------------------------------------------------------
def _pool_kernel(x_ref, o_ref):
    x = x_ref[...]                                    # (R, 2, Wo, 2, C)
    y = jnp.maximum(x[:, 0], x[:, 1])                 # H-pair
    o_ref[...] = jnp.maximum(y[:, :, 0], y[:, :, 1])  # W-pair


def maxpool2x2(x):
    """x: (N,H,W,C) NHWC with even H,W.  Returns (N,H//2,W//2,C)."""
    # TODO(synk): ceil_mode padding for odd spatial sizes not implemented
    #             (every spatial size in this configuration is even / reaches 1).
    N, H, W, C = x.shape
    Ho, Wo = H // 2, W // 2
    NHo = N * Ho
    xr = x.reshape(NHo, 2, Wo, 2, C)

    row_bytes = 2 * Wo * 2 * C * x.dtype.itemsize
    budget = 4 * 1024 * 1024
    R = NHo
    if row_bytes * NHo > budget:
        target = max(1, budget // row_bytes)
        R = 1
        for d in range(min(target, NHo), 0, -1):      # divisor of NHo
            if NHo % d == 0:
                R = d
                break

    out = pl.pallas_call(
        _pool_kernel,
        out_shape=jax.ShapeDtypeStruct((NHo, Wo, C), x.dtype),
        grid_spec=pltpu.PrefetchScalarGridSpec(
            num_scalar_prefetch=0,
            grid=(NHo // R,),
            in_specs=[pl.BlockSpec((R, 2, Wo, 2, C), lambda n: (n, 0, 0, 0, 0))],
            out_specs=pl.BlockSpec((R, Wo, C), lambda n: (n, 0, 0)),
        ),
        compiler_params=pltpu.CompilerParams(
            dimension_semantics=("parallel",),
            vmem_limit_bytes=_VMEM_LIMIT),
    )(xr)
    return out.reshape(N, Ho, Wo, C)


# ----------------------------------------------------------------------------
# Parameter construction (deterministic synthetic weights; inference-mode BN)
# ----------------------------------------------------------------------------
CFG1 = [32, 'M', 64, 'M', 128, (64, 1), 128, 'M', 256, (128, 1), 256, 'M',
        512, (256, 1), 512, (256, 1), 512]
CFG2 = ['M', 1024, (512, 1), 1024, (512, 1), 1024]
BN_EPS = 1e-5


def _make_conv(key, cin, cout, ksize, with_bn=True, act=True,
               out_dtype=jnp.bfloat16):
    kw_, kb, kg, kbe, km, kv = jax.random.split(key, 6)
    fan_in = cin * ksize * ksize
    # PyTorch weight layout (Cout, Cin, kh, kw)
    w = jax.random.normal(kw_, (cout, cin, ksize, ksize), jnp.float32) * (fan_in ** -0.5)
    b = jax.random.normal(kb, (cout,), jnp.float32) * 0.01
    if with_bn:
        gamma = 1.0 + 0.1 * jax.random.normal(kg, (cout,), jnp.float32)
        beta = 0.05 * jax.random.normal(kbe, (cout,), jnp.float32)
        mean = 0.05 * jax.random.normal(km, (cout,), jnp.float32)
        var = 0.9 + 0.2 * jax.random.uniform(kv, (cout,), jnp.float32)
        scale = gamma / jnp.sqrt(var + BN_EPS)
        shift = beta + scale * (b - mean)
    else:
        scale = jnp.ones((cout,), jnp.float32)
        shift = b

    # (Cout,Cin,kh,kw) -> (kh,kw,Cin,Cout); fold BN scale into the weights.
    wt = jnp.transpose(w, (2, 3, 1, 0)) * scale[None, None, None, :]
    cin_p = _round_up(cin, 8)              # only the RGB stem (cin=3) pads
    if cin_p != cin:
        wt = jnp.pad(wt, ((0, 0), (0, 0), (0, cin_p - cin), (0, 0)))
    if ksize == 3:
        wmat = wt.reshape(9, cin_p, cout).astype(jnp.bfloat16)
    else:
        wmat = wt.reshape(cin_p, cout).astype(jnp.bfloat16)
    shift = shift.reshape(1, cout).astype(jnp.float32)
    return dict(type='conv', ksize=ksize, cout=cout, w=wmat, shift=shift,
                act=act, out_dtype=out_dtype)


def init_params(key):
    layers = []
    idx = 0
    for cfg, start_in in ((CFG1, 3), (CFG2, 512)):
        in_planes = start_in
        for item in cfg:
            if item == 'M':
                layers.append(dict(type='pool'))
            else:
                cout = item[0] if isinstance(item, tuple) else item
                k = item[1] if isinstance(item, tuple) else 3
                layers.append(_make_conv(jax.random.fold_in(key, idx),
                                         in_planes, cout, k))
                idx += 1
                in_planes = cout
    # conv19 / conv20 / conv21 (+BN +LeakyReLU)
    for _ in range(3):
        layers.append(_make_conv(jax.random.fold_in(key, idx), 1024, 1024, 3))
        idx += 1
    # conv22: 1x1, 1024 -> 5*(5+20)=125, bias only, no BN, no activation, f32 out
    layers.append(_make_conv(jax.random.fold_in(key, idx), 1024, 125, 1,
                             with_bn=False, act=False, out_dtype=jnp.float32))
    return layers


# ----------------------------------------------------------------------------
# Forward pass
# ----------------------------------------------------------------------------
def darknet_forward(x_nchw, params):
    # NCHW -> NHWC; intermediate activations kept in bf16 to halve HBM traffic.
    x = jnp.transpose(x_nchw, (0, 2, 3, 1)).astype(jnp.bfloat16)
    for layer in params:
        if layer['type'] == 'pool':
            x = maxpool2x2(x)
        elif layer['ksize'] == 1:
            N, H, W, C = x.shape
            y = conv1x1_bn_act(x.reshape(N * H * W, C), layer['w'],
                               layer['shift'], layer['act'], layer['out_dtype'])
            x = y.reshape(N, H, W, -1)
        else:
            x = conv3x3_bn_act(x, layer['w'], layer['shift'],
                               layer['act'], layer['out_dtype'])
    return jnp.transpose(x, (0, 3, 1, 2)).astype(jnp.float32)   # NHWC -> NCHW


if __name__ == "__main__":
    key = jax.random.PRNGKey(0)
    params = init_params(jax.random.fold_in(key, 1))
    # Small input consistent with the module: NCHW, 3 input channels.
    x = jax.random.normal(jax.random.fold_in(key, 2), (2, 3, 32, 32), jnp.float32)

    out = darknet_forward(x, params)
    out = jax.block_until_ready(out)

    assert out.shape == (2, 125, 1, 1), out.shape
    assert bool(jnp.isfinite(out).all())
    print("KERNEL_OK")
</pallas_src>

<mosaic_0001>
module attributes {stable_mosaic.version = 11 : i64} {
  func.func @_conv3x3_kernel(%arg0: i32, %arg1: i32, %arg2: memref<512x8xbf16, #tpu.memory_space<vmem>>, %arg3: memref<512x8xbf16, #tpu.memory_space<vmem>>, %arg4: memref<9x8x32xbf16, #tpu.memory_space<vmem>>, %arg5: memref<1x32xf32, #tpu.memory_space<vmem>>, %arg6: memref<512x32xbf16, #tpu.memory_space<vmem>>, %arg7: memref<1024x8xbf16, #tpu.memory_space<vmem>>) attributes {dimension_semantics = [#tpu.dimension_semantics<parallel>, #tpu.dimension_semantics<arbitrary>], iteration_bounds = array<i64: 5, 1>, scalar_prefetch = 0 : i64, scratch_operands = 1 : i64, tpu.core_type = #tpu.core_type<tc>, window_params = [{transform_indices = @transform_0, window_bounds = array<i64: 512, 8>}, {transform_indices = @transform_1, window_bounds = array<i64: 512, 8>}, {transform_indices = @transform_2, window_bounds = array<i64: 9, 8, 32>}, {transform_indices = @transform_3, window_bounds = array<i64: 1, 32>}, {transform_indices = @transform_4, window_bounds = array<i64: 512, 32>}]} {
    %c0_i32 = arith.constant 0 : i32
    %0 = arith.cmpi eq, %arg1, %c0_i32 : i32
    %1 = arith.extui %0 : i1 to i32
    %c0_i32_0 = arith.constant 0 : i32
    %2 = arith.cmpi ne, %1, %c0_i32_0 : i32
    scf.if %2 {
      %c0_45 = arith.constant 0 : index
      %c0_46 = arith.constant 0 : index
      %57 = vector.load %arg2[%c0_45, %c0_46] : memref<512x8xbf16, #tpu.memory_space<vmem>>, vector<512x8xbf16>
      %c0_47 = arith.constant 0 : index
      %c0_48 = arith.constant 0 : index
      %58 = vector.load %arg7[%c0_47, %c0_48] : memref<1024x8xbf16, #tpu.memory_space<vmem>>, vector<512x8xbf16>
      tpu.vector_store %arg7[%c0_47, %c0_48], %57 {strides = array<i32>} : memref<1024x8xbf16, #tpu.memory_space<vmem>>, vector<512x8xbf16>,
      %c0_49 = arith.constant 0 : index
      %c0_50 = arith.constant 0 : index
      %59 = vector.load %arg3[%c0_49, %c0_50] : memref<512x8xbf16, #tpu.memory_space<vmem>>, vector<512x8xbf16>
      %c512 = arith.constant 512 : index
      %c0_51 = arith.constant 0 : index
      %60 = vector.load %arg7[%c512, %c0_51] : memref<1024x8xbf16, #tpu.memory_space<vmem>>, vector<512x8xbf16>
      tpu.vector_store %arg7[%c512, %c0_51], %59 {strides = array<i32>} : memref<1024x8xbf16, #tpu.memory_space<vmem>>, vector<512x8xbf16>,
    } else {
    }
    %cst = arith.constant 0.000000e+00 : f32
    %3 = vector.broadcast %cst : f32 to vector<512x32xf32>
    %c0 = arith.constant 0 : index
    %c0_1 = arith.constant 0 : index
    %4 = vector.load %arg7[%c0, %c0_1] : memref<1024x8xbf16, #tpu.memory_space<vmem>>, vector<512x8xbf16>
    %c0_2 = arith.constant 0 : index
    %c0_3 = arith.constant 0 : index
    %c0_4 = arith.constant 0 : index
    %5 = vector.load %arg4[%c0_2, %c0_3, %c0_4] : memref<9x8x32xbf16, #tpu.memory_space<vmem>>, vector<1x8x32xbf16>
    %6 = vector.shape_cast %5 : vector<1x8x32xbf16> to vector<8x32xbf16>
    %cst_5 = arith.constant dense<0.000000e+00> : vector<512x32xf32>
    %7 = tpu.matmul %4, %6, %cst_5 {dimension_numbers = #tpu.dot_dimension_numbers<[1], [0], [0], [1], [0, 0, 1, 1], [], []>} : vector<512x8xbf16>, vector<8x32xbf16>, vector<512x32xf32> -> vector<512x32xf32>
    %8 = arith.addf %3, %7 : vector<512x32xf32>
    %c1 = arith.constant 1 : index
    %c0_6 = arith.constant 0 : index
    %9 = vector.load %arg7[%c1, %c0_6] : memref<1024x8xbf16, #tpu.memory_space<vmem>>, vector<512x8xbf16>
    %c1_7 = arith.constant 1 : index
    %c0_8 = arith.constant 0 : index
    %c0_9 = arith.constant 0 : index
    %10 = vector.load %arg4[%c1_7, %c0_8, %c0_9] : memref<9x8x32xbf16, #tpu.memory_space<vmem>>, vector<1x8x32xbf16>
    %11 = vector.shape_cast %10 : vector<1x8x32xbf16> to vector<8x32xbf16>
    %cst_10 = arith.constant dense<0.000000e+00> : vector<512x32xf32>
    %12 = tpu.matmul %9, %11, %cst_10 {dimension_numbers = #tpu.dot_dimension_numbers<[1], [0], [0], [1], [0, 0, 1, 1], [], []>} : vector<512x8xbf16>, vector<8x32xbf16>, vector<512x32xf32> -> vector<512x32xf32>
    %13 = arith.addf %8, %12 : vector<512x32xf32>
    %c2 = arith.constant 2 : index
    %c0_11 = arith.constant 0 : index
    %14 = vector.load %arg7[%c2, %c0_11] : memref<1024x8xbf16, #tpu.memory_space<vmem>>, vector<512x8xbf16>
    %c2_12 = arith.constant 2 : index
    %c0_13 = arith.constant 0 : index
    %c0_14 = arith.constant 0 : index
    %15 = vector.load %arg4[%c2_12, %c0_13, %c0_14] : memref<9x8x32xbf16, #tpu.memory_space<vmem>>, vector<1x8x32xbf16>
    %16 = vector.shape_cast %15 : vector<1x8x32xbf16> to vector<8x32xbf16>
    %cst_15 = arith.constant dense<0.000000e+00> : vector<512x32xf32>
    %17 = tpu.matmul %14, %16, %cst_15 {dimension_numbers = #tpu.dot_dimension_numbers<[1], [0], [0], [1], [0, 0, 1, 1], [], []>} : vector<512x8xbf16>, vector<8x32xbf16>, vector<512x32xf32> -> vector<512x32xf32>
    %18 = arith.addf %13, %17 : vector<512x32xf32>
    %c34 = arith.constant 34 : index
    %c0_16 = arith.constant 0 : index
    %19 = vector.load %arg7[%c34, %c0_16] : memref<1024x8xbf16, #tpu.memory_space<vmem>>, vector<512x8xbf16>
    %c3 = arith.constant 3 : index
    %c0_17 = arith.constant 0 : index
    %c0_18 = arith.constant 0 : index
    %20 = vector.load %arg4[%c3, %c0_17, %c0_18] : memref<9x8x32xbf16, #tpu.memory_space<vmem>>, vector<1x8x32xbf16>
    %21 = vector.shape_cast %20 : vector<1x8x32xbf16> to vector<8x32xbf16>
    %cst_19 = arith.constant dense<0.000000e+00> : vector<512x32xf32>
    %22 = tpu.matmul %19, %21, %cst_19 {dimension_numbers = #tpu.dot_dimension_numbers<[1], [0], [0], [1], [0, 0, 1, 1], [], []>} : vector<512x8xbf16>, vector<8x32xbf16>, vector<512x32xf32> -> vector<512x32xf32>
    %23 = arith.addf %18, %22 : vector<512x32xf32>
    %c35 = arith.constant 35 : index
    %c0_20 = arith.constant 0 : index
    %24 = vector.load %arg7[%c35, %c0_20] : memref<1024x8xbf16, #tpu.memory_space<vmem>>, vector<512x8xbf16>
    %c4 = arith.constant 4 : index
    %c0_21 = arith.constant 0 : index
    %c0_22 = arith.constant 0 : index
    %25 = vector.load %arg4[%c4, %c0_21, %c0_22] : memref<9x8x32xbf16, #tpu.memory_space<vmem>>, vector<1x8x32xbf16>
    %26 = vector.shape_cast %25 : vector<1x8x32xbf16> to vector<8x32xbf16>
    %cst_23 = arith.constant dense<0.000000e+00> : vector<512x32xf32>
    %27 = tpu.matmul %24, %26, %cst_23 {dimension_numbers = #tpu.dot_dimension_numbers<[1], [0], [0], [1], [0, 0, 1, 1], [], []>} : vector<512x8xbf16>, vector<8x32xbf16>, vector<512x32xf32> -> vector<512x32xf32>
    %28 = arith.addf %23, %27 : vector<512x32xf32>
    %c36 = arith.constant 36 : index
    %c0_24 = arith.constant 0 : index
    %29 = vector.load %arg7[%c36, %c0_24] : memref<1024x8xbf16, #tpu.memory_space<vmem>>, vector<512x8xbf16>
    %c5 = arith.constant 5 : index
    %c0_25 = arith.constant 0 : index
    %c0_26 = arith.constant 0 : index
    %30 = vector.load %arg4[%c5, %c0_25, %c0_26] : memref<9x8x32xbf16, #tpu.memory_space<vmem>>, vector<1x8x32xbf16>
    %31 = vector.shape_cast %30 : vector<1x8x32xbf16> to vector<8x32xbf16>
    %cst_27 = arith.constant dense<0.000000e+00> : vector<512x32xf32>
    %32 = tpu.matmul %29, %31, %cst_27 {dimension_numbers = #tpu.dot_dimension_numbers<[1], [0], [0], [1], [0, 0, 1, 1], [], []>} : vector<512x8xbf16>, vector<8x32xbf16>, vector<512x32xf32> -> vector<512x32xf32>
    %33 = arith.addf %28, %32 : vector<512x32xf32>
    %c68 = arith.constant 68 : index
    %c0_28 = arith.constant 0 : index
    %34 = vector.load %arg7[%c68, %c0_28] : memref<1024x8xbf16, #tpu.memory_space<vmem>>, vector<512x8xbf16>
    %c6 = arith.constant 6 : index
    %c0_29 = arith.constant 0 : index
    %c0_30 = arith.constant 0 : index
    %35 = vector.load %arg4[%c6, %c0_29, %c0_30] : memref<9x8x32xbf16, #tpu.memory_space<vmem>>, vector<1x8x32xbf16>
    %36 = vector.shape_cast %35 : vector<1x8x32xbf16> to vector<8x32xbf16>
    %cst_31 = arith.constant dense<0.000000e+00> : vector<512x32xf32>
    %37 = tpu.matmul %34, %36, %cst_31 {dimension_numbers = #tpu.dot_dimension_numbers<[1], [0], [0], [1], [0, 0, 1, 1], [], []>} : vector<512x8xbf16>, vector<8x32xbf16>, vector<512x32xf32> -> vector<512x32xf32>
    %38 = arith.addf %33, %37 : vector<512x32xf32>
    %c69 = arith.constant 69 : index
    %c0_32 = arith.constant 0 : index
    %39 = vector.load %arg7[%c69, %c0_32] : memref<1024x8xbf16, #tpu.memory_space<vmem>>, vector<512x8xbf16>
    %c7 = arith.constant 7 : index
    %c0_33 = arith.constant 0 : index
    %c0_34 = arith.constant 0 : index
    %40 = vector.load %arg4[%c7, %c0_33, %c0_34] : memref<9x8x32xbf16, #tpu.memory_space<vmem>>, vector<1x8x32xbf16>
    %41 = vector.shape_cast %40 : vector<1x8x32xbf16> to vector<8x32xbf16>
    %cst_35 = arith.constant dense<0.000000e+00> : vector<512x32xf32>
    %42 = tpu.matmul %39, %41, %cst_35 {dimension_numbers = #tpu.dot_dimension_numbers<[1], [0], [0], [1], [0, 0, 1, 1], [], []>} : vector<512x8xbf16>, vector<8x32xbf16>, vector<512x32xf32> -> vector<512x32xf32>
    %43 = arith.addf %38, %42 : vector<512x32xf32>
    %c70 = arith.constant 70 : index
    %c0_36 = arith.constant 0 : index
    %44 = vector.load %arg7[%c70, %c0_36] : memref<1024x8xbf16, #tpu.memory_space<vmem>>, vector<512x8xbf16>
    %c8 = arith.constant 8 : index
    %c0_37 = arith.constant 0 : index
    %c0_38 = arith.constant 0 : index
    %45 = vector.load %arg4[%c8, %c0_37, %c0_38] : memref<9x8x32xbf16, #tpu.memory_space<vmem>>, vector<1x8x32xbf16>
    %46 = vector.shape_cast %45 : vector<1x8x32xbf16> to vector<8x32xbf16>
    %cst_39 = arith.constant dense<0.000000e+00> : vector<512x32xf32>
    %47 = tpu.matmul %44, %46, %cst_39 {dimension_numbers = #tpu.dot_dimension_numbers<[1], [0], [0], [1], [0, 0, 1, 1], [], []>} : vector<512x8xbf16>, vector<8x32xbf16>, vector<512x32xf32> -> vector<512x32xf32>
    %48 = arith.addf %43, %47 : vector<512x32xf32>
    %c0_40 = arith.constant 0 : index
    %c0_41 = arith.constant 0 : index
    %49 = vector.load %arg5[%c0_40, %c0_41] : memref<1x32xf32, #tpu.memory_space<vmem>>, vector<1x32xf32>
    %50 = vector.broadcast %49 : vector<1x32xf32> to vector<512x32xf32>
    %51 = arith.addf %48, %50 : vector<512x32xf32>
    %cst_42 = arith.constant 1.000000e-01 : f32
    %52 = vector.broadcast %cst_42 : f32 to vector<512x32xf32>
    %53 = arith.mulf %52, %51 : vector<512x32xf32>
    %54 = arith.maximumf %51, %53 : vector<512x32xf32>
    %55 = arith.truncf %54 : vector<512x32xf32> to vector<512x32xbf16>
    %c0_43 = arith.constant 0 : index
    %c0_44 = arith.constant 0 : index
    %56 = vector.load %arg6[%c0_43, %c0_44] : memref<512x32xbf16, #tpu.memory_space<vmem>>, vector<512x32xbf16>
    tpu.vector_store %arg6[%c0_43, %c0_44], %55 {strides = array<i32>} : memref<512x32xbf16, #tpu.memory_space<vmem>>, vector<512x32xbf16>,
    return
  }
  func.func @transform_0(%arg0: i32, %arg1: i32) -> (i32, i32) {
    %c0_i32 = arith.constant 0 : i32
    %c0_i32_0 = arith.constant 0 : i32
    return %arg0, %c0_i32 : i32, i32
  }
  func.func @transform_1(%arg0: i32, %arg1: i32) -> (i32, i32) {
    %c1_i32 = arith.constant 1 : i32
    %0 = arith.addi %arg0, %c1_i32 : i32
    %c0_i32 = arith.constant 0 : i32
    %c0_i32_0 = arith.constant 0 : i32
    return %0, %c0_i32 : i32, i32
  }
  func.func @transform_2(%arg0: i32, %arg1: i32) -> (i32, i32, i32) {
    %c0_i32 = arith.constant 0 : i32
    %c0_i32_0 = arith.constant 0 : i32
    %c0_i32_1 = arith.constant 0 : i32
    return %c0_i32, %c0_i32_0, %arg1 : i32, i32, i32
  }
  func.func @transform_3(%arg0: i32, %arg1: i32) -> (i32, i32) {
    %c0_i32 = arith.constant 0 : i32
    %c0_i32_0 = arith.constant 0 : i32
    return %c0_i32, %arg1 : i32, i32
  }
  func.func @transform_4(%arg0: i32, %arg1: i32) -> (i32, i32) {
    %c0_i32 = arith.constant 0 : i32
    return %arg0, %arg1 : i32, i32
  }
}

</mosaic_0001>

<bundles_post_ra>
// kernel: tpu_custom_call.1
= control target key start
LH: loop header
LB: loop body
LE: loop exit
PB: predicated region body
PF: predicated region fallthrough
CT: control target
= control target key end

     0   :  { %s8909_s15 = smov 0   ;;  %s8911_s16 = smov 0   ;;  %s10631_s0 = inlined_call_operand.vmem [shape: bf16[3072,8], index: 0, kind: input, shape index: {}]   ;;  %s10632_s1 = inlined_call_operand.vmem [shape: bf16[3072,8], index: 1, kind: input, shape index: {}]   ;;  %s10633_s2 = inlined_call_operand.vmem [shape: bf16[9,8,32], index: 2, kind: input, shape index: {}]   ;;  %s10634_s3 = inlined_call_operand.vmem [shape: f32[1,32], index: 3, kind: input, shape index: {}]   ;;  %s10635_s4 = inlined_call_operand.vmem [shape: bf16[2560,32], index: 4, kind: output, shape index: {}]  }
   0x1   :  { %s8913_s17 = smov 0  }
   0x2 LB: > { %s26_s18 = sadd.s32 1, %s8878_s16  ;;  %p6820_p0 = scmp.ge.s32.totalorder %s8882_s17, 1  ;;  %s8882_s17 = sphi %s8913_s17, %s14_s17   ;;  %s8878_s16 = sphi %s8911_s16, %s10724_s16   ;;  %s8874_s15 = sphi %s8909_s15, %s10723_s15  }
   0x3   : > { %p28_p1 = scmp.ge.s32.totalorder %s26_s18, 5  ;;  %p209_p2 = scmp.lt.s32.totalorder %s8882_s17, 6 }
   0x5   : > { %s10726_s18 = smov (%p28_p1, %s26_s18), 0  ;;  %p210_p3 = pnand %p6820_p0, %p209_p2 }
   0x7   : > { %213 = sbr.rel (%p210_p3) target bundleno = 836 (0x344), region = 36 }
   0xe   : > { %v6891_v0 = vld [vmem:[%s10633_s2 + $0x4] sm:$0xf]  ;;  %vm1257_vm0 = vcmask 1043456   ;;  %v7022_v1 = vld [vmem:[%s10633_s2 + $0x10] sm:$0xf]  ;;  %s8933_s23 = sshll.u32 %s8874_s15, 6 }
   0xf   : > { %8725 = vmatprep.subr.msk.bf16.mxu1 %vm1257_vm0, %v6891_v0  ;;  %8729 = vmatprep.subr.msk.bf16.mxu0 %vm1257_vm0, %v7022_v1  ;;  %v1259_v2 = vsel %vm1257_vm0, %v6891_v0, 0  ;;  %v8939_v3 = vsel %vm1257_vm0, %v7022_v1, 0  ;;  %p252_p4 = scmp.lt.s32.totalorder %s8933_s23, 383  ;;  %v895_v4 = vld [vmem:[%s10633_s2] sm:$0xf]  ;;  %vm542_vm1 = vcmask 64512  }
  0x10   : > { %10677 = vst [vmem:[#allocation3_spill] sm:$0xff] %v8939_v3  ;;  %7618 = vmatpush3.bf16.msra.mxu1 %v1259_v2  ;;  %7882 = vmatpush3.bf16.msra.mxu0 %v8939_v3  ;;  %v7055_v5 = vld [vmem:[%s10633_s2 + $0x14] sm:$0xf]  ;;  %vm899_vm2 = vsmask.f32 7424  ;;  %v1615_v25 = vsel %vm1257_vm0, %v895_v4, 0 }
  0x11   : > { %s253_s28 = scalar_select %p252_p4, %s8933_s23, 383  ;;  %8726 = vmatprep.subr.msk.bf16.mxu1 %vm1257_vm0, %v895_v4  ;;  %8731 = vmatprep.subr.msk.bf16.mxu0 %vm1257_vm0, %v7055_v5  ;;  %vm3048_vm3 = vsmask.f32 6400  ;;  %v8981_v26 = vsel %vm1257_vm0, %v7055_v5, 0  ;;  %vm3802_vm4 = vcmask 1045504   ;;  %vm1942_vm5 = vcmask 1046528  }
  0x12   : > { %s7255_s9 = sadd.s32 64, %s8933_s23  ;;  %vm4908_vm6 = vsmask.f32 5376  ;;  %vm5662_vm7 = vcmask 1044480   ;;  %p273_p6 = scmp.lt.s32.totalorder %s8933_s23, 319  ;;  %vm6635_vm8 = vcmask 257024  }
  0x13   : > { %s6822_s29 = sshll.u32 %s253_s28, 2  ;;  %p9062_p5 = scmp.lt.s32.totalorder %s7255_s9, 383 }
  0x14   : > { %s8955_s6 = scalar_lea.vmem %s10631_s0, %s6822_s29  ;;  %s10730_s23 = smov (!%p273_p6, %s8933_s23), 319 }
  0x15   : > { %v8759_v6 = vld [vmem:[%s8955_s6] sm:$0xff]   ;;  %v8760_v7 = vld [vmem:[%s8955_s6 + $0x8] sm:$0xff]   ;;  %v8761_v8 = vld [vmem:[%s8955_s6 + $0x10] sm:$0xff]   ;;  %s10728_s9 = smov (!%p9062_p5, %s7255_s9), 383  ;;  %s6826_s5 = sshll.u32 %s10730_s23, 2 }
  0x16   : > { %543 = vst.msk [vmem:[#allocation2] sm:$0xff] %vm542_vm1, %v8759_v6  ;;  %544 = vst.msk [vmem:[#allocation2 + $0x8] sm:$0xff] %vm542_vm1, %v8760_v7  ;;  %v8762_v9 = vld [vmem:[%s8955_s6 + $0x18] sm:$0xff]   ;;  %v8763_v10 = vld [vmem:[%s8955_s6 + $0x20] sm:$0xff]   ;;  %s6824_s11 = sshll.u32 %s10728_s9, 2  ;;  %s10407_s8 = scalar_lea.vmem %s10635_s4, %s6826_s5 }
  0x17   : > { %545 = vst.msk [vmem:[#allocation2 + $0x10] sm:$0xff] %vm542_vm1, %v8761_v8  ;;  %546 = vst.msk [vmem:[#allocation2 + $0x18] sm:$0xff] %vm542_vm1, %v8762_v9  ;;  %v8764_v11 = vld [vmem:[%s8955_s6 + $0x28] sm:$0xff]   ;;  %v8765_v12 = vld [vmem:[%s8955_s6 + $0x30] sm:$0xff]   ;;  %s9121_s14 = scalar_lea.vmem %s10632_s1, %s6824_s11 }
  0x18   : > { %547 = vst.msk [vmem:[#allocation2 + $0x20] sm:$0xff] %vm542_vm1, %v8763_v10  ;;  %548 = vst.msk [vmem:[#allocation2 + $0x28] sm:$0xff] %vm542_vm1, %v8764_v11  ;;  %v8766_v13 = vld [vmem:[%s8955_s6 + $0x38] sm:$0xff]   ;;  %v8767_v14 = vld [vmem:[%s8955_s6 + $0x40] sm:$0xff]  }
  0x19   : > { %549 = vst.msk [vmem:[#allocation2 + $0x30] sm:$0xff] %vm542_vm1, %v8765_v12  ;;  %550 = vst.msk [vmem:[#allocation2 + $0x38] sm:$0xff] %vm542_vm1, %v8766_v13  ;;  %v8768_v15 = vld [vmem:[%s8955_s6 + $0x48] sm:$0xff]   ;;  %v8769_v32 = vld [vmem:[%s8955_s6 + $0x50] sm:$0xff]  }
  0x1a   : > { %551 = vst.msk [vmem:[#allocation2 + $0x40] sm:$0xff] %vm542_vm1, %v8767_v14  ;;  %552 = vst.msk [vmem:[#allocation2 + $0x48] sm:$0xff] %vm542_vm1, %v8768_v15  ;;  %v8770_v37 = vld [vmem:[%s8955_s6 + $0x58] sm:$0xff]   ;;  %v8771_v43 = vld [vmem:[%s8955_s6 + $0x60] sm:$0xff]  }
  0x1b   : > { %553 = vst.msk [vmem:[#allocation2 + $0x50] sm:$0xff] %vm542_vm1, %v8769_v32  ;;  %554 = vst.msk [vmem:[#allocation2 + $0x58] sm:$0xff] %vm542_vm1, %v8770_v37  ;;  %v8772_v48 = vld [vmem:[%s8955_s6 + $0x68] sm:$0xff]   ;;  %v8773_v54 = vld [vmem:[%s8955_s6 + $0x70] sm:$0xff]  }
  0x1c   : > { %555 = vst.msk [vmem:[#allocation2 + $0x60] sm:$0xff] %vm542_vm1, %v8771_v43  ;;  %556 = vst.msk [vmem:[#allocation2 + $0x68] sm:$0xff] %vm542_vm1, %v8772_v48  ;;  %v8774_v60 = vld [vmem:[%s8955_s6 + $0x78] sm:$0xff]   ;;  %v8775_v1 = vld [vmem:[%s8955_s6 + $0x80] sm:$0xff]  }
  0x1d   : > { %v863_v16 = vld [vmem:[#allocation2] sm:$0xff]  ;;  %v864_v17 = vld [vmem:[#allocation2 + $0x8] sm:$0xff]  ;;  %557 = vst.msk [vmem:[#allocation2 + $0x70] sm:$0xff] %vm542_vm1, %v8773_v54  ;;  %558 = vst.msk [vmem:[#allocation2 + $0x78] sm:$0xff] %vm542_vm1, %v8774_v60 }
  0x1e   : > { %v901_v18 = vshrl.u32 %v863_v16, 16  ;;  %v903_v19 = vshll.u32 %v863_v16, 16  ;;  %v908_v20 = vshll.u32 %v864_v17, 16  ;;  %v912_v21 = vshrl.u32 %v864_v17, 16  ;;  %v2460_v22 = vld [vmem:[#allocation2 + $0x10] sm:$0xfe] }
  0x1f   : > { %v8977_v23 = vld [vmem:[#allocation2 + $0x18] sm:$0xff]  ;;  %v865_v24 = vld [vmem:[#allocation2 + $0x10] sm:$0xff]  ;;  %v3050_v29 = vshrl.u32 %v2460_v22, 16  ;;  %v3053_v30 = vshll.u32 %v2460_v22, 16  ;;  %v8983_v31 = vld [vmem:[#allocation2 + $0x20] sm:$0xff]  ;;  %559 = vst.msk [vmem:[#allocation2 + $0x80] sm:$0xff] %vm542_vm1, %v8775_v1 }
  0x20   : > { %v905_v27 = vrot.slane %v903_v19, 1  ;;  %v910_v28 = vrot.slane %v908_v20, 1  ;;  %v3058_v33 = vshrl.u32 %v8977_v23, 16  ;;  %v3061_v34 = vshll.u32 %v8977_v23, 16  ;;  %v8990_v42 = vld [vmem:[#allocation2 + $0x28] sm:$0xff]  ;;  %v8998_v53 = vld [vmem:[#allocation2 + $0x30] sm:$0xff] }
  0x21   : > { %v916_v35 = vshll.u32 %v865_v24, 16  ;;  %v3067_v36 = vshrl.u32 %v8983_v31, 16  ;;  %v3052_v40 = vrot.slane %v3050_v29, 1  ;;  %v3055_v41 = vrot.slane %v3053_v30, 2  ;;  %v9005_v59 = vld [vmem:[#allocation2 + $0x38] sm:$0xff]  ;;  %v9026_v15 = vld [vmem:[#allocation2 + $0x40] sm:$0xff] }
  0x22   : > { %v906_v38 = vor.u32 %v905_v27, %v901_v18  ;;  %v914_v39 = vor.u32 %v912_v21, %v910_v28  ;;  %v3060_v44 = vrot.slane %v3058_v33, 1  ;;  %v3063_v45 = vrot.slane %v3061_v34, 2  ;;  %v9023_v11 = vld [vmem:[%s10633_s2 + $0x18] sm:$0xf]  ;;  %v8776_v16 = vld [vmem:[%s8955_s6 + $0x88] sm:$0xff]   ;;  %v8777_v21 = vld [vmem:[%s8955_s6 + $0x90] sm:$0xff]  }
  0x23   : > { %v918_v46 = vrot.slane %v916_v35, 1  ;;  %v3069_v47 = vrot.slane %v3067_v36, 1  ;;  %v3056_v50 = vor.u32 %v3055_v41, %v3052_v40  ;;  %v3070_v51 = vshll.u32 %v8983_v31, 16  ;;  %v9036_v27 = vld [vmem:[#allocation2 + $0x48] sm:$0xff]  ;;  %560 = vst.msk [vmem:[#allocation2 + $0x88] sm:$0xff] %vm542_vm1, %v8776_v16  ;;  %561 = vst.msk [vmem:[#allocation2 + $0x90] sm:$0xff] %vm542_vm1, %v8777_v21 }
  0x24   : > { %v911_v49 = vsel %vm899_vm2, %v906_v38, %v910_v28  ;;  %v920_v52 = vshrl.u32 %v865_v24, 16  ;;  %v3064_v55 = vor.u32 %v3063_v45, %v3060_v44  ;;  %v926_v57 = vrot.slane %v3061_v34, 1  ;;  %v8778_v28 = vld [vmem:[%s8955_s6 + $0x98] sm:$0xff]   ;;  %v8779_v34 = vld [vmem:[%s8955_s6 + $0xa0] sm:$0xff]   ;;  %v9067_v48 = vld [vmem:[#allocation2 + $0x50] sm:$0xff] }
  0x25   : > { %7619 = vmatprep.mubr.msk.bf16.mxu1 %vm542_vm1, %v911_v49  ;;  %v919_v56 = vsel %vm899_vm2, %v914_v39, %v918_v46  ;;  %v3076_v58 = vshrl.u32 %v8990_v42, 16  ;;  %v3072_v61 = vrot.slane %v3070_v51, 2  ;;  %v3079_v63 = vshll.u32 %v8990_v42, 16  ;;  %562 = vst.msk [vmem:[#allocation2 + $0x98] sm:$0xff] %vm542_vm1, %v8778_v28  ;;  %563 = vst.msk [vmem:[#allocation2 + $0xa0] sm:$0xff] %vm542_vm1, %v8779_v34  ;;  %v8781_v54 = vld [vmem:[%s8955_s6 + $0xb0] sm:$0xff]  }
  0x26   : > { %7620 = vmatmul.mubr.msk.bf16.vlgmr.msra.gmra.mrb[0].mxu1 %vm542_vm1, %v919_v56  ;;  %v922_v62 = vor.u32 %v920_v52, %v918_v46  ;;  %v934_v0 = vrot.slane %v3070_v51, 1  ;;  %v3065_v2 = vsel %vm3048_vm3, %v3056_v50, %v3064_v55  ;;  %v930_v5 = vor.u32 %v3058_v33, %v926_v57  ;;  %v9072_v52 = vld [vmem:[#allocation2 + $0x58] sm:$0xff]  ;;  %565 = vst.msk [vmem:[#allocation2 + $0xb0] sm:$0xff] %vm542_vm1, %v8781_v54  ;;  %v8787_v16 = vld [vmem:[%s8955_s6 + $0xe0] sm:$0xff]  }
  0x27   : > { %7684 = vmatpush3.bf16.msra.mxu1 %v1615_v25  ;;  %v3078_v4 = vrot.slane %v3076_v58, 1  ;;  %v3085_v6 = vshrl.u32 %v8998_v53, 16  ;;  %7883 = vmatprep.mubr.msk.bf16.mxu0 %vm542_vm1, %v3065_v2  ;;  %v3073_v7 = vor.u32 %v3072_v61, %v3069_v47  ;;  %v3081_v9 = vrot.slane %v3079_v63, 2  ;;  %v8784_v2 = vld [vmem:[%s8955_s6 + $0xc8] sm:$0xff]   ;;  %571 = vst.msk [vmem:[#allocation2 + $0xe0] sm:$0xff] %vm542_vm1, %v8787_v16 }
  0x28   : > { %v927_v8 = vsel %vm899_vm2, %v922_v62, %v926_v57  ;;  %v3088_v10 = vshll.u32 %v8998_v53, 16  ;;  %v938_v13 = vor.u32 %v3067_v36, %v934_v0  ;;  %v942_v14 = vrot.slane %v3079_v63, 1  ;;  %v8782_v57 = vld [vmem:[%s8955_s6 + $0xb8] sm:$0xff]   ;;  %v8783_v62 = vld [vmem:[%s8955_s6 + $0xc0] sm:$0xff]   ;;  %568 = vst.msk [vmem:[#allocation2 + $0xc8] sm:$0xff] %vm542_vm1, %v8784_v2 }
  0x29   : > { %7623 = vmatprep.mubr.msk.bf16.mxu1 %vm542_vm1, %v927_v8  ;;  %v3087_v12 = vrot.slane %v3085_v6, 1  ;;  %v3074_v17 = vsel %vm3048_vm3, %v3064_v55, %v3073_v7  ;;  %v3082_v18 = vor.u32 %v3081_v9, %v3078_v4  ;;  %v3094_v20 = vshrl.u32 %v9005_v59, 16  ;;  %566 = vst.msk [vmem:[#allocation2 + $0xb8] sm:$0xff] %vm542_vm1, %v8782_v57  ;;  %567 = vst.msk [vmem:[#allocation2 + $0xc0] sm:$0xff] %vm542_vm1, %v8783_v62  ;;  %v8786_v8 = vld [vmem:[%s8955_s6 + $0xd8] sm:$0xff]   ;;  %v9155_v62 = vld [vmem:[#allocation2 + $0x80] sm:$0xff] }
  0x2a   : > { %v3090_v19 = vrot.slane %v3088_v10, 2  ;;  %7884 = vmatmul.mubr.msk.bf16.vlgmr.msra.gmra.mrb[0].mxu0 %vm542_vm1, %v3074_v17  ;;  %v935_v22 = vsel %vm899_vm2, %v930_v5, %v934_v0  ;;  %v943_v24 = vsel %vm899_vm2, %v938_v13, %v942_v14  ;;  %v3097_v25 = vshll.u32 %v9005_v59, 16  ;;  %v8785_v5 = vld [vmem:[%s8955_s6 + $0xd0] sm:$0xff]   ;;  %570 = vst.msk [vmem:[#allocation2 + $0xd8] sm:$0xff] %vm542_vm1, %v8786_v8 }
  0x2b   : > { %7948 = vmatpush3.bf16.msra.mxu0 %v8981_v26  ;;  %v3083_v29 = vsel %vm3048_vm3, %v3073_v7, %v3082_v18  ;;  %v3096_v32 = vrot.slane %v3094_v20, 1  ;;  %v3103_v33 = vshrl.u32 %v9026_v15, 16  ;;  %v950_v36 = vrot.slane %v3088_v10, 1  ;;  %v8780_v26 = vld [vmem:[%s8955_s6 + $0xa8] sm:$0xff]   ;;  %569 = vst.msk [vmem:[#allocation2 + $0xd0] sm:$0xff] %vm542_vm1, %v8785_v5 }
  0x2c   : > { %v3091_v30 = vor.u32 %v3090_v19, %v3087_v12  ;;  %7887 = vmatprep.mubr.msk.bf16.mxu0 %vm542_vm1, %v3083_v29  ;;  %v3099_v35 = vrot.slane %v3097_v25, 2  ;;  %v3106_v37 = vshll.u32 %v9026_v15, 16  ;;  %8732 = vmatprep.subr.msk.bf16.mxu0 %vm1257_vm0, %v9023_v11  ;;  %v3112_v38 = vshrl.u32 %v9036_v27, 16  ;;  %564 = vst.msk [vmem:[#allocation2 + $0xa8] sm:$0xff] %vm542_vm1, %v8780_v26 }
  0x2d   : > { %v946_v40 = vor.u32 %v3076_v58, %v942_v14  ;;  %v954_v41 = vor.u32 %v3085_v6, %v950_v36  ;;  %v3115_v43 = vshll.u32 %v9036_v27, 16  ;;  %v3105_v45 = vrot.slane %v3103_v33, 1  ;;  %v9104_v14 = vld [vmem:[#allocation2 + $0x60] sm:$0xff] }
  0x2e   : > { %7624 = vmatmul.mubr.msk.bf16.gmra.mrb[4].mxu1 %vm542_vm1, %v935_v22  ;;  %v3100_v39 = vor.u32 %v3099_v35, %v3096_v32  ;;  %v3092_v44 = vsel %vm3048_vm3, %v3082_v18, %v3091_v30  ;;  %v3108_v46 = vrot.slane %v3106_v37, 2  ;;  %v958_v47 = vrot.slane %v3097_v25, 1  ;;  %v8788_v22 = vld [vmem:[%s8955_s6 + $0xe8] sm:$0xff]  }
  0x2f   : > { %7627 = vmatprep.mubr.msk.bf16.mxu1 %vm542_vm1, %v943_v24  ;;  %v3114_v50 = vrot.slane %v3112_v38, 1  ;;  %v3117_v51 = vrot.slane %v3115_v43, 2  ;;  %v951_v55 = vsel %vm899_vm2, %v946_v40, %v950_v36  ;;  %v3121_v56 = vshrl.u32 %v9067_v48, 16  ;;  %572 = vst.msk [vmem:[#allocation2 + $0xe8] sm:$0xff] %vm542_vm1, %v8788_v22  ;;  %v8790_v36 = vld [vmem:[%s8955_s6 + $0xf8] sm:$0xff]  }
  0x30   : > { %v3101_v49 = vsel %vm3048_vm3, %v3091_v30, %v3100_v39  ;;  %v3109_v58 = vor.u32 %v3108_v46, %v3105_v45  ;;  %v959_v60 = vsel %vm899_vm2, %v954_v41, %v958_v47  ;;  %v3124_v61 = vshll.u32 %v9067_v48, 16  ;;  %v8789_v30 = vld [vmem:[%s8955_s6 + $0xf0] sm:$0xff]   ;;  %574 = vst.msk [vmem:[#allocation2 + $0xf8] sm:$0xff] %vm542_vm1, %v8790_v36 }
  0x31   : > { %v3118_v63 = vor.u32 %v3117_v51, %v3114_v50  ;;  %v3130_v0 = vshrl.u32 %v9072_v52, 16  ;;  %v3133_v1 = vshll.u32 %v9072_v52, 16  ;;  %v966_v4 = vrot.slane %v3106_v37, 1  ;;  %573 = vst.msk [vmem:[#allocation2 + $0xf0] sm:$0xff] %vm542_vm1, %v8789_v30  ;;  %v8791_v37 = vld [vmem:[%s9121_s14] sm:$0xff]   ;;  %v9140_v45 = vld [vmem:[#allocation2 + $0x70] sm:$0xff] }
  0x32   : > { %7888 = vmatmul.mubr.msk.bf16.gmra.mrb[4].mxu0 %vm542_vm1, %v3092_v44  ;;  %v962_v6 = vor.u32 %v3094_v20, %v958_v47  ;;  %v3123_v7 = vrot.slane %v3121_v56, 1  ;;  %v3110_v9 = vsel %vm3048_vm3, %v3100_v39, %v3109_v58  ;;  %v3126_v10 = vrot.slane %v3124_v61, 2  ;;  %v9112_v20 = vld [vmem:[#allocation2 + $0x68] sm:$0xff]  ;;  %831 = vst.msk [vmem:[#allocation2 + $0x100] sm:$0xff] %vm542_vm1, %v8791_v37  ;;  %v9144_v50 = vld [vmem:[#allocation2 + $0x78] sm:$0xff] }
  0x33   : > { %7891 = vmatprep.mubr.msk.bf16.mxu0 %vm542_vm1, %v3101_v49  ;;  %v970_v12 = vor.u32 %v3103_v33, %v966_v4  ;;  %v974_v13 = vrot.slane %v3115_v43, 1  ;;  %v3119_v17 = vsel %vm3048_vm3, %v3109_v58, %v3118_v63  ;;  %v3132_v18 = vrot.slane %v3130_v0, 1 }
  0x34   : > { %v3135_v19 = vrot.slane %v3133_v1, 2  ;;  %v967_v21 = vsel %vm899_vm2, %v962_v6, %v966_v4  ;;  %v3127_v24 = vor.u32 %v3126_v10, %v3123_v7  ;;  %v3139_v28 = vshrl.u32 %v9104_v14, 16  ;;  %v9162_v10 = vld [vmem:[#allocation2 + $0x88] sm:$0xff] }
  0x35   : > { %v975_v25 = vsel %vm899_vm2, %v970_v12, %v974_v13  ;;  %v3142_v29 = vshll.u32 %v9104_v14, 16  ;;  %v982_v33 = vrot.slane %v3124_v61, 1  ;;  %v3148_v34 = vshrl.u32 %v9112_v20, 16 }
  0x36   : > { %7628 = vmatmul.mubr.msk.bf16.gmra.mrb[8].mxu1 %vm542_vm1, %v951_v55  ;;  %v3136_v32 = vor.u32 %v3135_v19, %v3132_v18  ;;  %v3151_v35 = vshll.u32 %v9112_v20, 16  ;;  %v978_v26 = vor.u32 %v3112_v38, %v974_v13  ;;  %v3128_v40 = vsel %vm3048_vm3, %v3118_v63, %v3127_v24 }
  0x37   : > { %7631 = vmatprep.mubr.msk.bf16.mxu1 %vm542_vm1, %v959_v60  ;;  %v986_v39 = vor.u32 %v3121_v56, %v982_v33  ;;  %v3141_v41 = vrot.slane %v3139_v28, 1  ;;  %v3144_v43 = vrot.slane %v3142_v29, 2  ;;  %v990_v44 = vrot.slane %v3133_v1, 1 }
  0x38   : > { %v3137_v46 = vsel %vm3048_vm3, %v3127_v24, %v3136_v32  ;;  %v3150_v47 = vrot.slane %v3148_v34, 1  ;;  %v3153_v49 = vrot.slane %v3151_v35, 2  ;;  %v983_v38 = vsel %vm899_vm2, %v978_v26, %v982_v33 }
  0x39   : > { %v3157_v51 = vshrl.u32 %v9140_v45, 16  ;;  %v3145_v54 = vor.u32 %v3144_v43, %v3141_v41  ;;  %v991_v55 = vsel %vm899_vm2, %v986_v39, %v990_v44  ;;  %v3160_v56 = vshll.u32 %v9140_v45, 16 }
  0x3a   : > { %7892 = vmatmul.mubr.msk.bf16.gmra.mrb[8].mxu0 %vm542_vm1, %v3110_v9  ;;  %v3154_v57 = vor.u32 %v3153_v49, %v3150_v47  ;;  %v3166_v58 = vshrl.u32 %v9144_v50, 16  ;;  %v3169_v60 = vshll.u32 %v9144_v50, 16  ;;  %v998_v61 = vrot.slane %v3142_v29, 1  ;;  %v3797_v47 = vld [vmem:[#allocation2 + $0x10] sm:$0xfc] }
  0x3b   : > { %7895 = vmatprep.mubr.msk.bf16.mxu0 %vm542_vm1, %v3119_v17  ;;  %v994_v63 = vor.u32 %v3130_v0, %v990_v44  ;;  %v3159_v1 = vrot.slane %v3157_v51, 1  ;;  %v1006_v2 = vrot.slane %v3151_v35, 1  ;;  %v3146_v4 = vsel %vm3048_vm3, %v3136_v32, %v3145_v54 }
  0x3c   : > { %v3162_v5 = vrot.slane %v3160_v56, 2  ;;  %v1002_v6 = vor.u32 %v3139_v28, %v998_v61  ;;  %v3155_v7 = vsel %vm3048_vm3, %v3145_v54, %v3154_v57  ;;  %v3168_v8 = vrot.slane %v3166_v58, 1  ;;  %v9174_v28 = vld [vmem:[#allocation2 + $0x90] sm:$0xff] }
  0x3d   : > { %v3171_v9 = vrot.slane %v3169_v60, 2  ;;  %v999_v12 = vsel %vm899_vm2, %v994_v63, %v998_v61  ;;  %v3175_v13 = vshrl.u32 %v9155_v62, 16  ;;  %v3178_v17 = vshll.u32 %v9155_v62, 16 }
  0x3e   : > { %7632 = vmatmul.mubr.msk.bf16.gmra.mrb[12].mxu1 %vm542_vm1, %v967_v21  ;;  %v3163_v0 = vor.u32 %v3162_v5, %v3159_v1  ;;  %v1007_v16 = vsel %vm899_vm2, %v1002_v6, %v1006_v2  ;;  %v3184_v19 = vshrl.u32 %v9162_v10, 16  ;;  %v3187_v21 = vshll.u32 %v9162_v10, 16 }
  0x3f   : > { %7635 = vmatprep.mubr.msk.bf16.mxu1 %vm542_vm1, %v975_v25  ;;  %v3172_v18 = vor.u32 %v3171_v9, %v3168_v8  ;;  %v1014_v22 = vrot.slane %v3160_v56, 1  ;;  %v1010_v24 = vor.u32 %v3148_v34, %v1006_v2  ;;  %v3177_v25 = vrot.slane %v3175_v13, 1  ;;  %v9194_v2 = vld [vmem:[#allocation2 + $0xa0] sm:$0xff] }
  0x40   : > { %v3164_v29 = vsel %vm3048_vm3, %v3154_v57, %v3163_v0  ;;  %v3180_v30 = vrot.slane %v3178_v17, 2  ;;  %v1022_v33 = vrot.slane %v3169_v60, 1  ;;  %v3186_v36 = vrot.slane %v3184_v19, 1 }
  0x41   : > { %v1018_v32 = vor.u32 %v3157_v51, %v1014_v22  ;;  %v3173_v35 = vsel %vm3048_vm3, %v3163_v0, %v3172_v18  ;;  %v3189_v37 = vrot.slane %v3187_v21, 2  ;;  %v1015_v26 = vsel %vm899_vm2, %v1010_v24, %v1014_v22 }
  0x42   : > { %7896 = vmatmul.mubr.msk.bf16.gmra.mrb[12].mxu0 %vm542_vm1, %v3128_v40  ;;  %v3193_v39 = vshrl.u32 %v9174_v28, 16  ;;  %v3181_v34 = vor.u32 %v3180_v30, %v3177_v25  ;;  %v3196_v41 = vshll.u32 %v9174_v28, 16  ;;  %v1030_v44 = vrot.slane %v3178_v17, 1 }
  0x43   : > { %7899 = vmatprep.mubr.msk.bf16.mxu0 %vm542_vm1, %v3137_v46  ;;  %v1023_v40 = vsel %vm899_vm2, %v1018_v32, %v1022_v33  ;;  %v3190_v43 = vor.u32 %v3189_v37, %v3186_v36  ;;  %v9184_v46 = vld [vmem:[#allocation2 + $0x98] sm:$0xff]  ;;  %v1026_v49 = vor.u32 %v3166_v58, %v1022_v33  ;;  %v1038_v54 = vrot.slane %v3187_v21, 1  ;;  %v9225_v33 = vld [vmem:[%s10633_s2 + $0x8] sm:$0xf] }
  0x44   : > { %v1034_v51 = vor.u32 %v3175_v13, %v1030_v44  ;;  %v3198_v56 = vrot.slane %v3196_v41, 2  ;;  %v1052_v57 = vshll.u32 %v9184_v46, 16  ;;  %v3803_v1 = vrot.slane %v3797_v47, 2  ;;  %v9230_v36 = vld [vmem:[#allocation2 + $0xb8] sm:$0xff]  ;;  %8727 = vmatprep.subr.msk.bf16.mxu1 %vm1257_vm0, %v9225_v33  ;;  %v8819_v37 = vld [vmem:[%s9121_s14 + $0x8] sm:$0xff]  }
  0x45   : > { %v3191_v60 = vsel %vm3048_vm3, %v3181_v34, %v3190_v43  ;;  %v1031_v61 = vsel %vm899_vm2, %v1026_v49, %v1030_v44  ;;  %v1046_v5 = vrot.slane %v3196_v41, 1  ;;  %v1060_v8 = vshll.u32 %v9194_v2, 16  ;;  %832 = vst.msk [vmem:[#allocation2 + $0x108] sm:$0xff] %vm542_vm1, %v8819_v37  ;;  %v9249_v47 = vld [vmem:[%s10633_s2 + $0x1c] sm:$0xf] }
  0x46   : > { %7636 = vmatmul.mubr.msk.bf16.gmra.mrb[16].mxu1 %vm542_vm1, %v983_v38  ;;  %v3195_v38 = vrot.slane %v3193_v39, 1  ;;  %v1039_v63 = vsel %vm899_vm2, %v1034_v51, %v1038_v54  ;;  %v1054_v6 = vrot.slane %v1052_v57, 1  ;;  %v1042_v9 = vor.u32 %v3184_v19, %v1038_v54  ;;  %v9257_v51 = vld [vmem:[#allocation2 + $0xc0] sm:$0xff] }
  0x47   : > { %7639 = vmatprep.mubr.msk.bf16.mxu1 %vm542_vm1, %v991_v55  ;;  %v3182_v55 = vsel %vm3048_vm3, %v3172_v18, %v3181_v34  ;;  %v1050_v0 = vor.u32 %v3193_v39, %v1046_v5  ;;  %v3806_v17 = vrot.slane %v8983_v31, 2  ;;  %v1064_v19 = vshrl.u32 %v9194_v2, 16 }
  0x48   : > { %v9197_v58 = vor.u32 %v3198_v56, %v3195_v38  ;;  %v3808_v22 = vrot.slane %v8990_v42, 2  ;;  %v1062_v24 = vrot.slane %v1060_v8, 1  ;;  %v4550_v42 = vsel %vm1257_vm0, %v9023_v11, 0 }
  0x49   : > { %v1055_v18 = vsel %vm899_vm2, %v1050_v0, %v1054_v6  ;;  %v3810_v11 = vrot.slane %v8998_v53, 2  ;;  %v1084_v44 = vshll.u32 %v9230_v36, 16  ;;  %v3812_v49 = vrot.slane %v9005_v59, 2  ;;  %v9261_v59 = vld [vmem:[#allocation2 + $0xc8] sm:$0xff] }
  0x4a   : > { %7900 = vmatmul.mubr.msk.bf16.gmra.mrb[16].mxu0 %vm542_vm1, %v3146_v4  ;;  %10679 = vst [vmem:[#allocation4_spill] sm:$0xff] %v9197_v58  ;;  %v3804_v4 = vrot.slane %v8977_v23, 2  ;;  %v3200_v13 = vsel %vm3048_vm3, %v3190_v43, %v9197_v58  ;;  %v1047_v23 = vsel %vm899_vm2, %v1042_v9, %v1046_v5  ;;  %v1066_v30 = vor.u32 %v1064_v19, %v1062_v24  ;;  %v9593_v58 = vld [vmem:[#allocation2 + $0x78] sm:$0xff] }
  0x4b   : > { %7903 = vmatprep.mubr.msk.bf16.mxu0 %vm542_vm1, %v3155_v7  ;;  %v1056_v7 = vshrl.u32 %v9184_v46, 16  ;;  %v3811_v54 = vsel %vm3802_vm4, %v3808_v22, %v3810_v11  ;;  %v1086_v56 = vrot.slane %v1084_v44, 1  ;;  %v3813_v57 = vsel %vm3802_vm4, %v3810_v11, %v3812_v49 }
  0x4c   : > { %v3807_v31 = vsel %vm3802_vm4, %v3804_v4, %v3806_v17  ;;  %v1096_v5 = vshrl.u32 %v9257_v51, 16  ;;  %v1104_v19 = vshrl.u32 %v9261_v59, 16 }
  0x4d   : > { %v1058_v25 = vor.u32 %v1056_v7, %v1054_v6  ;;  %v1100_v6 = vshll.u32 %v9261_v59, 16  ;;  %v3816_v7 = vrot.slane %v9036_v27, 2 }
  0x4e   : > { %7640 = vmatmul.mubr.msk.bf16.gmra.mrb[20].mxu1 %vm542_vm1, %v999_v12  ;;  %v9204_v12 = vld [vmem:[#allocation2 + $0xa8] sm:$0xff] }
  0x4f   : > { %7643 = vmatprep.mubr.msk.bf16.mxu1 %vm542_vm1, %v1007_v16  ;;  %v3805_v16 = vsel %vm3802_vm4, %v3803_v1, %v3804_v4  ;;  %v1068_v21 = vshll.u32 %v9204_v12, 16  ;;  %v1063_v39 = vsel %vm899_vm2, %v1058_v25, %v1062_v24  ;;  %v1072_v34 = vshrl.u32 %v9204_v12, 16 }
  0x50   : > { %v3814_v1 = vrot.slane %v9026_v15, 2  ;;  %v1102_v15 = vrot.slane %v1100_v6, 1 }
  0x51   : > { %v1070_v32 = vrot.slane %v1068_v21, 1  ;;  %v3818_v21 = vrot.slane %v9067_v48, 2 }
  0x52   : > { %7904 = vmatmul.mubr.msk.bf16.gmra.mrb[20].mxu0 %vm542_vm1, %v3164_v29  ;;  %v9219_v29 = vld [vmem:[#allocation2 + $0xb0] sm:$0xff]  ;;  %v3815_v0 = vsel %vm3802_vm4, %v3812_v49, %v3814_v1 }
  0x53   : > { %7907 = vmatprep.mubr.msk.bf16.mxu0 %vm542_vm1, %v3173_v35  ;;  %v3809_v35 = vsel %vm3802_vm4, %v3806_v17, %v3808_v22  ;;  %v1071_v41 = vsel %vm899_vm2, %v1066_v30, %v1070_v32  ;;  %v1080_v43 = vshrl.u32 %v9219_v29, 16  ;;  %v1074_v38 = vor.u32 %v1072_v34, %v1070_v32  ;;  %v9279_v17 = vld [vmem:[#allocation2 + $0xd8] sm:$0xff]  ;;  %v9297_v34 = vld [vmem:[#allocation2 + $0xe8] sm:$0xff] }
  0x54   : > { %v1116_v25 = vshll.u32 %v9279_v17, 16  ;;  %v1106_v32 = vor.u32 %v1104_v19, %v1102_v15  ;;  %v1136_v6 = vshrl.u32 %v9297_v34, 16 }
  0x56   : > { %7644 = vmatmul.mubr.msk.bf16.gmra.mrb[24].mxu1 %vm542_vm1, %v1015_v26  ;;  %v1076_v26 = vshll.u32 %v9219_v29, 16 }
  0x57   : > { %7647 = vmatprep.mubr.msk.bf16.mxu1 %vm542_vm1, %v1023_v40  ;;  %v8820_v40 = vld [vmem:[%s9121_s14 + $0x10] sm:$0xff]  }
  0x58   : > { %833 = vst.msk [vmem:[#allocation2 + $0x110] sm:$0xff] %vm542_vm1, %v8820_v40  ;;  %v1078_v53 = vrot.slane %v1076_v26, 1  ;;  %v1118_v26 = vrot.slane %v1116_v25, 1 }
  0x5a   : > { %7908 = vmatmul.mubr.msk.bf16.gmra.mrb[24].mxu0 %vm542_vm1, %v3182_v55  ;;  %v1082_v55 = vor.u32 %v1080_v43, %v1078_v53  ;;  %v3822_v43 = vrot.slane %v9104_v14, 2 }
  0x5b   : > { %7911 = vmatprep.mubr.msk.bf16.mxu0 %vm542_vm1, %v3191_v60  ;;  %v1092_v60 = vshll.u32 %v9257_v51, 16 }
  0x5c   : > { %v1087_v4 = vsel %vm899_vm2, %v1082_v55, %v1086_v56 }
  0x5d   : > { %v1094_v8 = vrot.slane %v1092_v60, 1 }
  0x5e   : > { %7648 = vmatmul.mubr.msk.bf16.gmra.mrb[28].mxu1 %vm542_vm1, %v1031_v61  ;;  %v1079_v61 = vsel %vm899_vm2, %v1074_v38, %v1078_v53  ;;  %v1132_v53 = vshll.u32 %v9297_v34, 16  ;;  %v3824_v38 = vrot.slane %v9112_v20, 2 }
  0x5f   : > { %7651 = vmatprep.mubr.msk.bf16.mxu1 %vm542_vm1, %v1039_v63  ;;  %v1088_v63 = vshrl.u32 %v9230_v36, 16 }
  0x61   : > { %v1090_v9 = vor.u32 %v1088_v63, %v1086_v56  ;;  %v9311_v56 = vld [vmem:[#allocation2 + $0xf0] sm:$0xff]  ;;  %v3825_v63 = vsel %vm3802_vm4, %v3822_v43, %v3824_v38 }
  0x62   : > { %7912 = vmatmul.mubr.msk.bf16.gmra.mrb[28].mxu0 %vm542_vm1, %v3200_v13  ;;  %v9275_v13 = vld [vmem:[#allocation2 + $0xd0] sm:$0xff] }
  0x63   : > { %7949 = vmatprep.mubr.msk.bf16.mxu0 %vm542_vm1, %v3805_v16  ;;  %v1098_v16 = vor.u32 %v1096_v5, %v1094_v8  ;;  %v1095_v27 = vsel %vm899_vm2, %v1090_v9, %v1094_v8  ;;  %v1112_v24 = vshrl.u32 %v9275_v13, 16  ;;  %v1144_v9 = vshrl.u32 %v9311_v56, 16 }
  0x65   : > { %v1103_v22 = vsel %vm899_vm2, %v1098_v16, %v1102_v15  ;;  %v3828_v16 = vrot.slane %v9144_v50, 2 }
  0x66   : > { %7652 = vmatmul.mubr.msk.bf16.gmra.mrb[32].mxu1 %vm542_vm1, %v1047_v23  ;;  %v3817_v23 = vsel %vm3802_vm4, %v3814_v1, %v3816_v7  ;;  %v9315_v1 = vld [vmem:[#allocation2 + $0xf8] sm:$0xff] }
  0x67   : > { %7655 = vmatprep.mubr.msk.bf16.mxu1 %vm542_vm1, %v1055_v18  ;;  %v1108_v18 = vshll.u32 %v9275_v13, 16  ;;  %v1152_v25 = vshrl.u32 %v9315_v1, 16 }
  0x69   : > { %v1110_v30 = vrot.slane %v1108_v18, 1 }
  0x6a   : > { %7950 = vmatmul.mubr.msk.bf16.vlgmr.msra.gmra.mrb[0].mxu0 %vm542_vm1, %v3807_v31  ;;  %v3820_v31 = vrot.slane %v9072_v52, 2 }
  0x6b   : > { %8014 = vmatpush3.bf16.msra.mxu0 %v4550_v42  ;;  %7953 = vmatprep.mubr.msk.bf16.mxu0 %vm542_vm1, %v3809_v35  ;;  %v9293_v42 = vld [vmem:[#allocation2 + $0xe0] sm:$0xff]  ;;  %v3819_v35 = vsel %vm3802_vm4, %v3816_v7, %v3818_v21  ;;  %v1114_v37 = vor.u32 %v1112_v24, %v1110_v30  ;;  %v1111_v11 = vsel %vm899_vm2, %v1106_v32, %v1110_v30  ;;  %v3826_v7 = vrot.slane %v9140_v45, 2 }
  0x6c   : > { %8733 = vmatprep.subr.msk.bf16.mxu0 %vm1257_vm0, %v9249_v47  ;;  %v1124_v40 = vshll.u32 %v9293_v42, 16  ;;  %v1128_v49 = vshrl.u32 %v9293_v42, 16  ;;  %v3830_v30 = vrot.slane %v9155_v62, 2 }
  0x6d   : > { %v1119_v44 = vsel %vm899_vm2, %v1114_v37, %v1118_v26  ;;  %v3827_v18 = vsel %vm3802_vm4, %v3824_v38, %v3826_v7  ;;  %v2105_v38 = vsel %vm1257_vm0, %v9225_v33, 0 }
  0x6e   : > { %7656 = vmatmul.mubr.msk.bf16.gmra.mrb[36].mxu1 %vm542_vm1, %v1063_v39  ;;  %v3821_v39 = vsel %vm3802_vm4, %v3818_v21, %v3820_v31  ;;  %v9330_v21 = vld [vmem:[#allocation2 + $0x100] sm:$0x1] }
  0x6f   : > { %7659 = vmatprep.mubr.msk.bf16.mxu1 %vm542_vm1, %v1071_v41  ;;  %v1120_v41 = vshrl.u32 %v9279_v17, 16  ;;  %10680 = vst [vmem:[#allocation5_spill] sm:$0xff] %v9330_v21 }
  0x71   : > { %v1122_v55 = vor.u32 %v1120_v41, %v1118_v26  ;;  %v9349_v41 = vrot.slane %v9174_v28, 2 }
  0x72   : > { %7954 = vmatmul.mubr.msk.bf16.gmra.mrb[4].mxu0 %vm542_vm1, %v3811_v54  ;;  %v1126_v54 = vrot.slane %v1124_v40, 1 }
  0x73   : > { %7957 = vmatprep.mubr.msk.bf16.mxu0 %vm542_vm1, %v3813_v57  ;;  %v3823_v57 = vsel %vm3802_vm4, %v3820_v31, %v3822_v43  ;;  %v1156_v31 = vshll.u32 %v9330_v21, 16  ;;  %v3836_v43 = vrot.slane %v9184_v46, 2 }
  0x74   : > { %v1130_v60 = vor.u32 %v1128_v49, %v1126_v54  ;;  %v1127_v5 = vsel %vm899_vm2, %v1122_v55, %v1126_v54  ;;  %v3838_v54 = vrot.slane %v9194_v2, 2  ;;  %v3840_v55 = vrot.slane %v9204_v12, 2 }
  0x75   : > { %v1158_v26 = vrot.slane %v1156_v31, 1 }
  0x76   : > { %7660 = vmatmul.mubr.msk.bf16.gmra.mrb[40].mxu1 %vm542_vm1, %v1079_v61  ;;  %v1134_v61 = vrot.slane %v1132_v53, 1  ;;  %v9358_v53 = vsel %vm3802_vm4, %v9349_v41, %v3836_v43  ;;  %v9381_v33 = vsel %vm3802_vm4, %v3836_v43, %v3838_v54 }
  0x77   : > { %7663 = vmatprep.mubr.msk.bf16.mxu1 %vm542_vm1, %v1087_v4  ;;  %v1140_v4 = vshll.u32 %v9311_v56, 16 }
  0x78   : > { %v1135_v8 = vsel %vm899_vm2, %v1130_v60, %v1134_v61  ;;  %v9372_v60 = vld [vmem:[#allocation2 + $0x8] sm:$0xff] }
  0x79   : > { %v1142_v15 = vrot.slane %v1140_v4, 1  ;;  %v3842_v4 = vrot.slane %v9219_v29, 2  ;;  %v1944_v21 = vrot.slane %v9372_v60, 1 }
  0x7a   : > { %7958 = vmatmul.mubr.msk.bf16.gmra.mrb[8].mxu0 %vm542_vm1, %v3815_v0  ;;  %v1148_v0 = vshll.u32 %v9315_v1, 16 }
  0x7b   : > { %7961 = vmatprep.mubr.msk.bf16.mxu0 %vm542_vm1, %v3817_v23  ;;  %v1138_v23 = vor.u32 %v1136_v6, %v1134_v61  ;;  %v9376_v61 = vld [vmem:[#allocation2 + $0x10] sm:$0xff]  ;;  %v9394_v6 = vld [vmem:[#allocation2 + $0x18] sm:$0xff] }
  0x7c   : > { %v1150_v19 = vrot.slane %v1148_v0, 1  ;;  %v3846_v0 = vrot.slane %v9257_v51, 2 }
  0x7d   : > { %v1143_v24 = vsel %vm899_vm2, %v1138_v23, %v1142_v15  ;;  %v9418_v23 = vld [vmem:[#allocation2 + $0x30] sm:$0xff] }
  0x7e   : > { %7664 = vmatmul.mubr.msk.bf16.gmra.mrb[44].mxu1 %vm542_vm1, %v1095_v27  ;;  %v1146_v27 = vor.u32 %v1144_v9, %v1142_v15  ;;  %v1154_v37 = vor.u32 %v1152_v25, %v1150_v19  ;;  %v9414_v15 = vld [vmem:[#allocation2 + $0x28] sm:$0xff]  ;;  %v9438_v25 = vld [vmem:[#allocation2 + $0x40] sm:$0xff] }
  0x7f   : > { %7667 = vmatprep.mubr.msk.bf16.mxu1 %vm542_vm1, %v1103_v22  ;;  %v3829_v22 = vsel %vm3802_vm4, %v3826_v7, %v3828_v16  ;;  %v9398_v7 = vld [vmem:[#allocation2 + $0x20] sm:$0xff] }
  0x80   : > { %v1151_v32 = vsel %vm899_vm2, %v1146_v27, %v1150_v19  ;;  %v3850_v19 = vrot.slane %v9275_v13, 2 }
  0x82   : > { %7962 = vmatmul.mubr.msk.bf16.gmra.mrb[12].mxu0 %vm542_vm1, %v3819_v35  ;;  %v3832_v35 = vrot.slane %v9162_v10, 2 }
  0x83   : > { %7965 = vmatprep.mubr.msk.bf16.mxu0 %vm542_vm1, %v3821_v39  ;;  %v3831_v39 = vsel %vm3802_vm4, %v3828_v16, %v3830_v30  ;;  %v3848_v16 = vrot.slane %v9261_v59, 2 }
  0x84   : > { %v3833_v40 = vsel %vm3802_vm4, %v3830_v30, %v3832_v35  ;;  %v3835_v49 = vsel %vm3802_vm4, %v3832_v35, %v9349_v41  ;;  %v3856_v35 = vrot.slane %v9297_v34, 2 }
  0x85   : > { %v9426_v27 = vsel %vm3802_vm4, %v3846_v0, %v3848_v16  ;;  %v9443_v31 = vsel %vm3802_vm4, %v3848_v16, %v3850_v19  ;;  %v9511_v16 = vld [vmem:[#allocation2 + $0x28] sm:$0xff] }
  0x86   : > { %7668 = vmatmul.mubr.msk.bf16.gmra.mrb[48].mxu1 %vm542_vm1, %v1111_v11  ;;  %v1159_v11 = vsel %vm899_vm2, %v1154_v37, %v1158_v26  ;;  %v9454_v37 = vld [vmem:[#allocation2 + $0x48] sm:$0xff] }
  0x87   : > { %7671 = vmatprep.mubr.msk.bf16.mxu1 %vm542_vm1, %v1119_v44  ;;  %v8823_v44 = vld [vmem:[#allocation2] sm:$0xff] }
  0x8a   : > { %7966 = vmatmul.mubr.msk.bf16.gmra.mrb[16].mxu0 %vm542_vm1, %v3823_v57  ;;  %v9370_v57 = vld [vmem:[%s10633_s2 + $0xc] sm:$0xf] }
  0x8b   : > { %7969 = vmatprep.mubr.msk.bf16.mxu0 %vm542_vm1, %v3825_v63  ;;  %v9386_v63 = vsel %vm3802_vm4, %v3838_v54, %v3840_v55  ;;  %v8822_v54 = vld [vmem:[%s9121_s14 + $0x20] sm:$0xff]  }
  0x8c   : > { %835 = vst.msk [vmem:[#allocation2 + $0x120] sm:$0xff] %vm542_vm1, %v8822_v54  ;;  %v9542_v54 = vld [vmem:[#allocation2 + $0x40] sm:$0xff] }
  0x8e   : > { %7672 = vmatmul.mubr.msk.bf16.gmra.mrb[52].mxu1 %vm542_vm1, %v1127_v5  ;;  %v3844_v5 = vrot.slane %v9230_v36, 2 }
  0x8f   : > { %7675 = vmatprep.mubr.msk.bf16.mxu1 %vm542_vm1, %v1135_v8  ;;  %v9403_v8 = vsel %vm3802_vm4, %v3840_v55, %v3842_v4 }
  0x90   : > { %v9406_v9 = vsel %vm3802_vm4, %v3842_v4, %v3844_v5 }
  0x92   : > { %7970 = vmatmul.mubr.msk.bf16.gmra.mrb[20].mxu0 %vm542_vm1, %v3827_v18  ;;  %v9423_v18 = vsel %vm3802_vm4, %v3844_v5, %v3846_v0  ;;  %v3045_v5 = vld [vmem:[#allocation2 + $0x110] sm:$0x3]  ;;  %v9509_v0 = vld [vmem:[#allocation2 + $0x20] sm:$0xfc] }
  0x93   : > { %7973 = vmatprep.mubr.msk.bf16.mxu0 %vm542_vm1, %v3829_v22  ;;  %v3852_v22 = vrot.slane %v9279_v17, 2 }
  0x95   : > { %v9446_v30 = vsel %vm3802_vm4, %v3850_v19, %v3852_v22  ;;  %v4389_v19 = vrot.slane %v9511_v16, 2 }
  0x96   : > { %7676 = vmatmul.mubr.msk.bf16.gmra.mrb[56].mxu1 %vm542_vm1, %v1143_v24  ;;  %v9434_v24 = vld [vmem:[#allocation2 + $0x38] sm:$0xff] }
  0x97   : > { %7679 = vmatprep.mubr.msk.bf16.mxu1 %vm542_vm1, %v1151_v32  ;;  %v3854_v32 = vrot.slane %v9293_v42, 2 }
  0x99   : > { %v9461_v26 = vsel %vm3802_vm4, %v3852_v22, %v3854_v32 }
  0x9a   : > { %7974 = vmatmul.mubr.msk.bf16.gmra.mrb[24].mxu0 %vm542_vm1, %v3831_v39  ;;  %v9464_v39 = vsel %vm3802_vm4, %v3854_v32, %v3856_v35 }
  0x9b   : > { %7977 = vmatprep.mubr.msk.bf16.mxu0 %vm542_vm1, %v3833_v40  ;;  %v3858_v40 = vrot.slane %v9311_v56, 2 }
  0x9e   : > { %7680 = vmatmul.mubr.msk.bf16.gmra.mrb[60].mxu1 %vm542_vm1, %v1159_v11  ;;  %v3860_v11 = vrot.slane %v9315_v1, 2 }
  0x9f   : > { %7685 = vmatprep.mubr.msk.bf16.mxu1 %vm542_vm1, %v8823_v44  ;;  %v9482_v44 = vld [vmem:[#allocation2 + $0x100] sm:$0xff] }
  0xa0   : > { %v9480_v43 = vsel %vm3802_vm4, %v3858_v40, %v3860_v11  ;;  %10681 = vst [vmem:[#allocation6_spill] sm:$0xff] %v9482_v44 }
  0xa2   : > { %7978 = vmatmul.mubr.msk.bf16.gmra.mrb[28].mxu0 %vm542_vm1, %v3835_v49  ;;  %v9484_v49 = vld [vmem:[#allocation2 + $0x108] sm:$0xff] }
  0xa3   : > { %7981 = vmatprep.mubr.msk.bf16.mxu0 %vm542_vm1, %v9358_v53  ;;  %10682 = vst [vmem:[#allocation7_spill] sm:$0xff] %v9484_v49 }
  0xa6   : > { %7686 = vmatmul.mubr.msk.bf16.vlgmr.msra.gmra.mrb[0].mxu1 %vm542_vm1, %v9372_v60 }
  0xa7   : > { %7750 = vmatpush3.bf16.msra.mxu1 %v2105_v38  ;;  %7689 = vmatprep.mubr.msk.bf16.mxu1 %vm542_vm1, %v9376_v61  ;;  %v8821_v38 = vld [vmem:[%s9121_s14 + $0x18] sm:$0xff]  }
  0xa8   : > { %8728 = vmatprep.subr.msk.bf16.mxu1 %vm1257_vm0, %v9370_v57  ;;  %834 = vst.msk [vmem:[#allocation2 + $0x118] sm:$0xff] %vm542_vm1, %v8821_v38 }
  0xaa   : > { %7982 = vmatmul.mubr.msk.bf16.gmra.mrb[32].mxu0 %vm542_vm1, %v9381_v33 }
  0xab   : > { %7985 = vmatprep.mubr.msk.bf16.mxu0 %vm542_vm1, %v9386_v63 }
  0xae   : > { %7690 = vmatmul.mubr.msk.bf16.gmra.mrb[4].mxu1 %vm542_vm1, %v9394_v6 }
  0xaf   : > { %7693 = vmatprep.mubr.msk.bf16.mxu1 %vm542_vm1, %v9398_v7 }
  0xb2   : > { %7986 = vmatmul.mubr.msk.bf16.gmra.mrb[36].mxu0 %vm542_vm1, %v9403_v8 }
  0xb3   : > { %7989 = vmatprep.mubr.msk.bf16.mxu0 %vm542_vm1, %v9406_v9 }
  0xb6   : > { %7694 = vmatmul.mubr.msk.bf16.gmra.mrb[8].mxu1 %vm542_vm1, %v9414_v15 }
  0xb7   : > { %7697 = vmatprep.mubr.msk.bf16.mxu1 %vm542_vm1, %v9418_v23 }
  0xba   : > { %7990 = vmatmul.mubr.msk.bf16.gmra.mrb[40].mxu0 %vm542_vm1, %v9423_v18 }
  0xbb   : > { %7993 = vmatprep.mubr.msk.bf16.mxu0 %vm542_vm1, %v9426_v27 }
  0xbe   : > { %7698 = vmatmul.mubr.msk.bf16.gmra.mrb[12].mxu1 %vm542_vm1, %v9434_v24 }
  0xbf   : > { %7701 = vmatprep.mubr.msk.bf16.mxu1 %vm542_vm1, %v9438_v25 }
  0xc2   : > { %7994 = vmatmul.mubr.msk.bf16.gmra.mrb[44].mxu0 %vm542_vm1, %v9443_v31 }
  0xc3   : > { %7997 = vmatprep.mubr.msk.bf16.mxu0 %vm542_vm1, %v9446_v30 }
  0xc6   : > { %7702 = vmatmul.mubr.msk.bf16.gmra.mrb[16].mxu1 %vm542_vm1, %v9454_v37 }
  0xc7   : > { %7705 = vmatprep.mubr.msk.bf16.mxu1 %vm542_vm1, %v9067_v48  ;;  %v9477_v48 = vsel %vm3802_vm4, %v3856_v35, %v3858_v40  ;;  %v9526_v35 = vld [vmem:[#allocation2 + $0x30] sm:$0xff]  ;;  %v9528_v40 = vld [vmem:[#allocation2 + $0x38] sm:$0xff] }
  0xc8   : > { %10683 = vst [vmem:[#allocation8_spill] sm:$0xff] %v9528_v40 }
  0xca   : > { %7998 = vmatmul.mubr.msk.bf16.gmra.mrb[48].mxu0 %vm542_vm1, %v9461_v26 }
  0xcb   : > { %8001 = vmatprep.mubr.msk.bf16.mxu0 %vm542_vm1, %v9464_v39 }
  0xce   : > { %7706 = vmatmul.mubr.msk.bf16.gmra.mrb[20].mxu1 %vm542_vm1, %v9072_v52  ;;  %v3862_v52 = vrot.slane %v9482_v44, 2  ;;  %v9607_v44 = vld [vmem:[#allocation2 + $0x88] sm:$0xff] }
  0xcf   : > { %7709 = vmatprep.mubr.msk.bf16.mxu1 %vm542_vm1, %v9104_v14  ;;  %v9492_v14 = vrot.slane %v9484_v49, 2  ;;  %v9605_v49 = vld [vmem:[#allocation2 + $0x80] sm:$0xff] }
  0xd0   : > { %v9502_v55 = vsel %vm3802_vm4, %v3860_v11, %v3862_v52  ;;  %v4391_v11 = vrot.slane %v9526_v35, 2 }
  0xd1   : > { %v9507_v4 = vsel %vm3802_vm4, %v3862_v52, %v9492_v14  ;;  %v5302_v52 = vsel %vm1257_vm0, %v9249_v47, 0 }
  0xd2   : > { %8002 = vmatmul.mubr.msk.bf16.gmra.mrb[52].mxu0 %vm542_vm1, %v9477_v48 }
  0xd3   : > { %8005 = vmatprep.mubr.msk.bf16.mxu0 %vm542_vm1, %v9480_v43 }
  0xd6   : > { %7710 = vmatmul.mubr.msk.bf16.gmra.mrb[24].mxu1 %vm542_vm1, %v9112_v20  ;;  %v3866_v20 = vrot.slane %v3045_v5, 2  ;;  %v9544_v5 = vld [vmem:[#allocation2 + $0x48] sm:$0xff] }
  0xd7   : > { %7713 = vmatprep.mubr.msk.bf16.mxu1 %vm542_vm1, %v9140_v45  ;;  %v4388_v45 = vrot.slane %v9509_v0, 2 }
  0xd8   : > { %v3867_v22 = vsel %vm3802_vm4, %v9492_v14, %v3866_v20  ;;  %v9549_v20 = vld [vmem:[%s10633_s2 + $0x20] sm:$0xf] }
  0xd9   : > { %v4390_v32 = vsel %vm3802_vm4, %v4388_v45, %v4389_v19 }
  0xda   : > { %8006 = vmatmul.mubr.msk.bf16.gmra.mrb[56].mxu0 %vm542_vm1, %v9502_v55 }
  0xdb   : > { %8009 = vmatprep.mubr.msk.bf16.mxu0 %vm542_vm1, %v9507_v4 }
  0xde   : > { %7714 = vmatmul.mubr.msk.bf16.gmra.mrb[28].mxu1 %vm542_vm1, %v9144_v50  ;;  %v4393_v50 = vrot.slane %v9528_v40, 2 }
  0xdf   : > { %7717 = vmatprep.mubr.msk.bf16.mxu1 %vm542_vm1, %v9155_v62  ;;  %v4392_v62 = vsel %vm3802_vm4, %v4389_v19, %v4391_v11  ;;  %v9563_v19 = vld [vmem:[#allocation2 + $0x50] sm:$0xff] }
  0xe0   : > { %v4394_v38 = vsel %vm3802_vm4, %v4391_v11, %v4393_v50 }
  0xe2   : > { %8010 = vmatmul.mubr.msk.bf16.gmra.mrb[60].mxu0 %vm542_vm1, %v3867_v22  ;;  %v9565_v22 = vld [vmem:[#allocation2 + $0x58] sm:$0xff] }
  0xe3   : > { %8015 = vmatprep.mubr.msk.bf16.mxu0 %vm542_vm1, %v4390_v32  ;;  %v4399_v32 = vrot.slane %v9563_v19, 2  ;;  %v4401_v11 = vrot.slane %v9565_v22, 2 }
  0xe6   : > { %7718 = vmatmul.mubr.msk.bf16.gmra.mrb[32].mxu1 %vm542_vm1, %v9162_v10  ;;  %v4395_v10 = vrot.slane %v9542_v54, 2 }
  0xe7   : > { %7721 = vmatprep.mubr.msk.bf16.mxu1 %vm542_vm1, %v9174_v28  ;;  %v4397_v28 = vrot.slane %v9544_v5, 2 }
  0xe8   : > { %v4396_v47 = vsel %vm3802_vm4, %v4393_v50, %v4395_v10 }
  0xe9   : > { %v4398_v45 = vsel %vm3802_vm4, %v4395_v10, %v4397_v28  ;;  %v4400_v50 = vsel %vm3802_vm4, %v4397_v28, %v4399_v32 }
  0xea   : > { %8016 = vmatmul.mubr.msk.bf16.vlgmr.msra.gmra.mrb[0].mxu0 %vm542_vm1, %v4392_v62  ;;  %v4402_v62 = vsel %vm3802_vm4, %v4399_v32, %v4401_v11  ;;  %v9591_v32 = vld [vmem:[#allocation2 + $0x70] sm:$0xff] }
  0xeb   : > { %8080 = vmatpush3.bf16.msra.mxu0 %v5302_v52  ;;  %8019 = vmatprep.mubr.msk.bf16.mxu0 %vm542_vm1, %v4394_v38  ;;  %v9577_v52 = vld [vmem:[#allocation2 + $0x60] sm:$0xff]  ;;  %v9579_v38 = vld [vmem:[#allocation2 + $0x68] sm:$0xff] }
  0xec   : > { %8734 = vmatprep.subr.msk.bf16.mxu0 %vm1257_vm0, %v9549_v20  ;;  %v4403_v10 = vrot.slane %v9577_v52, 2 }
  0xee   : > { %7722 = vmatmul.mubr.msk.bf16.gmra.mrb[36].mxu1 %vm542_vm1, %v9184_v46  ;;  %v4404_v28 = vsel %vm3802_vm4, %v4401_v11, %v4403_v10 }
  0xef   : > { %7725 = vmatprep.mubr.msk.bf16.mxu1 %vm542_vm1, %v9194_v2 }
  0xf2   : > { %8020 = vmatmul.mubr.msk.bf16.gmra.mrb[4].mxu0 %vm542_vm1, %v4396_v47  ;;  %v4405_v47 = vrot.slane %v9579_v38, 2 }
  0xf3   : > { %8023 = vmatprep.mubr.msk.bf16.mxu0 %vm542_vm1, %v4398_v45 }
  0xf4   : > { %v4406_v45 = vsel %vm3802_vm4, %v4403_v10, %v4405_v47 }
  0xf6   : > { %7726 = vmatmul.mubr.msk.bf16.gmra.mrb[40].mxu1 %vm542_vm1, %v9204_v12 }
  0xf7   : > { %7729 = vmatprep.mubr.msk.bf16.mxu1 %vm542_vm1, %v9219_v29 }
  0xfa   : > { %8024 = vmatmul.mubr.msk.bf16.gmra.mrb[8].mxu0 %vm542_vm1, %v4400_v50  ;;  %v4407_v50 = vrot.slane %v9591_v32, 2 }
  0xfb   : > { %8027 = vmatprep.mubr.msk.bf16.mxu0 %vm542_vm1, %v4402_v62  ;;  %v4409_v62 = vrot.slane %v9593_v58, 2 }
  0xfc   : > { %v4408_v11 = vsel %vm3802_vm4, %v4405_v47, %v4407_v50 }
  0xfd   : > { %v4410_v10 = vsel %vm3802_vm4, %v4407_v50, %v4409_v62 }
  0xfe   : > { %7730 = vmatmul.mubr.msk.bf16.gmra.mrb[44].mxu1 %vm542_vm1, %v9230_v36 }
  0xff   : > { %7733 = vmatprep.mubr.msk.bf16.mxu1 %vm542_vm1, %v9257_v51 }
 0x102   : > { %8028 = vmatmul.mubr.msk.bf16.gmra.mrb[12].mxu0 %vm542_vm1, %v4404_v28  ;;  %v4411_v28 = vrot.slane %v9605_v49, 2 }
 0x103   : > { %8031 = vmatprep.mubr.msk.bf16.mxu0 %vm542_vm1, %v4406_v45  ;;  %v4413_v45 = vrot.slane %v9607_v44, 2 }
 0x104   : > { %v4412_v47 = vsel %vm3802_vm4, %v4409_v62, %v4411_v28 }
 0x105   : > { %v4414_v50 = vsel %vm3802_vm4, %v4411_v28, %v4413_v45  ;;  %v1946_v28 = vrot.slane %v9376_v61, 1  ;;  %v1950_v61 = vrot.slane %v9398_v7, 1  ;;  %v1956_v7 = vrot.slane %v9434_v24, 1  ;;  %v8834_v24 = vld [vmem:[#allocation2 + $0x50] sm:$0xff] }
 0x106   : > { %7734 = vmatmul.mubr.msk.bf16.gmra.mrb[48].mxu1 %vm542_vm1, %v9261_v59 }
 0x107   : > { %7737 = vmatprep.mubr.msk.bf16.mxu1 %vm542_vm1, %v9275_v13  ;;  %v1947_v60 = vsel %vm1942_vm5, %v1944_v21, %v1946_v28 }
 0x10a   : > { %8032 = vmatmul.mubr.msk.bf16.gmra.mrb[16].mxu0 %vm542_vm1, %v4408_v11  ;;  %v1906_v11 = vld [vmem:[#allocation2] sm:$0xfe] }
 0x10b   : > { %8035 = vmatprep.mubr.msk.bf16.mxu0 %vm542_vm1, %v4410_v10  ;;  %v4416_v10 = vsel %vm3802_vm4, %v4413_v45, %v9349_v41  ;;  %v1943_v3 = vrot.slane %v1906_v11, 1  ;;  %v9637_v41 = vrot.slane %v9394_v6, 1  ;;  %v1954_v6 = vrot.slane %v9418_v23, 1  ;;  %v8837_v11 = vld [vmem:[#allocation2 + $0x68] sm:$0xff] }
 0x10c   : > { %v1960_v23 = vrot.slane %v9454_v37, 1  ;;  %v8835_v37 = vld [vmem:[#allocation2 + $0x58] sm:$0xff] }
 0x10d   : > { %v1945_v62 = vsel %vm1942_vm5, %v1943_v3, %v1944_v21  ;;  %v2690_v3 = vsel %vm1257_vm0, %v9370_v57, 0  ;;  %v8833_v21 = vld [vmem:[%s10633_s2 + $0x10] sm:$0xf]  ;;  %v9660_v57 = vsel %vm1942_vm5, %v9637_v41, %v1950_v61  ;;  %v1964_v45 = vrot.slane %v8835_v37, 1  ;;  %v8841_v37 = vld [vmem:[#allocation2 + $0x88] sm:$0xff] }
 0x10e   : > { %7738 = vmatmul.mubr.msk.bf16.gmra.mrb[52].mxu1 %vm542_vm1, %v9279_v17 }
 0x10f   : > { %7741 = vmatprep.mubr.msk.bf16.mxu1 %vm542_vm1, %v9293_v42 }
 0x112   : > { %8036 = vmatmul.mubr.msk.bf16.gmra.mrb[20].mxu0 %vm542_vm1, %v4412_v47  ;;  %v8836_v47 = vld [vmem:[#allocation2 + $0x60] sm:$0xff] }
 0x113   : > { %8039 = vmatprep.mubr.msk.bf16.mxu0 %vm542_vm1, %v4414_v50  ;;  %v1966_v50 = vrot.slane %v8836_v47, 1 }
 0x116   : > { %7742 = vmatmul.mubr.msk.bf16.gmra.mrb[56].mxu1 %vm542_vm1, %v9297_v34 }
 0x117   : > { %7745 = vmatprep.mubr.msk.bf16.mxu1 %vm542_vm1, %v9311_v56 }
 0x11a   : > { %8040 = vmatmul.mubr.msk.bf16.gmra.mrb[24].mxu0 %vm542_vm1, %v4416_v10  ;;  %v1968_v10 = vrot.slane %v8837_v11, 1 }
 0x11b   : > { %8043 = vmatprep.mubr.msk.bf16.mxu0 %vm542_vm1, %v9358_v53  ;;  %v1949_v53 = vsel %vm1942_vm5, %v1946_v28, %v9637_v41 }
 0x11e   : > { %7746 = vmatmul.mubr.msk.bf16.gmra.mrb[60].mxu1 %vm542_vm1, %v9315_v1 }
 0x11f   : > { %7751 = vmatprep.mubr.msk.bf16.mxu1 %vm542_vm1, %v1945_v62  ;;  %v8838_v62 = vld [vmem:[#allocation2 + $0x70] sm:$0xff] }
 0x120   : > { %v1970_v28 = vrot.slane %v8838_v62, 1 }
 0x122   : > { %8044 = vmatmul.mubr.msk.bf16.gmra.mrb[28].mxu0 %vm542_vm1, %v9381_v33  ;;  %v1952_v33 = vrot.slane %v9414_v15, 1  ;;  %v1958_v15 = vrot.slane %v9438_v25, 1  ;;  %v1962_v25 = vrot.slane %v8834_v24, 1 }
 0x123   : > { %8047 = vmatprep.mubr.msk.bf16.mxu0 %vm542_vm1, %v9386_v63 }
 0x124   : > { %v9665_v63 = vsel %vm1942_vm5, %v1950_v61, %v1952_v33 }
 0x126   : > { %7752 = vmatmul.mubr.msk.bf16.vlgmr.msra.gmra.mrb[0].mxu1 %vm542_vm1, %v1947_v60  ;;  %v8839_v60 = vld [vmem:[#allocation2 + $0x78] sm:$0xff] }
 0x127   : > { %7816 = vmatpush3.bf16.msra.mxu1 %v2690_v3  ;;  %7755 = vmatprep.mubr.msk.bf16.mxu1 %vm542_vm1, %v1949_v53  ;;  %v1972_v3 = vrot.slane %v8839_v60, 1  ;;  %v9733_v53 = vld [vmem:[#allocation2 + $0x118] sm:$0xff] }
 0x128   : > { %8730 = vmatprep.subr.msk.bf16.mxu1 %vm1257_vm0, %v8833_v21  ;;  %v4449_v21 = vrot.slane %v9733_v53, 2 }
 0x12a   : > { %8048 = vmatmul.mubr.msk.bf16.gmra.mrb[32].mxu0 %vm542_vm1, %v9403_v8  ;;  %v9676_v8 = vsel %vm1942_vm5, %v1952_v33, %v1954_v6  ;;  %v9744_v33 = vsel %vm1942_vm5, %v1970_v28, %v1972_v3 }
 0x12b   : > { %8051 = vmatprep.mubr.msk.bf16.mxu0 %vm542_vm1, %v9406_v9  ;;  %v9681_v9 = vsel %vm1942_vm5, %v1954_v6, %v1956_v7  ;;  %v4910_v6 = vshrl.u32 %v9509_v0, 16 }
 0x12d   : > { %v4912_v47 = vrot.slane %v4910_v6, 2 }
 0x12e   : > { %7756 = vmatmul.mubr.msk.bf16.gmra.mrb[4].mxu1 %vm542_vm1, %v9660_v57 }
 0x12f   : > { %7759 = vmatprep.mubr.msk.bf16.mxu1 %vm542_vm1, %v9665_v63 }
 0x132   : > { %8052 = vmatmul.mubr.msk.bf16.gmra.mrb[36].mxu0 %vm542_vm1, %v9423_v18  ;;  %v9692_v18 = vsel %vm1942_vm5, %v1956_v7, %v1958_v15  ;;  %v4913_v7 = vshll.u32 %v9509_v0, 16  ;;  %v4352_v0 = vld [vmem:[#allocation2 + $0x120] sm:$0x3] }
 0x133   : > { %8055 = vmatprep.mubr.msk.bf16.mxu0 %vm542_vm1, %v9426_v27  ;;  %v9697_v27 = vsel %vm1942_vm5, %v1958_v15, %v1960_v23  ;;  %v4918_v15 = vshrl.u32 %v9511_v16, 16 }
 0x135   : > { %v4920_v11 = vrot.slane %v4918_v15, 2  ;;  %v4939_v15 = vshll.u32 %v9528_v40, 16 }
 0x136   : > { %7760 = vmatmul.mubr.msk.bf16.gmra.mrb[8].mxu1 %vm542_vm1, %v9676_v8 }
 0x137   : > { %7763 = vmatprep.mubr.msk.bf16.mxu1 %vm542_vm1, %v9681_v9 }
 0x13a   : > { %8056 = vmatmul.mubr.msk.bf16.gmra.mrb[40].mxu0 %vm542_vm1, %v9443_v31  ;;  %v9706_v31 = vsel %vm1942_vm5, %v1960_v23, %v1962_v25 }
 0x13b   : > { %8059 = vmatprep.mubr.msk.bf16.mxu0 %vm542_vm1, %v9446_v30  ;;  %v9711_v30 = vsel %vm1942_vm5, %v1962_v25, %v1964_v45 }
 0x13e   : > { %7764 = vmatmul.mubr.msk.bf16.gmra.mrb[12].mxu1 %vm542_vm1, %v9692_v18 }
 0x13f   : > { %7767 = vmatprep.mubr.msk.bf16.mxu1 %vm542_vm1, %v9697_v27 }
 0x142   : > { %8060 = vmatmul.mubr.msk.bf16.gmra.mrb[44].mxu0 %vm542_vm1, %v9461_v26  ;;  %v9720_v26 = vsel %vm1942_vm5, %v1964_v45, %v1966_v50  ;;  %v1976_v45 = vrot.slane %v8841_v37, 1  ;;  %v1980_v37 = vrot.slane %v9184_v46, 1 }
 0x143   : > { %8063 = vmatprep.mubr.msk.bf16.mxu0 %vm542_vm1, %v9464_v39  ;;  %v9725_v39 = vsel %vm1942_vm5, %v1966_v50, %v1968_v10  ;;  %v4915_v50 = vrot.slane %v4913_v7, 3  ;;  %v4936_v7 = vshrl.u32 %v9528_v40, 16 }
 0x146   : > { %7768 = vmatmul.mubr.msk.bf16.gmra.mrb[16].mxu1 %vm542_vm1, %v9706_v31 }
 0x147   : > { %7771 = vmatprep.mubr.msk.bf16.mxu1 %vm542_vm1, %v9711_v30 }
 0x14a   : > { %8064 = vmatmul.mubr.msk.bf16.gmra.mrb[48].mxu0 %vm542_vm1, %v9477_v48  ;;  %v9731_v48 = vld [vmem:[#allocation2 + $0x110] sm:$0xff] }
 0x14b   : > { %8067 = vmatprep.mubr.msk.bf16.mxu0 %vm542_vm1, %v9480_v43  ;;  %v9738_v43 = vsel %vm1942_vm5, %v1968_v10, %v1970_v28  ;;  %v4447_v61 = vrot.slane %v9731_v48, 2  ;;  %v4451_v28 = vrot.slane %v4352_v0, 2 }
 0x14d   : > { %v4448_v24 = vsel %vm3802_vm4, %v9492_v14, %v4447_v61  ;;  %v4450_v25 = vsel %vm3802_vm4, %v4447_v61, %v4449_v21  ;;  %v4927_v14 = vshrl.u32 %v9526_v35, 16  ;;  %v4930_v61 = vshll.u32 %v9526_v35, 16 }
 0x14e   : > { %7772 = vmatmul.mubr.msk.bf16.gmra.mrb[20].mxu1 %vm542_vm1, %v9720_v26 }
 0x14f   : > { %7775 = vmatprep.mubr.msk.bf16.mxu1 %vm542_vm1, %v9725_v39 }
 0x152   : > { %8068 = vmatmul.mubr.msk.bf16.gmra.mrb[52].mxu0 %vm542_vm1, %v9502_v55  ;;  %v4921_v55 = vshll.u32 %v9511_v16, 16 }
 0x153   : > { %8071 = vmatprep.mubr.msk.bf16.mxu0 %vm542_vm1, %v9507_v4  ;;  %v8840_v4 = vld [vmem:[#allocation2 + $0x80] sm:$0xff] }
 0x154   : > { %v1974_v23 = vrot.slane %v8840_v4, 1  ;;  %v4923_v10 = vrot.slane %v4921_v55, 3  ;;  %v4916_v4 = vor.u32 %v4915_v50, %v4912_v47  ;;  %v4938_v47 = vrot.slane %v4936_v7, 2 }
 0x155   : > { %v4941_v50 = vrot.slane %v4939_v15, 3 }
 0x156   : > { %7776 = vmatmul.mubr.msk.bf16.gmra.mrb[24].mxu1 %vm542_vm1, %v9738_v43  ;;  %v9760_v62 = vsel %vm1942_vm5, %v1972_v3, %v1974_v23  ;;  %v9764_v60 = vsel %vm1942_vm5, %v1974_v23, %v1976_v45  ;;  %v4924_v6 = vor.u32 %v4923_v10, %v4920_v11  ;;  %v9774_v3 = vld [vmem:[#allocation2 + $0x90] sm:$0xff]  ;;  %v4452_v23 = vsel %vm3802_vm4, %v4449_v21, %v4451_v28 }
 0x157   : > { %7779 = vmatprep.mubr.msk.bf16.mxu1 %vm542_vm1, %v9744_v33  ;;  %v1978_v55 = vrot.slane %v9774_v3, 1  ;;  %v4945_v21 = vshrl.u32 %v9542_v54, 16  ;;  %v4948_v28 = vshll.u32 %v9542_v54, 16  ;;  %v4942_v46 = vor.u32 %v4941_v50, %v4938_v47 }
 0x158   : > { %v4925_v0 = vsel %vm4908_vm6, %v4916_v4, %v4924_v6 }
 0x159   : > { %v9782_v11 = vsel %vm1942_vm5, %v1976_v45, %v1978_v55  ;;  %v9786_v40 = vsel %vm1942_vm5, %v1978_v55, %v1980_v37  ;;  %v1982_v45 = vrot.slane %v9194_v2, 1  ;;  %v4947_v7 = vrot.slane %v4945_v21, 2 }
 0x15a   : > { %8072 = vmatmul.mubr.msk.bf16.gmra.mrb[56].mxu0 %vm542_vm1, %v4448_v24  ;;  %v4929_v24 = vrot.slane %v4927_v14, 2  ;;  %v4954_v14 = vshrl.u32 %v9544_v5, 16  ;;  %v4950_v15 = vrot.slane %v4948_v28, 3  ;;  %v1984_v55 = vrot.slane %v9204_v12, 1 }
 0x15b   : > { %8075 = vmatprep.mubr.msk.bf16.mxu0 %vm542_vm1, %v4450_v25  ;;  %v4932_v25 = vrot.slane %v4930_v61, 3  ;;  %v4957_v61 = vshll.u32 %v9544_v5, 16  ;;  %v9804_v47 = vsel %vm1942_vm5, %v1980_v37, %v1982_v45  ;;  %v4963_v12 = vshrl.u32 %v9563_v19, 16 }
 0x15c   : > { %v4951_v2 = vor.u32 %v4950_v15, %v4947_v7  ;;  %v4975_v21 = vshll.u32 %v9565_v22, 16  ;;  %v1986_v37 = vrot.slane %v9219_v29, 1 }
 0x15d   : > { %v4933_v10 = vor.u32 %v4932_v25, %v4929_v24  ;;  %v4956_v25 = vrot.slane %v4954_v14, 2  ;;  %v4965_v14 = vrot.slane %v4963_v12, 2 }
 0x15e   : > { %7780 = vmatmul.mubr.msk.bf16.gmra.mrb[28].mxu1 %vm542_vm1, %v9760_v62  ;;  %v4952_v28 = vsel %vm4908_vm6, %v4942_v46, %v4951_v2  ;;  %v4977_v15 = vrot.slane %v4975_v21, 3  ;;  %v1992_v21 = vrot.slane %v9261_v59, 1 }
 0x15f   : > { %7783 = vmatprep.mubr.msk.bf16.mxu1 %vm542_vm1, %v9764_v60  ;;  %v4934_v4 = vsel %vm4908_vm6, %v4924_v6, %v4933_v10  ;;  %v4943_v24 = vsel %vm4908_vm6, %v4933_v10, %v4942_v46  ;;  %v9808_v6 = vsel %vm1942_vm5, %v1982_v45, %v1984_v55  ;;  %v4972_v10 = vshrl.u32 %v9565_v22, 16 }
 0x160   : > { %v1988_v45 = vrot.slane %v9230_v36, 1  ;;  %v4981_v46 = vshrl.u32 %v9577_v52, 16 }
 0x161   : > { %v4974_v7 = vrot.slane %v4972_v10, 2 }
 0x162   : > { %8076 = vmatmul.mubr.msk.bf16.gmra.mrb[60].mxu0 %vm542_vm1, %v4452_v23  ;;  %v5825_v23 = vsel %vm1257_vm0, %v9549_v20, 0  ;;  %v4966_v20 = vshll.u32 %v9563_v19, 16  ;;  %v9828_v29 = vsel %vm1942_vm5, %v1986_v37, %v1988_v45 }
 0x163   : > { %8081 = vmatprep.mubr.msk.bf16.mxu0 %vm542_vm1, %v4925_v0  ;;  %v4959_v0 = vrot.slane %v4957_v61, 3  ;;  %v4978_v36 = vor.u32 %v4977_v15, %v4974_v7  ;;  %v5002_v7 = vshll.u32 %v9591_v32, 16  ;;  %v5008_v15 = vshrl.u32 %v9593_v58, 16 }
 0x164   : > { %v4968_v61 = vrot.slane %v4966_v20, 3  ;;  %v4983_v20 = vrot.slane %v4981_v46, 2 }
 0x165   : > { %v4960_v50 = vor.u32 %v4959_v0, %v4956_v25  ;;  %v4984_v25 = vshll.u32 %v9577_v52, 16  ;;  %v4990_v0 = vshrl.u32 %v9579_v38, 16 }
 0x166   : > { %7784 = vmatmul.mubr.msk.bf16.gmra.mrb[32].mxu1 %vm542_vm1, %v9782_v11 }
 0x167   : > { %7787 = vmatprep.mubr.msk.bf16.mxu1 %vm542_vm1, %v9786_v40  ;;  %v4986_v10 = vrot.slane %v4984_v25, 3 }
 0x16a   : > { %8082 = vmatmul.mubr.msk.bf16.vlgmr.msra.gmra.mrb[0].mxu0 %vm542_vm1, %v4934_v4  ;;  %v4961_v4 = vsel %vm4908_vm6, %v4951_v2, %v4960_v50  ;;  %v4993_v2 = vshll.u32 %v9579_v38, 16 }
 0x16b   : > { %8146 = vmatpush3.bf16.msra.mxu0 %v5825_v23  ;;  %8085 = vmatprep.mubr.msk.bf16.mxu0 %vm542_vm1, %v4943_v24  ;;  %v9824_v23 = vsel %vm1942_vm5, %v1984_v55, %v1986_v37  ;;  %v4969_v24 = vor.u32 %v4968_v61, %v4965_v14  ;;  %v1990_v55 = vrot.slane %v9257_v51, 1 }
 0x16c   : > { %v4995_v14 = vrot.slane %v4993_v2, 3  ;;  %v1996_v2 = vrot.slane %v9279_v17, 1 }
 0x16d   : > { %v4970_v12 = vsel %vm4908_vm6, %v4960_v50, %v4969_v24  ;;  %v4979_v37 = vsel %vm4908_vm6, %v4969_v24, %v4978_v36  ;;  %v9844_v61 = vsel %vm1942_vm5, %v1988_v45, %v1990_v55  ;;  %v9848_v51 = vsel %vm1942_vm5, %v1990_v55, %v1992_v21 }
 0x16e   : > { %7788 = vmatmul.mubr.msk.bf16.gmra.mrb[36].mxu1 %vm542_vm1, %v9804_v47  ;;  %v4999_v50 = vshrl.u32 %v9591_v32, 16  ;;  %v5011_v24 = vshll.u32 %v9593_v58, 16  ;;  %v1994_v45 = vrot.slane %v9275_v13, 1 }
 0x16f   : > { %7791 = vmatprep.mubr.msk.bf16.mxu1 %vm542_vm1, %v9808_v6 }
 0x170   : > { %v5001_v25 = vrot.slane %v4999_v50, 2  ;;  %v9868_v13 = vsel %vm1942_vm5, %v1994_v45, %v1996_v2 }
 0x172   : > { %8086 = vmatmul.mubr.msk.bf16.gmra.mrb[4].mxu0 %vm542_vm1, %v4952_v28  ;;  %v4992_v28 = vrot.slane %v4990_v0, 2  ;;  %v5004_v0 = vrot.slane %v5002_v7, 3 }
 0x173   : > { %8089 = vmatprep.mubr.msk.bf16.mxu0 %vm542_vm1, %v4961_v4  ;;  %v4987_v4 = vor.u32 %v4986_v10, %v4983_v20  ;;  %v5013_v20 = vrot.slane %v5011_v24, 3  ;;  %v9864_v10 = vsel %vm1942_vm5, %v1992_v21, %v1994_v45  ;;  %v1998_v21 = vrot.slane %v9293_v42, 1 }
 0x174   : > { %v4996_v59 = vor.u32 %v4995_v14, %v4992_v28  ;;  %v5020_v28 = vshll.u32 %v9605_v49, 16  ;;  %v5026_v14 = vshrl.u32 %v9607_v44, 16  ;;  %v2000_v24 = vrot.slane %v9297_v34, 1 }
 0x175   : > { %v4988_v46 = vsel %vm4908_vm6, %v4978_v36, %v4987_v4  ;;  %v5017_v36 = vshrl.u32 %v9605_v49, 16 }
 0x176   : > { %7792 = vmatmul.mubr.msk.bf16.gmra.mrb[40].mxu1 %vm542_vm1, %v9824_v23  ;;  %v4997_v55 = vsel %vm4908_vm6, %v4987_v4, %v4996_v59  ;;  %v5029_v4 = vshll.u32 %v9607_v44, 16  ;;  %v9888_v42 = vsel %vm1942_vm5, %v1998_v21, %v2000_v24 }
 0x177   : > { %7795 = vmatprep.mubr.msk.bf16.mxu1 %vm542_vm1, %v9828_v29  ;;  %v5019_v7 = vrot.slane %v5017_v36, 2 }
 0x17a   : > { %8090 = vmatmul.mubr.msk.bf16.gmra.mrb[8].mxu0 %vm542_vm1, %v4970_v12  ;;  %v5010_v12 = vrot.slane %v5008_v15, 2  ;;  %v5022_v15 = vrot.slane %v5020_v28, 3 }
 0x17b   : > { %8093 = vmatprep.mubr.msk.bf16.mxu0 %vm542_vm1, %v4979_v37  ;;  %v5005_v37 = vor.u32 %v5004_v0, %v5001_v25  ;;  %v5031_v25 = vrot.slane %v5029_v4, 3  ;;  %v9884_v0 = vsel %vm1942_vm5, %v1996_v2, %v1998_v21  ;;  %v2002_v2 = vrot.slane %v9311_v56, 1 }
 0x17c   : > { %v5014_v17 = vor.u32 %v5013_v20, %v5010_v12  ;;  %v5038_v12 = vshll.u32 %v9774_v3, 16  ;;  %v9892_v20 = vld [vmem:[#allocation2 + $0x98] sm:$0xff]  ;;  %v9903_v21 = vrot.slane %v9315_v1, 1 }
 0x17d   : > { %v5006_v50 = vsel %vm4908_vm6, %v4996_v59, %v5005_v37  ;;  %v5035_v59 = vshrl.u32 %v9774_v3, 16  ;;  %10684 = vst [vmem:[#allocation9_spill] sm:$0xff] %v9892_v20  ;;  %v10644_v36 = vshll.u32 %v9892_v20, 16 }
 0x17e   : > { %7796 = vmatmul.mubr.msk.bf16.gmra.mrb[44].mxu1 %vm542_vm1, %v9844_v61  ;;  %v5015_v45 = vsel %vm4908_vm6, %v5005_v37, %v5014_v17  ;;  %v10645_v37 = vshrl.u32 %v9892_v20, 16  ;;  %v5040_v4 = vrot.slane %v5038_v12, 3  ;;  %v9917_v1 = vsel %vm1942_vm5, %v2002_v2, %v9903_v21 }
 0x17f   : > { %7799 = vmatprep.mubr.msk.bf16.mxu1 %vm542_vm1, %v9848_v51 }
 0x182   : > { %8094 = vmatmul.mubr.msk.bf16.gmra.mrb[12].mxu0 %vm542_vm1, %v4988_v46  ;;  %v5028_v46 = vrot.slane %v5026_v14, 2  ;;  %v5037_v14 = vrot.slane %v5035_v59, 2  ;;  %v9923_v59 = vld [vmem:[#allocation2 + $0xa8] sm:$0xff] }
 0x183   : > { %8097 = vmatprep.mubr.msk.bf16.mxu0 %vm542_vm1, %v4997_v55  ;;  %v5023_v55 = vor.u32 %v5022_v15, %v5019_v7  ;;  %v5046_v7 = vrot.slane %v10645_v37, 2  ;;  %v5049_v15 = vrot.slane %v10644_v36, 3  ;;  %10685 = vst [vmem:[#allocation10_spill] sm:$0xff] %v9923_v59  ;;  %v10649_v12 = vshrl.u32 %v9923_v59, 16 }
 0x184   : > { %v5032_v34 = vor.u32 %v5031_v25, %v5028_v46  ;;  %v5041_v56 = vor.u32 %v5040_v4, %v5037_v14 }
 0x185   : > { %v5024_v28 = vsel %vm4908_vm6, %v5014_v17, %v5023_v55  ;;  %v9919_v17 = vld [vmem:[#allocation2 + $0xa0] sm:$0xff]  ;;  %v5064_v37 = vrot.slane %v10649_v12, 2 }
 0x186   : > { %7800 = vmatmul.mubr.msk.bf16.gmra.mrb[48].mxu1 %vm542_vm1, %v9864_v10  ;;  %v10650_v46 = vshrl.u32 %v9919_v17, 16  ;;  %v10648_v25 = vshll.u32 %v9919_v17, 16  ;;  %v5042_v14 = vsel %vm4908_vm6, %v5032_v34, %v5041_v56 }
 0x187   : > { %7803 = vmatprep.mubr.msk.bf16.mxu1 %vm542_vm1, %v9868_v13 }
 0x188   : > { %v5055_v4 = vrot.slane %v10650_v46, 2 }
 0x18a   : > { %8098 = vmatmul.mubr.msk.bf16.gmra.mrb[16].mxu0 %vm542_vm1, %v5006_v50  ;;  %v5033_v50 = vsel %vm4908_vm6, %v5023_v55, %v5032_v34  ;;  %v5050_v55 = vor.u32 %v5049_v15, %v5046_v7  ;;  %v8846_v7 = vld [vmem:[#allocation2 + $0x10] sm:$0xfe] }
 0x18b   : > { %8101 = vmatprep.mubr.msk.bf16.mxu0 %vm542_vm1, %v5015_v45  ;;  %v9912_v45 = vsel %vm1942_vm5, %v2000_v24, %v2002_v2  ;;  %v10653_v24 = vshll.u32 %v9923_v59, 16  ;;  %v10686_v2 = vld [vmem:[#allocation5_spill] sm:$0xff]  ;;  %v2528_v15 = vrot.slane %v8846_v7, 1  ;;  %v9952_v59 = vld [vmem:[#allocation2 + $0xb8] sm:$0xff] }
 0x18c   : > { %v5051_v36 = vsel %vm4908_vm6, %v5041_v56, %v5050_v55  ;;  %v9948_v7 = vld [vmem:[#allocation2 + $0xb0] sm:$0xff] }
 0x18d   : > { %v5067_v20 = vrot.slane %v10653_v24, 3  ;;  %v10670_v56 = vshrl.u32 %v9948_v7, 16  ;;  %v10654_v12 = vshll.u32 %v9948_v7, 16  ;;  %v10658_v24 = vshll.u32 %v9952_v59, 16 }
 0x18e   : > { %7804 = vmatmul.mubr.msk.bf16.gmra.mrb[52].mxu1 %vm542_vm1, %v9884_v0 }
 0x18f   : > { %7807 = vmatprep.mubr.msk.bf16.mxu1 %vm542_vm1, %v9888_v42  ;;  %v5068_v46 = vor.u32 %v5067_v20, %v5064_v37 }
 0x192   : > { %8102 = vmatmul.mubr.msk.bf16.gmra.mrb[20].mxu0 %vm542_vm1, %v5024_v28  ;;  %v2006_v28 = vrot.slane %v10686_v2, 1 }
 0x193   : > { %8105 = vmatprep.mubr.msk.bf16.mxu0 %vm542_vm1, %v5033_v50  ;;  %v5058_v50 = vrot.slane %v10648_v25, 3  ;;  %v2530_v25 = vsel %vm1942_vm5, %v2528_v15, %v9637_v41  ;;  %v5073_v41 = vrot.slane %v10670_v56, 2  ;;  %v10689_v56 = vld [vmem:[#allocation7_spill] sm:$0xff] }
 0x194   : > { %v2007_v34 = vsel %vm1942_vm5, %v9903_v21, %v2006_v28  ;;  %v5076_v28 = vrot.slane %v10654_v12, 3  ;;  %v9974_v12 = vld [vmem:[#allocation2 + $0xc8] sm:$0xff] }
 0x195   : > { %v5059_v2 = vor.u32 %v5058_v50, %v5055_v4  ;;  %v5085_v4 = vrot.slane %v10658_v24, 3  ;;  %v9999_v24 = vld [vmem:[#allocation2 + $0xd8] sm:$0xff] }
 0x196   : > { %7808 = vmatmul.mubr.msk.bf16.gmra.mrb[56].mxu1 %vm542_vm1, %v9912_v45 }
 0x197   : > { %7811 = vmatprep.mubr.msk.bf16.mxu1 %vm542_vm1, %v9917_v1  ;;  %v5069_v20 = vsel %vm4908_vm6, %v5059_v2, %v5068_v46 }
 0x19a   : > { %8106 = vmatmul.mubr.msk.bf16.gmra.mrb[24].mxu0 %vm542_vm1, %v5042_v14  ;;  %v10655_v14 = vshrl.u32 %v9952_v59, 16 }
 0x19b   : > { %8109 = vmatprep.mubr.msk.bf16.mxu0 %vm542_vm1, %v5051_v36  ;;  %v5060_v36 = vsel %vm4908_vm6, %v5050_v55, %v5059_v2  ;;  %v9970_v55 = vld [vmem:[#allocation2 + $0xc0] sm:$0xff]  ;;  %v10659_v2 = vshrl.u32 %v9974_v12, 16 }
 0x19c   : > { %v5082_v37 = vrot.slane %v10655_v14, 2  ;;  %v10656_v50 = vshrl.u32 %v9970_v55, 16  ;;  %v10657_v15 = vshll.u32 %v9970_v55, 16  ;;  %v10662_v14 = vshll.u32 %v9974_v12, 16 }
 0x19e   : > { %7812 = vmatmul.mubr.msk.bf16.gmra.mrb[60].mxu1 %vm542_vm1, %v2007_v34  ;;  %v5086_v34 = vor.u32 %v5085_v4, %v5082_v37  ;;  %v5100_v4 = vrot.slane %v10659_v2, 2  ;;  %v10666_v2 = vshll.u32 %v9999_v24, 16 }
 0x19f   : > { %7817 = vmatprep.mubr.msk.bf16.mxu1 %vm542_vm1, %v2530_v25  ;;  %v5077_v25 = vor.u32 %v5076_v28, %v5073_v41  ;;  %v5091_v28 = vrot.slane %v10656_v50, 2 }
 0x1a1   : > { %v5078_v41 = vsel %vm4908_vm6, %v5068_v46, %v5077_v25  ;;  %v5087_v37 = vsel %vm4908_vm6, %v5077_v25, %v5086_v34  ;;  %v9995_v46 = vld [vmem:[#allocation2 + $0xd0] sm:$0xff]  ;;  %v10663_v25 = vshrl.u32 %v9999_v24, 16 }
 0x1a2   : > { %8110 = vmatmul.mubr.msk.bf16.gmra.mrb[28].mxu0 %vm542_vm1, %v5060_v36  ;;  %v10687_v36 = vld [vmem:[#allocation3_spill] sm:$0xff]  ;;  %v10661_v50 = vshll.u32 %v9995_v46, 16 }
 0x1a3   : > { %8113 = vmatprep.mubr.msk.bf16.mxu0 %vm542_vm1, %v5069_v20  ;;  %v5094_v20 = vrot.slane %v10657_v15, 3 }
 0x1a6   : > { %7818 = vmatmul.mubr.msk.bf16.vlgmr.msra.gmra.mrb[0].mxu1 %vm542_vm1, %v9660_v57  ;;  %v5103_v57 = vrot.slane %v10662_v14, 3  ;;  %v10023_v14 = vld [vmem:[#allocation2 + $0xe8] sm:$0xff] }
 0x1a7   : > { %8212 = vmatpush3.bf16.msra.mxu1 %v10687_v36  ;;  %7821 = vmatprep.mubr.msk.bf16.mxu1 %vm542_vm1, %v9665_v63  ;;  %v5095_v63 = vor.u32 %v5094_v20, %v5091_v28  ;;  %v10660_v36 = vshrl.u32 %v9995_v46, 16  ;;  %v5112_v20 = vrot.slane %v10661_v50, 3 }
 0x1a8   : > { %v5104_v15 = vor.u32 %v5103_v57, %v5100_v4  ;;  %v5118_v4 = vrot.slane %v10663_v25, 2  ;;  %v5121_v57 = vrot.slane %v10666_v2, 3  ;;  %v10669_v25 = vshll.u32 %v10023_v14, 16  ;;  %v10047_v2 = vld [vmem:[#allocation2 + $0xf8] sm:$0xff] }
 0x1a9   : > { %v5109_v28 = vrot.slane %v10660_v36, 2 }
 0x1aa   : > { %8114 = vmatmul.mubr.msk.bf16.gmra.mrb[32].mxu0 %vm542_vm1, %v5078_v41  ;;  %v5096_v41 = vsel %vm4908_vm6, %v5086_v34, %v5095_v63  ;;  %v5122_v50 = vor.u32 %v5121_v57, %v5118_v4  ;;  %v5139_v57 = vrot.slane %v10669_v25, 3 }
 0x1ab   : > { %8117 = vmatprep.mubr.msk.bf16.mxu0 %vm542_vm1, %v5087_v37  ;;  %v5105_v37 = vsel %vm4908_vm6, %v5095_v63, %v5104_v15  ;;  %v10667_v63 = vshrl.u32 %v10023_v14, 16 }
 0x1ad   : > { %v5136_v4 = vrot.slane %v10667_v63, 2  ;;  %v10676_v63 = vshll.u32 %v10047_v2, 16 }
 0x1ae   : > { %7822 = vmatmul.mubr.msk.bf16.gmra.mrb[4].mxu1 %vm542_vm1, %v9676_v8  ;;  %v5113_v8 = vor.u32 %v5112_v20, %v5109_v28 }
 0x1af   : > { %7825 = vmatprep.mubr.msk.bf16.mxu1 %vm542_vm1, %v9681_v9  ;;  %v10019_v9 = vld [vmem:[#allocation2 + $0xe0] sm:$0xff] }
 0x1b0   : > { %v10664_v34 = vshrl.u32 %v10019_v9, 16  ;;  %v10665_v36 = vshll.u32 %v10019_v9, 16 }
 0x1b2   : > { %8118 = vmatmul.mubr.msk.bf16.gmra.mrb[36].mxu0 %vm542_vm1, %v5096_v41  ;;  %v5114_v41 = vsel %vm4908_vm6, %v5104_v15, %v5113_v8  ;;  %v5127_v28 = vrot.slane %v10664_v34, 2  ;;  %v5130_v20 = vrot.slane %v10665_v36, 3  ;;  %v5140_v36 = vor.u32 %v5139_v57, %v5136_v4 }
 0x1b3   : > { %8121 = vmatprep.mubr.msk.bf16.mxu0 %vm542_vm1, %v5105_v37  ;;  %v5123_v37 = vsel %vm4908_vm6, %v5113_v8, %v5122_v50  ;;  %v5152_v8 = vshrl.u32 %v10047_v2, 16  ;;  %v5157_v57 = vrot.slane %v10676_v63, 3  ;;  %v10097_v63 = vld [vmem:[#allocation2 + $0x120] sm:$0x7] }
 0x1b5   : > { %v5154_v4 = vrot.slane %v5152_v8, 2 }
 0x1b6   : > { %7826 = vmatmul.mubr.msk.bf16.gmra.mrb[8].mxu1 %vm542_vm1, %v9692_v18  ;;  %v5131_v18 = vor.u32 %v5130_v20, %v5127_v28 }
 0x1b7   : > { %7829 = vmatprep.mubr.msk.bf16.mxu1 %vm542_vm1, %v9697_v27  ;;  %v10043_v27 = vld [vmem:[#allocation2 + $0xf0] sm:$0xff]  ;;  %v5158_v25 = vor.u32 %v5157_v57, %v5154_v4 }
 0x1b8   : > { %v10668_v15 = vshrl.u32 %v10043_v27, 16  ;;  %v10671_v34 = vshll.u32 %v10043_v27, 16 }
 0x1ba   : > { %8122 = vmatmul.mubr.msk.bf16.gmra.mrb[40].mxu0 %vm542_vm1, %v5114_v41  ;;  %v5132_v41 = vsel %vm4908_vm6, %v5122_v50, %v5131_v18  ;;  %v5145_v28 = vrot.slane %v10668_v15, 2  ;;  %v5148_v20 = vrot.slane %v10671_v34, 3  ;;  %v10675_v34 = vshrl.u32 %v10689_v56, 16 }
 0x1bb   : > { %8125 = vmatprep.mubr.msk.bf16.mxu0 %vm542_vm1, %v5123_v37  ;;  %v5141_v37 = vsel %vm4908_vm6, %v5131_v18, %v5140_v36  ;;  %v10674_v18 = vshll.u32 %v10689_v56, 16 }
 0x1bc   : > { %v5172_v4 = vrot.slane %v10675_v34, 2 }
 0x1bd   : > { %v5175_v57 = vrot.slane %v10674_v18, 3 }
 0x1be   : > { %7830 = vmatmul.mubr.msk.bf16.gmra.mrb[12].mxu1 %vm542_vm1, %v9706_v31  ;;  %v5149_v31 = vor.u32 %v5148_v20, %v5145_v28 }
 0x1bf   : > { %7833 = vmatprep.mubr.msk.bf16.mxu1 %vm542_vm1, %v9711_v30  ;;  %v10688_v30 = vld [vmem:[#allocation6_spill] sm:$0xff] }
 0x1c0   : > { %v10672_v50 = vshrl.u32 %v10688_v30, 16  ;;  %v10673_v15 = vshll.u32 %v10688_v30, 16 }
 0x1c2   : > { %8126 = vmatmul.mubr.msk.bf16.gmra.mrb[44].mxu0 %vm542_vm1, %v5132_v41  ;;  %v5150_v41 = vsel %vm4908_vm6, %v5140_v36, %v5149_v31  ;;  %v5163_v28 = vrot.slane %v10672_v50, 2  ;;  %v5166_v20 = vrot.slane %v10673_v15, 3  ;;  %v5182_v36 = vshll.u32 %v9731_v48, 16 }
 0x1c3   : > { %8129 = vmatprep.mubr.msk.bf16.mxu0 %vm542_vm1, %v5141_v37  ;;  %v5159_v37 = vsel %vm4908_vm6, %v5149_v31, %v5158_v25  ;;  %v5176_v50 = vor.u32 %v5175_v57, %v5172_v4  ;;  %v5188_v15 = vshrl.u32 %v9733_v53, 16  ;;  %v5191_v31 = vshll.u32 %v9733_v53, 16 }
 0x1c4   : > { %v5200_v57 = vshll.u32 %v10097_v63, 16 }
 0x1c5   : > { %v5193_v34 = vrot.slane %v5191_v31, 3 }
 0x1c6   : > { %7834 = vmatmul.mubr.msk.bf16.gmra.mrb[16].mxu1 %vm542_vm1, %v9720_v26  ;;  %v5167_v26 = vor.u32 %v5166_v20, %v5163_v28  ;;  %v5190_v20 = vrot.slane %v5188_v15, 2 }
 0x1c7   : > { %7837 = vmatprep.mubr.msk.bf16.mxu1 %vm542_vm1, %v9725_v39  ;;  %v5179_v39 = vshrl.u32 %v9731_v48, 16 }
 0x1c8   : > { %v5177_v28 = vsel %vm4908_vm6, %v5167_v26, %v5176_v50 }
 0x1c9   : > { %v5181_v18 = vrot.slane %v5179_v39, 2 }
 0x1ca   : > { %8130 = vmatmul.mubr.msk.bf16.gmra.mrb[48].mxu0 %vm542_vm1, %v5150_v41  ;;  %v5168_v41 = vsel %vm4908_vm6, %v5158_v25, %v5167_v26  ;;  %v5202_v26 = vrot.slane %v5200_v57, 3  ;;  %v10691_v57 = vld [vmem:[#allocation9_spill] sm:$0xff] }
 0x1cb   : > { %8133 = vmatprep.mubr.msk.bf16.mxu0 %vm542_vm1, %v5159_v37  ;;  %v5184_v37 = vrot.slane %v5182_v36, 3  ;;  %v5657_v36 = vld [vmem:[#allocation2 + $0x20] sm:$0xf8] }
 0x1cc   : > { %v5663_v31 = vrot.slane %v5657_v36, 3 }
 0x1cd   : > { %v5185_v4 = vor.u32 %v5184_v37, %v5181_v18 }
 0x1ce   : > { %7838 = vmatmul.mubr.msk.bf16.gmra.mrb[20].mxu1 %vm542_vm1, %v9738_v43  ;;  %v5197_v43 = vshrl.u32 %v10097_v63, 16 }
 0x1cf   : > { %7841 = vmatprep.mubr.msk.bf16.mxu1 %vm542_vm1, %v9744_v33  ;;  %v5194_v33 = vor.u32 %v5193_v34, %v5190_v20  ;;  %v5186_v25 = vsel %vm4908_vm6, %v5176_v50, %v5185_v4  ;;  %v5664_v34 = vrot.slane %v9511_v16, 3  ;;  %v5666_v50 = vrot.slane %v9526_v35, 3  ;;  %v10180_v20 = vld [vmem:[#allocation2 + $0x108] sm:$0xff] }
 0x1d0   : > { %v5199_v15 = vrot.slane %v5197_v43, 2  ;;  %v5672_v35 = vrot.slane %v9544_v5, 3  ;;  %v2492_v43 = vld [vmem:[#allocation2 + $0x110] sm:$0x1] }
 0x1d1   : > { %v5195_v39 = vsel %vm4908_vm6, %v5185_v4, %v5194_v33  ;;  %v5667_v16 = vsel %vm5662_vm7, %v5664_v34, %v5666_v50  ;;  %v2589_v4 = vrot.slane %v10180_v20, 1 }
 0x1d2   : > { %8134 = vmatmul.mubr.msk.bf16.gmra.mrb[52].mxu0 %vm542_vm1, %v5168_v41  ;;  %v5203_v18 = vor.u32 %v5202_v26, %v5199_v15  ;;  %v10690_v41 = vld [vmem:[#allocation8_spill] sm:$0xff]  ;;  %v10693_v15 = vshll.u32 %v10691_v57, 16 }
 0x1d3   : > { %8137 = vmatprep.mubr.msk.bf16.mxu0 %vm542_vm1, %v5177_v28  ;;  %v5668_v37 = vrot.slane %v10690_v41, 3  ;;  %v5674_v28 = vrot.slane %v9563_v19, 3  ;;  %v5680_v19 = vrot.slane %v9579_v38, 3  ;;  %v5694_v41 = vrot.slane %v9919_v17, 3 }
 0x1d4   : > { %v3207_v26 = vrot.slane %v10693_v15, 2  ;;  %v10706_v15 = vshrl.u32 %v9974_v12, 16 }
 0x1d5   : > { %v5675_v5 = vsel %vm5662_vm7, %v5672_v35, %v5674_v28 }
 0x1d6   : > { %7842 = vmatmul.mubr.msk.bf16.gmra.mrb[24].mxu1 %vm542_vm1, %v9760_v62  ;;  %v5204_v62 = vsel %vm4908_vm6, %v5194_v33, %v5203_v18  ;;  %v10692_v33 = vshrl.u32 %v10691_v57, 16 }
 0x1d7   : > { %7845 = vmatprep.mubr.msk.bf16.mxu1 %vm542_vm1, %v9764_v60  ;;  %v5665_v60 = vsel %vm5662_vm7, %v5663_v31, %v5664_v34  ;;  %v10694_v34 = vshrl.u32 %v9919_v17, 16 }
 0x1da   : > { %8138 = vmatmul.mubr.msk.bf16.gmra.mrb[56].mxu0 %vm542_vm1, %v5186_v25  ;;  %v3204_v25 = vrot.slane %v10692_v33, 1  ;;  %v5702_v33 = vrot.slane %v9970_v55, 3 }
 0x1db   : > { %8141 = vmatprep.mubr.msk.bf16.mxu0 %vm542_vm1, %v5195_v39  ;;  %v5692_v39 = vrot.slane %v10691_v57, 3  ;;  %v10705_v57 = vshll.u32 %v9970_v55, 16 }
 0x1dc   : > { %v3208_v18 = vor.u32 %v3207_v26, %v3204_v25  ;;  %v3258_v26 = vrot.slane %v10706_v15, 1 }
 0x1de   : > { %7846 = vmatmul.mubr.msk.bf16.gmra.mrb[28].mxu1 %vm542_vm1, %v9782_v11  ;;  %v5670_v11 = vrot.slane %v9542_v54, 3  ;;  %v5676_v54 = vrot.slane %v9565_v22, 3 }
 0x1df   : > { %7849 = vmatprep.mubr.msk.bf16.mxu1 %vm542_vm1, %v9786_v40  ;;  %v5669_v40 = vsel %vm5662_vm7, %v5666_v50, %v5668_v37 }
 0x1e2   : > { %8142 = vmatmul.mubr.msk.bf16.gmra.mrb[60].mxu0 %vm542_vm1, %v5204_v62  ;;  %v3213_v62 = vrot.slane %v10694_v34, 1 }
 0x1e3   : > { %8147 = vmatprep.mubr.msk.bf16.mxu0 %vm542_vm1, %v5665_v60  ;;  %v10695_v60 = vshll.u32 %v9919_v17, 16 }
 0x1e5   : > { %v3216_v50 = vrot.slane %v10695_v60, 2 }
 0x1e6   : > { %7850 = vmatmul.mubr.msk.bf16.gmra.mrb[32].mxu1 %vm542_vm1, %v9804_v47  ;;  %v5671_v47 = vsel %vm5662_vm7, %v5668_v37, %v5670_v11  ;;  %v10696_v37 = vld [vmem:[#allocation4_spill] sm:$0xff] }
 0x1e7   : > { %7853 = vmatprep.mubr.msk.bf16.mxu1 %vm542_vm1, %v9808_v6  ;;  %v5673_v6 = vsel %vm5662_vm7, %v5670_v11, %v5672_v35 }
 0x1ea   : > { %8148 = vmatmul.mubr.msk.bf16.vlgmr.msra.gmra.mrb[0].mxu0 %vm542_vm1, %v5667_v16  ;;  %v3209_v16 = vsel %vm3048_vm3, %v10696_v37, %v3208_v18 }
 0x1eb   : > { %8151 = vmatprep.mubr.msk.bf16.mxu0 %vm542_vm1, %v5669_v40  ;;  %v10697_v40 = vld [vmem:[#allocation10_spill] sm:$0xff] }
 0x1ec   : > { %v10698_v11 = vshrl.u32 %v10697_v40, 16 }
 0x1ee   : > { %7854 = vmatmul.mubr.msk.bf16.gmra.mrb[36].mxu1 %vm542_vm1, %v9824_v23  ;;  %v5677_v23 = vsel %vm5662_vm7, %v5674_v28, %v5676_v54  ;;  %v3222_v35 = vrot.slane %v10698_v11, 1  ;;  %v5696_v28 = vrot.slane %v10697_v40, 3  ;;  %v10711_v11 = vshll.u32 %v9999_v24, 16 }
 0x1ef   : > { %7857 = vmatprep.mubr.msk.bf16.mxu1 %vm542_vm1, %v9828_v29  ;;  %v5678_v29 = vrot.slane %v9577_v52, 3  ;;  %v5684_v52 = vrot.slane %v9593_v58, 3  ;;  %v10176_v58 = vld [vmem:[#allocation2 + $0x100] sm:$0xff] }
 0x1f0   : > { %v5697_v17 = vsel %vm5662_vm7, %v5694_v41, %v5696_v28 }
 0x1f1   : > { %v5679_v22 = vsel %vm5662_vm7, %v5676_v54, %v5678_v29  ;;  %v3217_v54 = vor.u32 %v3216_v50, %v3213_v62  ;;  %v10708_v62 = vshrl.u32 %v9995_v46, 16  ;;  %v10709_v50 = vshll.u32 %v9995_v46, 16 }
 0x1f2   : > { %8152 = vmatmul.mubr.msk.bf16.gmra.mrb[4].mxu0 %vm542_vm1, %v5671_v47  ;;  %v10699_v47 = vshll.u32 %v10697_v40, 16 }
 0x1f3   : > { %8155 = vmatprep.mubr.msk.bf16.mxu0 %vm542_vm1, %v5673_v6  ;;  %v3267_v60 = vrot.slane %v10708_v62, 1  ;;  %v5720_v62 = vrot.slane %v10180_v20, 3  ;;  %v5722_v20 = vrot.slane %v9731_v48, 3  ;;  %v5726_v48 = vrot.slane %v10097_v63, 3 }
 0x1f4   : > { %v3225_v6 = vrot.slane %v10699_v47, 2  ;;  %v5708_v47 = vrot.slane %v9999_v24, 3 }
 0x1f6   : > { %7858 = vmatmul.mubr.msk.bf16.gmra.mrb[40].mxu1 %vm542_vm1, %v9844_v61  ;;  %v5681_v61 = vsel %vm5662_vm7, %v5678_v29, %v5680_v19  ;;  %v3218_v29 = vsel %vm3048_vm3, %v3208_v18, %v3217_v54 }
 0x1f7   : > { %7861 = vmatprep.mubr.msk.bf16.mxu1 %vm542_vm1, %v9848_v51  ;;  %v5682_v51 = vrot.slane %v9591_v32, 3  ;;  %v5688_v32 = vrot.slane %v9607_v44, 3 }
 0x1f9   : > { %v5683_v38 = vsel %vm5662_vm7, %v5680_v19, %v5682_v51  ;;  %v10700_v19 = vshrl.u32 %v9948_v7, 16 }
 0x1fa   : > { %8156 = vmatmul.mubr.msk.bf16.gmra.mrb[8].mxu0 %vm542_vm1, %v5675_v5  ;;  %v5695_v5 = vsel %vm5662_vm7, %v5692_v39, %v5694_v41  ;;  %v5706_v41 = vrot.slane %v9995_v46, 3 }
 0x1fb   : > { %8159 = vmatprep.mubr.msk.bf16.mxu0 %vm542_vm1, %v5677_v23  ;;  %v3226_v23 = vor.u32 %v3225_v6, %v3222_v35  ;;  %v3279_v35 = vrot.slane %v10711_v11, 2 }
 0x1fc   : > { %v5709_v46 = vsel %vm5662_vm7, %v5706_v41, %v5708_v47 }
 0x1fe   : > { %7862 = vmatmul.mubr.msk.bf16.gmra.mrb[44].mxu1 %vm542_vm1, %v9864_v10  ;;  %v5685_v10 = vsel %vm5662_vm7, %v5682_v51, %v5684_v52 }
 0x1ff   : > { %7865 = vmatprep.mubr.msk.bf16.mxu1 %vm542_vm1, %v9868_v13  ;;  %v5686_v13 = vrot.slane %v9605_v49, 3 }
 0x201   : > { %v5689_v49 = vsel %vm5662_vm7, %v5686_v13, %v5688_v32 }
 0x202   : > { %8160 = vmatmul.mubr.msk.bf16.gmra.mrb[12].mxu0 %vm542_vm1, %v5679_v22  ;;  %v3231_v22 = vrot.slane %v10700_v19, 1  ;;  %v5710_v19 = vrot.slane %v10019_v9, 3 }
 0x203   : > { %8163 = vmatprep.mubr.msk.bf16.mxu0 %vm542_vm1, %v5681_v61  ;;  %v10701_v61 = vshll.u32 %v9948_v7, 16 }
 0x205   : > { %v3234_v51 = vrot.slane %v10701_v61, 2  ;;  %v10714_v61 = vshrl.u32 %v10023_v14, 16 }
 0x206   : > { %7866 = vmatmul.mubr.msk.bf16.gmra.mrb[48].mxu1 %vm542_vm1, %v9884_v0  ;;  %v2587_v0 = vrot.slane %v10176_v58, 1 }
 0x207   : > { %7869 = vmatprep.mubr.msk.bf16.mxu1 %vm542_vm1, %v9888_v42  ;;  %v5687_v42 = vsel %vm5662_vm7, %v5684_v52, %v5686_v13  ;;  %v5698_v52 = vrot.slane %v9948_v7, 3 }
 0x208   : > { %v2588_v44 = vsel %vm1942_vm5, %v9903_v21, %v2587_v0  ;;  %v2591_v21 = vrot.slane %v2492_v43, 1 }
 0x20a   : > { %8164 = vmatmul.mubr.msk.bf16.gmra.mrb[16].mxu0 %vm542_vm1, %v5683_v38  ;;  %v2592_v31 = vsel %vm1942_vm5, %v2589_v4, %v2591_v21  ;;  %v3227_v38 = vsel %vm3048_vm3, %v3217_v54, %v3226_v23 }
 0x20b   : > { %8167 = vmatprep.mubr.msk.bf16.mxu0 %vm542_vm1, %v5685_v10  ;;  %v10702_v10 = vshrl.u32 %v9952_v59, 16 }
 0x20d   : > { %v3240_v13 = vrot.slane %v10702_v10, 1  ;;  %v5712_v10 = vrot.slane %v10023_v14, 3 }
 0x20e   : > { %7870 = vmatmul.mubr.msk.bf16.gmra.mrb[52].mxu1 %vm542_vm1, %v9912_v45  ;;  %v5690_v45 = vrot.slane %v9774_v3, 3 }
 0x20f   : > { %7873 = vmatprep.mubr.msk.bf16.mxu1 %vm542_vm1, %v9917_v1  ;;  %v2590_v1 = vsel %vm1942_vm5, %v2587_v0, %v2589_v4  ;;  %v3235_v4 = vor.u32 %v3234_v51, %v3231_v22  ;;  %v3294_v51 = vrot.slane %v10714_v61, 1 }
 0x210   : > { %v5691_v36 = vsel %vm5662_vm7, %v5688_v32, %v5690_v45  ;;  %v5693_v3 = vsel %vm5662_vm7, %v5690_v45, %v5692_v39  ;;  %v10703_v32 = vshll.u32 %v9952_v59, 16  ;;  %v10707_v39 = vshll.u32 %v9974_v12, 16 }
 0x211   : > { %v3236_v45 = vsel %vm3048_vm3, %v3226_v23, %v3235_v4  ;;  %v10712_v23 = vshrl.u32 %v10019_v9, 16 }
 0x212   : > { %8168 = vmatmul.mubr.msk.bf16.gmra.mrb[20].mxu0 %vm542_vm1, %v5687_v42  ;;  %v3243_v0 = vrot.slane %v10703_v32, 2  ;;  %v5700_v42 = vrot.slane %v9952_v59, 3  ;;  %v3252_v59 = vrot.slane %v10705_v57, 2  ;;  %v3261_v21 = vrot.slane %v10707_v39, 2 }
 0x213   : > { %8171 = vmatprep.mubr.msk.bf16.mxu0 %vm542_vm1, %v5689_v49  ;;  %v5699_v49 = vsel %vm5662_vm7, %v5696_v28, %v5698_v52  ;;  %v5711_v32 = vsel %vm5662_vm7, %v5708_v47, %v5710_v19 }
 0x214   : > { %v5701_v7 = vsel %vm5662_vm7, %v5698_v52, %v5700_v42  ;;  %v10715_v52 = vshll.u32 %v10023_v14, 16 }
 0x216   : > { %7874 = vmatmul.mubr.msk.bf16.gmra.mrb[56].mxu1 %vm542_vm1, %v2588_v44  ;;  %v3244_v44 = vor.u32 %v3243_v0, %v3240_v13 }
 0x217   : > { %7877 = vmatprep.mubr.msk.bf16.mxu1 %vm542_vm1, %v2590_v1  ;;  %v10704_v1 = vshrl.u32 %v9970_v55, 16 }
 0x218   : > { %v3245_v25 = vsel %vm3048_vm3, %v3235_v4, %v3244_v44  ;;  %v10716_v4 = vshrl.u32 %v10043_v27, 16 }
 0x219   : > { %v3249_v43 = vrot.slane %v10704_v1, 1  ;;  %v3312_v1 = vrot.slane %v5152_v8, 1  ;;  %v10719_v8 = vshrl.u32 %v10688_v30, 16 }
 0x21a   : > { %8172 = vmatmul.mubr.msk.bf16.gmra.mrb[24].mxu0 %vm542_vm1, %v5691_v36  ;;  %v5704_v36 = vrot.slane %v9974_v12, 3  ;;  %v3270_v12 = vrot.slane %v10709_v50, 2 }
 0x21b   : > { %8175 = vmatprep.mubr.msk.bf16.mxu0 %vm542_vm1, %v5693_v3  ;;  %v3253_v18 = vor.u32 %v3252_v59, %v3249_v43  ;;  %v5703_v3 = vsel %vm5662_vm7, %v5700_v42, %v5702_v33  ;;  %v10718_v43 = vshll.u32 %v10047_v2, 16  ;;  %v5716_v59 = vrot.slane %v10047_v2, 3 }
 0x21c   : > { %v5705_v55 = vsel %vm5662_vm7, %v5702_v33, %v5704_v36  ;;  %v3271_v6 = vor.u32 %v3270_v12, %v3267_v60  ;;  %v5707_v28 = vsel %vm5662_vm7, %v5704_v36, %v5706_v41  ;;  %v3321_v39 = vrot.slane %v10719_v8, 1  ;;  %v8859_v60 = vld [vmem:[#allocation2 + $0x110] sm:$0x3] }
 0x21d   : > { %v3254_v34 = vsel %vm3048_vm3, %v3244_v44, %v3253_v18  ;;  %v10717_v44 = vshll.u32 %v10043_v27, 16  ;;  %v3315_v57 = vrot.slane %v10718_v43, 2  ;;  %v5718_v36 = vrot.slane %v10176_v58, 3 }
 0x21e   : > { %7878 = vmatmul.mubr.msk.bf16.gmra.mrb[60].mxu1 %vm542_vm1, %v2592_v31  ;;  %v3262_v31 = vor.u32 %v3261_v21, %v3258_v26  ;;  %v10720_v21 = vshll.u32 %v10688_v30, 16  ;;  %v3337_v50 = vshrl.u32 %v8859_v60, 16  ;;  %v3340_v12 = vshll.u32 %v8859_v60, 16 }
 0x21f   : > { %7915 = vmatprep.mubr.msk.bf16.mxu1 %vm542_vm1, %v3209_v16  ;;  %v10710_v16 = vshrl.u32 %v9999_v24, 16  ;;  %v3306_v14 = vrot.slane %v10717_v44, 2  ;;  %v3316_v15 = vor.u32 %v3315_v57, %v3312_v1  ;;  %v5719_v58 = vsel %vm5662_vm7, %v5716_v59, %v5718_v36 }
 0x220   : > { %v3263_v37 = vsel %vm3048_vm3, %v3253_v18, %v3262_v31  ;;  %v3324_v2 = vrot.slane %v10720_v21, 2 }
 0x221   : > { %v3276_v40 = vrot.slane %v10710_v16, 1  ;;  %v3339_v16 = vrot.slane %v3337_v50, 1 }
 0x222   : > { %8176 = vmatmul.mubr.msk.bf16.gmra.mrb[28].mxu0 %vm542_vm1, %v5695_v5  ;;  %v3272_v5 = vsel %vm3048_vm3, %v3262_v31, %v3271_v6  ;;  %v3325_v30 = vor.u32 %v3324_v2, %v3321_v39 }
 0x223   : > { %8179 = vmatprep.mubr.msk.bf16.mxu0 %vm542_vm1, %v5697_v17  ;;  %v3280_v54 = vor.u32 %v3279_v35, %v3276_v40  ;;  %v3285_v17 = vrot.slane %v10712_v23, 1  ;;  %v3342_v40 = vrot.slane %v3340_v12, 2  ;;  %v5724_v35 = vrot.slane %v9733_v53, 3 }
 0x225   : > { %v3281_v22 = vsel %vm3048_vm3, %v3271_v6, %v3280_v54  ;;  %v3343_v47 = vor.u32 %v3342_v40, %v3339_v16  ;;  %v5723_v6 = vsel %vm5662_vm7, %v5720_v62, %v5722_v20  ;;  %v5727_v53 = vsel %vm5662_vm7, %v5724_v35, %v5726_v48 }
 0x226   : > { %7916 = vmatmul.mubr.msk.bf16.vlgmr.msra.gmra.mrb[32].mxu1 %vm542_vm1, %v3218_v29  ;;  %v10713_v29 = vshll.u32 %v10019_v9, 16  ;;  %v5713_v9 = vsel %vm5662_vm7, %v5710_v19, %v5712_v10 }
 0x227   : > { %7919 = vmatprep.mubr.msk.bf16.mxu1 %vm542_vm1, %v3227_v38  ;;  %v3297_v38 = vrot.slane %v10715_v52, 2 }
 0x228   : > { %v3288_v24 = vrot.slane %v10713_v29, 2 }
 0x229   : > { %v3298_v0 = vor.u32 %v3297_v38, %v3294_v51 }
 0x22a   : > { %8180 = vmatmul.mubr.msk.bf16.gmra.mrb[32].mxu0 %vm542_vm1, %v5699_v49  ;;  %v3289_v13 = vor.u32 %v3288_v24, %v3285_v17  ;;  %v3303_v49 = vrot.slane %v10716_v4, 1 }
 0x22b   : > { %8183 = vmatprep.mubr.msk.bf16.mxu0 %vm542_vm1, %v5701_v7  ;;  %v5714_v7 = vrot.slane %v10043_v27, 3 }
 0x22c   : > { %v3290_v42 = vsel %vm3048_vm3, %v3280_v54, %v3289_v13  ;;  %v3307_v33 = vor.u32 %v3306_v14, %v3303_v49 }
 0x22d   : > { %v5717_v27 = vsel %vm5662_vm7, %v5714_v7, %v5716_v59 }
 0x22e   : > { %7920 = vmatmul.mubr.msk.bf16.gmra.mrb[36].mxu1 %vm542_vm1, %v3236_v45  ;;  %v3299_v45 = vsel %vm3048_vm3, %v3289_v13, %v3298_v0  ;;  %v3308_v26 = vsel %vm3048_vm3, %v3298_v0, %v3307_v33  ;;  %v3317_v18 = vsel %vm3048_vm3, %v3307_v33, %v3316_v15 }
 0x22f   : > { %7923 = vmatprep.mubr.msk.bf16.mxu1 %vm542_vm1, %v3245_v25  ;;  %v5715_v25 = vsel %vm5662_vm7, %v5712_v10, %v5714_v7 }
 0x232   : > { %8184 = vmatmul.mubr.msk.bf16.gmra.mrb[36].mxu0 %vm542_vm1, %v5703_v3  ;;  %v10721_v3 = vshrl.u32 %v10689_v56, 16 }
 0x233   : > { %8187 = vmatprep.mubr.msk.bf16.mxu0 %vm542_vm1, %v5705_v55  ;;  %v10722_v55 = vshll.u32 %v10689_v56, 16  ;;  %v3326_v56 = vsel %vm3048_vm3, %v3316_v15, %v3325_v30 }
 0x234   : > { %v3330_v31 = vrot.slane %v10721_v3, 1 }
 0x236   : > { %7924 = vmatmul.mubr.msk.bf16.gmra.mrb[40].mxu1 %vm542_vm1, %v3254_v34  ;;  %v3333_v34 = vrot.slane %v10722_v55, 2 }
 0x237   : > { %7927 = vmatprep.mubr.msk.bf16.mxu1 %vm542_vm1, %v3263_v37  ;;  %v5721_v37 = vsel %vm5662_vm7, %v5718_v36, %v5720_v62 }
 0x238   : > { %v3334_v41 = vor.u32 %v3333_v34, %v3330_v31 }
 0x23a   : > { %8188 = vmatmul.mubr.msk.bf16.gmra.mrb[40].mxu0 %vm542_vm1, %v5707_v28  ;;  %v3335_v11 = vsel %vm3048_vm3, %v3325_v30, %v3334_v41  ;;  %v5725_v28 = vsel %vm5662_vm7, %v5722_v20, %v5724_v35  ;;  %v3344_v54 = vsel %vm3048_vm3, %v3334_v41, %v3343_v47 }
 0x23b   : > { %8191 = vmatprep.mubr.msk.bf16.mxu0 %vm542_vm1, %v5709_v46 }
 0x23e   : > { %7928 = vmatmul.mubr.msk.bf16.gmra.mrb[44].mxu1 %vm542_vm1, %v3272_v5 }
 0x23f   : > { %7931 = vmatprep.mubr.msk.bf16.mxu1 %vm542_vm1, %v3281_v22 }
 0x242   : > { %8192 = vmatmul.mubr.msk.bf16.gmra.mrb[44].mxu0 %vm542_vm1, %v5711_v32 }
 0x243   : > { %8195 = vmatprep.mubr.msk.bf16.mxu0 %vm542_vm1, %v5713_v9 }
 0x246   : > { %7932 = vmatmul.mubr.msk.bf16.gmra.mrb[48].mxu1 %vm542_vm1, %v3290_v42 }
 0x247   : > { %7935 = vmatprep.mubr.msk.bf16.mxu1 %vm542_vm1, %v3299_v45 }
 0x24a   : > { %8196 = vmatmul.mubr.msk.bf16.gmra.mrb[48].mxu0 %vm542_vm1, %v5715_v25 }
 0x24b   : > { %8199 = vmatprep.mubr.msk.bf16.mxu0 %vm542_vm1, %v5717_v27 }
 0x24e   : > { %7936 = vmatmul.mubr.msk.bf16.gmra.mrb[52].mxu1 %vm542_vm1, %v3308_v26  ;;  %v10397_v26 = vld [vmem:[%s10634_s3] ss:$0 sm:$0xff] }
 0x24f   : > { %7939 = vmatprep.mubr.msk.bf16.mxu1 %vm542_vm1, %v3317_v18 }
 0x252   : > { %8200 = vmatmul.mubr.msk.bf16.gmra.mrb[52].mxu0 %vm542_vm1, %v5719_v58 }
 0x253   : > { %8203 = vmatprep.mubr.msk.bf16.mxu0 %vm542_vm1, %v5721_v37 }
 0x256   : > { %7940 = vmatmul.mubr.msk.bf16.gmra.mrb[56].mxu1 %vm542_vm1, %v3326_v56 }
 0x257   : > { %7943 = vmatprep.mubr.msk.bf16.mxu1 %vm542_vm1, %v3335_v11 }
 0x25a   : > { %8204 = vmatmul.mubr.msk.bf16.gmra.mrb[56].mxu0 %vm542_vm1, %v5723_v6 }
 0x25b   : > { %8207 = vmatprep.mubr.msk.bf16.mxu0 %vm542_vm1, %v5725_v28 }
 0x25e   : > { %7944 = vmatmul.mubr.msk.bf16.gmra.mrb[60].mxu1 %vm542_vm1, %v3344_v54 }
 0x262   : > { %8208 = vmatmul.mubr.msk.bf16.gmra.mrb[60].mxu0 %vm542_vm1, %v5727_v53 }
 0x279   : > { %v7819_v46 = vpop.f32.mrb[0].mxu1 }
 0x27a   : > { %v2726_v5 = vpop.f32.mrb[1].mxu1 }
 0x27b   : > { %v7820_v23 = vpop.f32.mrb[2].mxu1 }
 0x27c   : > { %v2729_v17 = vpop.f32.mrb[3].mxu1 }
 0x281   : > { %v7823_v29 = vpop.f32.mrb[4].mxu1 }
 0x282   : > { %v2742_v24 = vpop.f32.mrb[5].mxu1 }
 0x283   : > { %v7824_v19 = vpop.f32.mrb[6].mxu1 }
 0x284   : > { %v10343_v22 = vpop.f32.mrb[7].mxu1 }
 0x289   : > { %v10345_v61 = vpop.f32.mrb[8].mxu1 }
 0x28a   : > { %v10347_v51 = vpop.f32.mrb[9].mxu1 }
 0x28b   : > { %v10349_v63 = vpop.f32.mrb[10].mxu1 }
 0x28c   : > { %v10351_v52 = vpop.f32.mrb[11].mxu1 }
 0x291   : > { %v10353_v38 = vpop.f32.mrb[12].mxu1 }
 0x292   : > { %v10355_v10 = vpop.f32.mrb[13].mxu1 }
 0x293   : > { %v10357_v13 = vpop.f32.mrb[14].mxu1 }
 0x294   : > { %v10359_v32 = vpop.f32.mrb[15].mxu1 }
 0x299   : > { %v10361_v0 = vpop.f32.mrb[16].mxu1 }
 0x29a   : > { %v10363_v9 = vpop.f32.mrb[17].mxu1 }
 0x29b   : > { %v10365_v42 = vpop.f32.mrb[18].mxu1 }
 0x29c   : > { %v10367_v4 = vpop.f32.mrb[19].mxu1 }
 0x2a1   : > { %v10369_v49 = vpop.f32.mrb[20].mxu1 }
 0x2a2   : > { %v10371_v44 = vpop.f32.mrb[21].mxu1 }
 0x2a3   : > { %v10373_v14 = vpop.f32.mrb[22].mxu1 }
 0x2a4   : > { %v10375_v7 = vpop.f32.mrb[23].mxu1 }
 0x2a9   : > { %v10377_v45 = vpop.f32.mrb[24].mxu1 }
 0x2aa   : > { %v10379_v1 = vpop.f32.mrb[25].mxu1 }
 0x2ab   : > { %v10381_v43 = vpop.f32.mrb[26].mxu1 }
 0x2ac   : > { %v10383_v57 = vpop.f32.mrb[27].mxu1 }
 0x2b1   : > { %v10385_v59 = vpop.f32.mrb[28].mxu1 }
 0x2b2   : > { %v10387_v33 = vpop.f32.mrb[29].mxu1 }
 0x2b3   : > { %v10389_v25 = vpop.f32.mrb[30].mxu1 }
 0x2b4   : > { %v10391_v15 = vpop.f32.mrb[31].mxu1 }
 0x2bd   : > { %v8149_v27 = vpop.f32.mrb[0].mxu0 }
 0x2be   : > { %v8213_v8 = vadd.f32 %v8149_v27, %v7819_v46  ;;  %v5861_v39 = vpop.f32.mrb[1].mxu0 }
 0x2bf   : > { %v8214_v21 = vadd.f32 %v5861_v39, %v2726_v5  ;;  %v8150_v2 = vpop.f32.mrb[2].mxu0 }
 0x2c0   : > { %v6189_v36 = vadd.f32 %v8213_v8, %v10397_v26  ;;  %v8215_v18 = vadd.f32 %v8150_v2, %v7820_v23  ;;  %v5864_v3 = vpop.f32.mrb[3].mxu0 }
 0x2c1   : > { %v6187_v31 = vadd.f32 %v8214_v21, %v10397_v26  ;;  %v8216_v55 = vadd.f32 %v5864_v3, %v2729_v17 }
 0x2c2   : > { %v6253_v34 = vmul.f32 0.1, %v6189_v36  ;;  %v6190_v62 = vadd.f32 %v8215_v18, %v10397_v26 }
 0x2c3   : > { %v6251_v30 = vmul.f32 0.1, %v6187_v31  ;;  %v6188_v60 = vadd.f32 %v8216_v55, %v10397_v26 }
 0x2c4   : > { %v6317_v50 = vmax.f32 %v6189_v36, %v6253_v34  ;;  %v6254_v12 = vmul.f32 0.1, %v6190_v62 }
 0x2c5   : > { %v6315_v58 = vmax.f32 %v6187_v31, %v6251_v30  ;;  %v6252_v41 = vmul.f32 0.1, %v6188_v60  ;;  %v8153_v37 = vpop.f32.mrb[4].mxu0 }
 0x2c6   : > { %v7258_v56 = vpack.c.bf16 %v6317_v50, %v6317_v50  ;;  %v6318_v16 = vmax.f32 %v6190_v62, %v6254_v12  ;;  %v8217_v40 = vadd.f32 %v8153_v37, %v7823_v29  ;;  %v5877_v20 = vpop.f32.mrb[5].mxu0 }
 0x2c7   : > { %v7256_v11 = vpack.c.bf16 %v6315_v58, %v6315_v58  ;;  %v6316_v35 = vmax.f32 %v6188_v60, %v6252_v41  ;;  %v8218_v47 = vadd.f32 %v5877_v20, %v2742_v24  ;;  %v8154_v6 = vpop.f32.mrb[6].mxu0 }
 0x2c8   : > { %6638 = vst.msk [vmem:[%s10407_s8 + $0x8] sm:$0xf] %vm6635_vm8, %v7258_v56  ;;  %v7259_v28 = vpack.c.bf16 %v6318_v16, %v6318_v16  ;;  %v6193_v54 = vadd.f32 %v8217_v40, %v10397_v26  ;;  %v8219_v48 = vadd.f32 %v8154_v6, %v7824_v19  ;;  %v5880_v53 = vpop.f32.mrb[7].mxu0 }
 0x2c9   : > { %6636 = vst.msk [vmem:[%s10407_s8] sm:$0xf] %vm6635_vm8, %v7256_v11  ;;  %v7257_v46 = vpack.c.bf16 %v6316_v35, %v6316_v35  ;;  %v6191_v5 = vadd.f32 %v8218_v47, %v10397_v26  ;;  %v8220_v23 = vadd.f32 %v5880_v53, %v10343_v22 }
 0x2ca   : > { %6639 = vst.msk [vmem:[%s10407_s8 + $0xc] sm:$0xf] %vm6635_vm8, %v7259_v28  ;;  %v6257_v17 = vmul.f32 0.1, %v6193_v54  ;;  %v6194_v29 = vadd.f32 %v8219_v48, %v10397_v26 }
 0x2cb   : > { %6637 = vst.msk [vmem:[%s10407_s8 + $0x4] sm:$0xf] %vm6635_vm8, %v7257_v46  ;;  %v6255_v24 = vmul.f32 0.1, %v6191_v5  ;;  %v6192_v27 = vadd.f32 %v8220_v23, %v10397_v26 }
 0x2cc   : > { %v6321_v19 = vmax.f32 %v6193_v54, %v6257_v17  ;;  %v6258_v8 = vmul.f32 0.1, %v6194_v29 }
 0x2cd   : > { %v6319_v39 = vmax.f32 %v6191_v5, %v6255_v24  ;;  %v6256_v21 = vmul.f32 0.1, %v6192_v27  ;;  %v8157_v2 = vpop.f32.mrb[8].mxu0 }
 0x2ce   : > { %v7262_v36 = vpack.c.bf16 %v6321_v19, %v6321_v19  ;;  %v6322_v18 = vmax.f32 %v6194_v29, %v6258_v8  ;;  %v8221_v22 = vadd.f32 %v8157_v2, %v10345_v61  ;;  %v5893_v3 = vpop.f32.mrb[9].mxu0 }
 0x2cf   : > { %v7260_v31 = vpack.c.bf16 %v6319_v39, %v6319_v39  ;;  %v6320_v55 = vmax.f32 %v6192_v27, %v6256_v21  ;;  %v8222_v34 = vadd.f32 %v5893_v3, %v10347_v51  ;;  %v8158_v62 = vpop.f32.mrb[10].mxu0 }
 0x2d0   : > { %6642 = vst.msk [vmem:[%s10407_s8 + $0x18] sm:$0xf] %vm6635_vm8, %v7262_v36  ;;  %v7263_v30 = vpack.c.bf16 %v6322_v18, %v6322_v18  ;;  %v6197_v60 = vadd.f32 %v8221_v22, %v10397_v26  ;;  %v8223_v50 = vadd.f32 %v8158_v62, %v10349_v63  ;;  %v5896_v12 = vpop.f32.mrb[11].mxu0 }
 0x2d1   : > { %6640 = vst.msk [vmem:[%s10407_s8 + $0x10] sm:$0xf] %vm6635_vm8, %v7260_v31  ;;  %v7261_v58 = vpack.c.bf16 %v6320_v55, %v6320_v55  ;;  %v6195_v61 = vadd.f32 %v8222_v34, %v10397_v26  ;;  %v8224_v41 = vadd.f32 %v5896_v12, %v10351_v52 }
 0x2d2   : > { %6643 = vst.msk [vmem:[%s10407_s8 + $0x1c] sm:$0xf] %vm6635_vm8, %v7263_v30  ;;  %v6261_v37 = vmul.f32 0.1, %v6197_v60  ;;  %v6198_v51 = vadd.f32 %v8223_v50, %v10397_v26 }
 0x2d3   : > { %6641 = vst.msk [vmem:[%s10407_s8 + $0x14] sm:$0xf] %vm6635_vm8, %v7261_v58  ;;  %v6259_v56 = vmul.f32 0.1, %v6195_v61  ;;  %v6196_v16 = vadd.f32 %v8224_v41, %v10397_v26 }
 0x2d4   : > { %v6325_v63 = vmax.f32 %v6197_v60, %v6261_v37  ;;  %v6262_v40 = vmul.f32 0.1, %v6198_v51 }
 0x2d5   : > { %v6323_v20 = vmax.f32 %v6195_v61, %v6259_v56  ;;  %v6260_v11 = vmul.f32 0.1, %v6196_v16  ;;  %v8161_v35 = vpop.f32.mrb[12].mxu0 }
 0x2d6   : > { %v7266_v47 = vpack.c.bf16 %v6325_v63, %v6325_v63  ;;  %v6326_v6 = vmax.f32 %v6198_v51, %v6262_v40  ;;  %v8225_v52 = vadd.f32 %v8161_v35, %v10353_v38  ;;  %v5909_v28 = vpop.f32.mrb[13].mxu0 }
 0x2d7   : > { %v7264_v54 = vpack.c.bf16 %v6323_v20, %v6323_v20  ;;  %v6324_v48 = vmax.f32 %v6196_v16, %v6260_v11  ;;  %v8226_v53 = vadd.f32 %v5909_v28, %v10355_v10  ;;  %v8162_v46 = vpop.f32.mrb[14].mxu0 }
 0x2d8   : > { %6646 = vst.msk [vmem:[%s10407_s8 + $0x28] sm:$0xf] %vm6635_vm8, %v7266_v47  ;;  %v7267_v5 = vpack.c.bf16 %v6326_v6, %v6326_v6  ;;  %v6201_v23 = vadd.f32 %v8225_v52, %v10397_v26  ;;  %v8227_v17 = vadd.f32 %v8162_v46, %v10357_v13  ;;  %v5912_v29 = vpop.f32.mrb[15].mxu0 }
 0x2d9   : > { %6644 = vst.msk [vmem:[%s10407_s8 + $0x20] sm:$0xf] %vm6635_vm8, %v7264_v54  ;;  %v7265_v24 = vpack.c.bf16 %v6324_v48, %v6324_v48  ;;  %v6199_v38 = vadd.f32 %v8226_v53, %v10397_v26  ;;  %v8228_v27 = vadd.f32 %v5912_v29, %v10359_v32 }
 0x2da   : > { %6647 = vst.msk [vmem:[%s10407_s8 + $0x2c] sm:$0xf] %vm6635_vm8, %v7267_v5  ;;  %v6265_v19 = vmul.f32 0.1, %v6201_v23  ;;  %v6202_v10 = vadd.f32 %v8227_v17, %v10397_v26 }
 0x2db   : > { %6645 = vst.msk [vmem:[%s10407_s8 + $0x24] sm:$0xf] %vm6635_vm8, %v7265_v24  ;;  %v6263_v8 = vmul.f32 0.1, %v6199_v38  ;;  %v6200_v39 = vadd.f32 %v8228_v27, %v10397_v26 }
 0x2dc   : > { %v6329_v13 = vmax.f32 %v6201_v23, %v6265_v19  ;;  %v6266_v21 = vmul.f32 0.1, %v6202_v10 }
 0x2dd   : > { %v6327_v2 = vmax.f32 %v6199_v38, %v6263_v8  ;;  %v6264_v36 = vmul.f32 0.1, %v6200_v39  ;;  %v8165_v18 = vpop.f32.mrb[16].mxu0 }
 0x2de   : > { %v7270_v22 = vpack.c.bf16 %v6329_v13, %v6329_v13  ;;  %v6330_v3 = vmax.f32 %v6202_v10, %v6266_v21  ;;  %v8229_v32 = vadd.f32 %v8165_v18, %v10361_v0  ;;  %v5925_v31 = vpop.f32.mrb[17].mxu0 }
 0x2df   : > { %v7268_v55 = vpack.c.bf16 %v6327_v2, %v6327_v2  ;;  %v6328_v34 = vmax.f32 %v6200_v39, %v6264_v36  ;;  %v8230_v62 = vadd.f32 %v5925_v31, %v10363_v9  ;;  %v8166_v30 = vpop.f32.mrb[18].mxu0 }
 0x2e0   : > { %6650 = vst.msk [vmem:[%s10407_s8 + $0x38] sm:$0xf] %vm6635_vm8, %v7270_v22  ;;  %v7271_v60 = vpack.c.bf16 %v6330_v3, %v6330_v3  ;;  %v6205_v50 = vadd.f32 %v8229_v32, %v10397_v26  ;;  %v8231_v12 = vadd.f32 %v8166_v30, %v10365_v42  ;;  %v5928_v58 = vpop.f32.mrb[19].mxu0 }
 0x2e1   : > { %6648 = vst.msk [vmem:[%s10407_s8 + $0x30] sm:$0xf] %vm6635_vm8, %v7268_v55  ;;  %v7269_v61 = vpack.c.bf16 %v6328_v34, %v6328_v34  ;;  %v6203_v0 = vadd.f32 %v8230_v62, %v10397_v26  ;;  %v8232_v41 = vadd.f32 %v5928_v58, %v10367_v4 }
 0x2e2   : > { %6651 = vst.msk [vmem:[%s10407_s8 + $0x3c] sm:$0xf] %vm6635_vm8, %v7271_v60  ;;  %v6269_v37 = vmul.f32 0.1, %v6205_v50  ;;  %v6206_v9 = vadd.f32 %v8231_v12, %v10397_v26 }
 0x2e3   : > { %6649 = vst.msk [vmem:[%s10407_s8 + $0x34] sm:$0xf] %vm6635_vm8, %v7269_v61  ;;  %v6267_v51 = vmul.f32 0.1, %v6203_v0  ;;  %v6204_v56 = vadd.f32 %v8232_v41, %v10397_v26 }
 0x2e4   : > { %v6333_v42 = vmax.f32 %v6205_v50, %v6269_v37  ;;  %v6270_v16 = vmul.f32 0.1, %v6206_v9 }
 0x2e5   : > { %v6331_v63 = vmax.f32 %v6203_v0, %v6267_v51  ;;  %v6268_v40 = vmul.f32 0.1, %v6204_v56  ;;  %v8169_v20 = vpop.f32.mrb[20].mxu0 }
 0x2e6   : > { %v7274_v11 = vpack.c.bf16 %v6333_v42, %v6333_v42  ;;  %v6334_v35 = vmax.f32 %v6206_v9, %v6270_v16  ;;  %v8233_v4 = vadd.f32 %v8169_v20, %v10369_v49  ;;  %v5941_v47 = vpop.f32.mrb[21].mxu0 }
 0x2e7   : > { %v7272_v6 = vpack.c.bf16 %v6331_v63, %v6331_v63  ;;  %v6332_v52 = vmax.f32 %v6204_v56, %v6268_v40  ;;  %v8234_v28 = vadd.f32 %v5941_v47, %v10371_v44  ;;  %v8170_v54 = vpop.f32.mrb[22].mxu0 }
 0x2e8   : > { %6654 = vst.msk [vmem:[%s10407_s8 + $0x48] sm:$0xf] %vm6635_vm8, %v7274_v11  ;;  %v7275_v48 = vpack.c.bf16 %v6334_v35, %v6334_v35  ;;  %v6209_v53 = vadd.f32 %v8233_v4, %v10397_v26  ;;  %v8235_v46 = vadd.f32 %v8170_v54, %v10373_v14  ;;  %v5944_v5 = vpop.f32.mrb[23].mxu0 }
 0x2e9   : > { %6652 = vst.msk [vmem:[%s10407_s8 + $0x40] sm:$0xf] %vm6635_vm8, %v7272_v6  ;;  %v7273_v23 = vpack.c.bf16 %v6332_v52, %v6332_v52  ;;  %v6207_v49 = vadd.f32 %v8234_v28, %v10397_v26  ;;  %v8236_v17 = vadd.f32 %v5944_v5, %v10375_v7 }
 0x2ea   : > { %6655 = vst.msk [vmem:[%s10407_s8 + $0x4c] sm:$0xf] %vm6635_vm8, %v7275_v48  ;;  %v6273_v29 = vmul.f32 0.1, %v6209_v53  ;;  %v6210_v44 = vadd.f32 %v8235_v46, %v10397_v26 }
 0x2eb   : > { %6653 = vst.msk [vmem:[%s10407_s8 + $0x44] sm:$0xf] %vm6635_vm8, %v7273_v23  ;;  %v6271_v24 = vmul.f32 0.1, %v6207_v49  ;;  %v6208_v38 = vadd.f32 %v8236_v17, %v10397_v26 }
 0x2ec   : > { %v6337_v14 = vmax.f32 %v6209_v53, %v6273_v29  ;;  %v6274_v27 = vmul.f32 0.1, %v6210_v44 }
 0x2ed   : > { %v6335_v19 = vmax.f32 %v6207_v49, %v6271_v24  ;;  %v6272_v10 = vmul.f32 0.1, %v6208_v38  ;;  %v8173_v8 = vpop.f32.mrb[24].mxu0 }
 0x2ee   : > { %v7278_v39 = vpack.c.bf16 %v6337_v14, %v6337_v14  ;;  %v6338_v13 = vmax.f32 %v6210_v44, %v6274_v27  ;;  %v8237_v7 = vadd.f32 %v8173_v8, %v10377_v45  ;;  %v5957_v21 = vpop.f32.mrb[25].mxu0 }
 0x2ef   : > { %v7276_v2 = vpack.c.bf16 %v6335_v19, %v6335_v19  ;;  %v6336_v36 = vmax.f32 %v6208_v38, %v6272_v10  ;;  %v8238_v18 = vadd.f32 %v5957_v21, %v10379_v1  ;;  %v8174_v22 = vpop.f32.mrb[26].mxu0 }
 0x2f0   : > { %6658 = vst.msk [vmem:[%s10407_s8 + $0x58] sm:$0xf] %vm6635_vm8, %v7278_v39  ;;  %v7279_v3 = vpack.c.bf16 %v6338_v13, %v6338_v13  ;;  %v6213_v32 = vadd.f32 %v8237_v7, %v10397_v26  ;;  %v8239_v31 = vadd.f32 %v8174_v22, %v10381_v43  ;;  %v5960_v55 = vpop.f32.mrb[27].mxu0 }
 0x2f1   : > { %6656 = vst.msk [vmem:[%s10407_s8 + $0x50] sm:$0xf] %vm6635_vm8, %v7276_v2  ;;  %v7277_v34 = vpack.c.bf16 %v6336_v36, %v6336_v36  ;;  %v6211_v45 = vadd.f32 %v8238_v18, %v10397_v26  ;;  %v8240_v62 = vadd.f32 %v5960_v55, %v10383_v57 }
 0x2f2   : > { %6659 = vst.msk [vmem:[%s10407_s8 + $0x5c] sm:$0xf] %vm6635_vm8, %v7279_v3  ;;  %v6277_v30 = vmul.f32 0.1, %v6213_v32  ;;  %v6214_v1 = vadd.f32 %v8239_v31, %v10397_v26 }
 0x2f3   : > { %6657 = vst.msk [vmem:[%s10407_s8 + $0x54] sm:$0xf] %vm6635_vm8, %v7277_v34  ;;  %v6275_v60 = vmul.f32 0.1, %v6211_v45  ;;  %v6212_v50 = vadd.f32 %v8240_v62, %v10397_v26 }
 0x2f4   : > { %v6341_v43 = vmax.f32 %v6213_v32, %v6277_v30  ;;  %v6278_v12 = vmul.f32 0.1, %v6214_v1 }
 0x2f5   : > { %v6339_v58 = vmax.f32 %v6211_v45, %v6275_v60  ;;  %v6276_v61 = vmul.f32 0.1, %v6212_v50  ;;  %v8177_v0 = vpop.f32.mrb[28].mxu0 }
 0x2f6   : > { %v7282_v41 = vpack.c.bf16 %v6341_v43, %v6341_v43  ;;  %v6342_v37 = vmax.f32 %v6214_v1, %v6278_v12  ;;  %v8241_v57 = vadd.f32 %v8177_v0, %v10385_v59  ;;  %v5973_v9 = vpop.f32.mrb[29].mxu0 }
 0x2f7   : > { %v7280_v51 = vpack.c.bf16 %v6339_v58, %v6339_v58  ;;  %v6340_v56 = vmax.f32 %v6212_v50, %v6276_v61  ;;  %v8242_v42 = vadd.f32 %v5973_v9, %v10387_v33  ;;  %v8178_v16 = vpop.f32.mrb[30].mxu0 }
 0x2f8   : > { %6662 = vst.msk [vmem:[%s10407_s8 + $0x68] sm:$0xf] %vm6635_vm8, %v7282_v41  ;;  %v7283_v63 = vpack.c.bf16 %v6342_v37, %v6342_v37  ;;  %v6217_v40 = vadd.f32 %v8241_v57, %v10397_v26  ;;  %v8243_v20 = vadd.f32 %v8178_v16, %v10389_v25  ;;  %v5976_v11 = vpop.f32.mrb[31].mxu0 }
 0x2f9   : > { %v7917_v35 = vpop.f32.mrb[32].mxu1  ;;  %6660 = vst.msk [vmem:[%s10407_s8 + $0x60] sm:$0xf] %vm6635_vm8, %v7280_v51  ;;  %v7281_v59 = vpack.c.bf16 %v6340_v56, %v6340_v56  ;;  %v6215_v4 = vadd.f32 %v8242_v42, %v10397_v26  ;;  %v8244_v47 = vadd.f32 %v5976_v11, %v10391_v15 }
 0x2fa   : > { %v3606_v6 = vpop.f32.mrb[33].mxu1  ;;  %6663 = vst.msk [vmem:[%s10407_s8 + $0x6c] sm:$0xf] %vm6635_vm8, %v7283_v63  ;;  %v6281_v33 = vmul.f32 0.1, %v6217_v40  ;;  %v6218_v52 = vadd.f32 %v8243_v20, %v10397_v26 }
 0x2fb   : > { %v7918_v28 = vpop.f32.mrb[34].mxu1  ;;  %6661 = vst.msk [vmem:[%s10407_s8 + $0x64] sm:$0xf] %vm6635_vm8, %v7281_v59  ;;  %v6279_v54 = vmul.f32 0.1, %v6215_v4  ;;  %v6216_v25 = vadd.f32 %v8244_v47, %v10397_v26 }
 0x2fc   : > { %v3609_v48 = vpop.f32.mrb[35].mxu1  ;;  %v6345_v53 = vmax.f32 %v6217_v40, %v6281_v33  ;;  %v6282_v46 = vmul.f32 0.1, %v6218_v52 }
 0x2fd   : > { %v6343_v5 = vmax.f32 %v6215_v4, %v6279_v54  ;;  %v6280_v23 = vmul.f32 0.1, %v6216_v25  ;;  %v8181_v15 = vpop.f32.mrb[32].mxu0 }
 0x2fe   : > { %v7286_v49 = vpack.c.bf16 %v6345_v53, %v6345_v53  ;;  %v6346_v17 = vmax.f32 %v6218_v52, %v6282_v46  ;;  %v8245_v29 = vadd.f32 %v8181_v15, %v7917_v35  ;;  %v5989_v44 = vpop.f32.mrb[33].mxu0 }
 0x2ff   : > { %v7284_v24 = vpack.c.bf16 %v6343_v5, %v6343_v5  ;;  %v6344_v38 = vmax.f32 %v6216_v25, %v6280_v23  ;;  %v8246_v14 = vadd.f32 %v5989_v44, %v3606_v6  ;;  %v8182_v27 = vpop.f32.mrb[34].mxu0 }
 0x300   : > { %6666 = vst.msk [vmem:[%s10407_s8 + $0x78] sm:$0xf] %vm6635_vm8, %v7286_v49  ;;  %v7287_v19 = vpack.c.bf16 %v6346_v17, %v6346_v17  ;;  %v6221_v10 = vadd.f32 %v8245_v29, %v10397_v26  ;;  %v8247_v8 = vadd.f32 %v8182_v27, %v7918_v28  ;;  %v5992_v39 = vpop.f32.mrb[35].mxu0 }
 0x301   : > { %v7921_v13 = vpop.f32.mrb[36].mxu1  ;;  %6664 = vst.msk [vmem:[%s10407_s8 + $0x70] sm:$0xf] %vm6635_vm8, %v7284_v24  ;;  %v7285_v7 = vpack.c.bf16 %v6344_v38, %v6344_v38  ;;  %v6219_v21 = vadd.f32 %v8246_v14, %v10397_v26  ;;  %v8248_v2 = vadd.f32 %v5992_v39, %v3609_v48 }
 0x302   : > { %v3622_v36 = vpop.f32.mrb[37].mxu1  ;;  %6667 = vst.msk [vmem:[%s10407_s8 + $0x7c] sm:$0xf] %vm6635_vm8, %v7287_v19  ;;  %v6285_v18 = vmul.f32 0.1, %v6221_v10  ;;  %v6222_v22 = vadd.f32 %v8247_v8, %v10397_v26 }
 0x303   : > { %v7922_v3 = vpop.f32.mrb[38].mxu1  ;;  %6665 = vst.msk [vmem:[%s10407_s8 + $0x74] sm:$0xf] %vm6635_vm8, %v7285_v7  ;;  %v6283_v32 = vmul.f32 0.1, %v6219_v21  ;;  %v6220_v31 = vadd.f32 %v8248_v2, %v10397_v26 }
 0x304   : > { %v3625_v55 = vpop.f32.mrb[39].mxu1  ;;  %v6349_v34 = vmax.f32 %v6221_v10, %v6285_v18  ;;  %v6286_v45 = vmul.f32 0.1, %v6222_v22 }
 0x305   : > { %v6347_v62 = vmax.f32 %v6219_v21, %v6283_v32  ;;  %v6284_v30 = vmul.f32 0.1, %v6220_v31  ;;  %v8185_v1 = vpop.f32.mrb[36].mxu0 }
 0x306   : > { %v7290_v60 = vpack.c.bf16 %v6349_v34, %v6349_v34  ;;  %v6350_v50 = vmax.f32 %v6222_v22, %v6286_v45  ;;  %v8249_v43 = vadd.f32 %v8185_v1, %v7921_v13  ;;  %v6005_v12 = vpop.f32.mrb[37].mxu0 }
 0x307   : > { %v7288_v58 = vpack.c.bf16 %v6347_v62, %v6347_v62  ;;  %v6348_v61 = vmax.f32 %v6220_v31, %v6284_v30  ;;  %v8250_v0 = vadd.f32 %v6005_v12, %v3622_v36  ;;  %v8186_v41 = vpop.f32.mrb[38].mxu0 }
 0x308   : > { %6670 = vst.msk [vmem:[%s10407_s8 + $0x88] sm:$0xf] %vm6635_vm8, %v7290_v60  ;;  %v7291_v37 = vpack.c.bf16 %v6350_v50, %v6350_v50  ;;  %v6225_v57 = vadd.f32 %v8249_v43, %v10397_v26  ;;  %v8251_v9 = vadd.f32 %v8186_v41, %v7922_v3  ;;  %v6008_v51 = vpop.f32.mrb[39].mxu0 }
 0x309   : > { %v7925_v56 = vpop.f32.mrb[40].mxu1  ;;  %6668 = vst.msk [vmem:[%s10407_s8 + $0x80] sm:$0xf] %vm6635_vm8, %v7288_v58  ;;  %v7289_v42 = vpack.c.bf16 %v6348_v61, %v6348_v61  ;;  %v6223_v16 = vadd.f32 %v8250_v0, %v10397_v26  ;;  %v8252_v63 = vadd.f32 %v6008_v51, %v3625_v55 }
 0x30a   : > { %v3638_v40 = vpop.f32.mrb[41].mxu1  ;;  %6671 = vst.msk [vmem:[%s10407_s8 + $0x8c] sm:$0xf] %vm6635_vm8, %v7291_v37  ;;  %v6289_v20 = vmul.f32 0.1, %v6225_v57  ;;  %v6226_v11 = vadd.f32 %v8251_v9, %v10397_v26 }
 0x30b   : > { %v7926_v35 = vpop.f32.mrb[42].mxu1  ;;  %6669 = vst.msk [vmem:[%s10407_s8 + $0x84] sm:$0xf] %vm6635_vm8, %v7289_v42  ;;  %v6287_v59 = vmul.f32 0.1, %v6223_v16  ;;  %v6224_v4 = vadd.f32 %v8252_v63, %v10397_v26 }
 0x30c   : > { %v3641_v47 = vpop.f32.mrb[43].mxu1  ;;  %v6353_v6 = vmax.f32 %v6225_v57, %v6289_v20  ;;  %v6290_v33 = vmul.f32 0.1, %v6226_v11 }
 0x30d   : > { %v6351_v52 = vmax.f32 %v6223_v16, %v6287_v59  ;;  %v6288_v28 = vmul.f32 0.1, %v6224_v4  ;;  %v8189_v54 = vpop.f32.mrb[40].mxu0 }
 0x30e   : > { %v7294_v25 = vpack.c.bf16 %v6353_v6, %v6353_v6  ;;  %v6354_v48 = vmax.f32 %v6226_v11, %v6290_v33  ;;  %v8253_v53 = vadd.f32 %v8189_v54, %v7925_v56  ;;  %v6021_v46 = vpop.f32.mrb[41].mxu0 }
 0x30f   : > { %v7292_v5 = vpack.c.bf16 %v6351_v52, %v6351_v52  ;;  %v6352_v23 = vmax.f32 %v6224_v4, %v6288_v28  ;;  %v8254_v15 = vadd.f32 %v6021_v46, %v3638_v40  ;;  %v8190_v49 = vpop.f32.mrb[42].mxu0 }
 0x310   : > { %6674 = vst.msk [vmem:[%s10407_s8 + $0x98] sm:$0xf] %vm6635_vm8, %v7294_v25  ;;  %v7295_v17 = vpack.c.bf16 %v6354_v48, %v6354_v48  ;;  %v6229_v29 = vadd.f32 %v8253_v53, %v10397_v26  ;;  %v8255_v44 = vadd.f32 %v8190_v49, %v7926_v35  ;;  %v6024_v24 = vpop.f32.mrb[43].mxu0 }
 0x311   : > { %v7929_v38 = vpop.f32.mrb[44].mxu1  ;;  %6672 = vst.msk [vmem:[%s10407_s8 + $0x90] sm:$0xf] %vm6635_vm8, %v7292_v5  ;;  %v7293_v14 = vpack.c.bf16 %v6352_v23, %v6352_v23  ;;  %v6227_v27 = vadd.f32 %v8254_v15, %v10397_v26  ;;  %v8256_v19 = vadd.f32 %v6024_v24, %v3641_v47 }
 0x312   : > { %v3654_v10 = vpop.f32.mrb[45].mxu1  ;;  %6675 = vst.msk [vmem:[%s10407_s8 + $0x9c] sm:$0xf] %vm6635_vm8, %v7295_v17  ;;  %v6293_v8 = vmul.f32 0.1, %v6229_v29  ;;  %v6230_v39 = vadd.f32 %v8255_v44, %v10397_v26 }
 0x313   : > { %v7930_v13 = vpop.f32.mrb[46].mxu1  ;;  %6673 = vst.msk [vmem:[%s10407_s8 + $0x94] sm:$0xf] %vm6635_vm8, %v7293_v14  ;;  %v6291_v7 = vmul.f32 0.1, %v6227_v27  ;;  %v6228_v21 = vadd.f32 %v8256_v19, %v10397_v26 }
 0x314   : > { %v3657_v2 = vpop.f32.mrb[47].mxu1  ;;  %v6357_v36 = vmax.f32 %v6229_v29, %v6293_v8  ;;  %v6294_v18 = vmul.f32 0.1, %v6230_v39 }
 0x315   : > { %v6355_v22 = vmax.f32 %v6227_v27, %v6291_v7  ;;  %v6292_v3 = vmul.f32 0.1, %v6228_v21  ;;  %v8193_v32 = vpop.f32.mrb[44].mxu0 }
 0x316   : > { %v7298_v31 = vpack.c.bf16 %v6357_v36, %v6357_v36  ;;  %v6358_v55 = vmax.f32 %v6230_v39, %v6294_v18  ;;  %v8257_v34 = vadd.f32 %v8193_v32, %v7929_v38  ;;  %v6037_v45 = vpop.f32.mrb[45].mxu0 }
 0x317   : > { %v7296_v62 = vpack.c.bf16 %v6355_v22, %v6355_v22  ;;  %v6356_v30 = vmax.f32 %v6228_v21, %v6292_v3  ;;  %v8258_v1 = vadd.f32 %v6037_v45, %v3654_v10  ;;  %v8194_v60 = vpop.f32.mrb[46].mxu0 }
 0x318   : > { %6678 = vst.msk [vmem:[%s10407_s8 + $0xa8] sm:$0xf] %vm6635_vm8, %v7298_v31  ;;  %v7299_v50 = vpack.c.bf16 %v6358_v55, %v6358_v55  ;;  %v6233_v43 = vadd.f32 %v8257_v34, %v10397_v26  ;;  %v8259_v12 = vadd.f32 %v8194_v60, %v7930_v13  ;;  %v6040_v58 = vpop.f32.mrb[47].mxu0 }
 0x319   : > { %v7933_v61 = vpop.f32.mrb[48].mxu1  ;;  %6676 = vst.msk [vmem:[%s10407_s8 + $0xa0] sm:$0xf] %vm6635_vm8, %v7296_v62  ;;  %v7297_v0 = vpack.c.bf16 %v6356_v30, %v6356_v30  ;;  %v6231_v41 = vadd.f32 %v8258_v1, %v10397_v26  ;;  %v8260_v37 = vadd.f32 %v6040_v58, %v3657_v2 }
 0x31a   : > { %v3670_v57 = vpop.f32.mrb[49].mxu1  ;;  %6679 = vst.msk [vmem:[%s10407_s8 + $0xac] sm:$0xf] %vm6635_vm8, %v7299_v50  ;;  %v6297_v9 = vmul.f32 0.1, %v6233_v43  ;;  %v6234_v51 = vadd.f32 %v8259_v12, %v10397_v26 }
 0x31b   : > { %v7934_v56 = vpop.f32.mrb[50].mxu1  ;;  %6677 = vst.msk [vmem:[%s10407_s8 + $0xa4] sm:$0xf] %vm6635_vm8, %v7297_v0  ;;  %v6295_v42 = vmul.f32 0.1, %v6231_v41  ;;  %v6232_v16 = vadd.f32 %v8260_v37, %v10397_v26 }
 0x31c   : > { %v3673_v63 = vpop.f32.mrb[51].mxu1  ;;  %v6361_v40 = vmax.f32 %v6233_v43, %v6297_v9  ;;  %v6298_v20 = vmul.f32 0.1, %v6234_v51 }
 0x31d   : > { %v6359_v11 = vmax.f32 %v6231_v41, %v6295_v42  ;;  %v6296_v35 = vmul.f32 0.1, %v6232_v16  ;;  %v8197_v59 = vpop.f32.mrb[48].mxu0 }
 0x31e   : > { %v7302_v4 = vpack.c.bf16 %v6361_v40, %v6361_v40  ;;  %v6362_v47 = vmax.f32 %v6234_v51, %v6298_v20  ;;  %v8261_v6 = vadd.f32 %v8197_v59, %v7933_v61  ;;  %v6053_v33 = vpop.f32.mrb[49].mxu0 }
 0x31f   : > { %v7300_v52 = vpack.c.bf16 %v6359_v11, %v6359_v11  ;;  %v6360_v28 = vmax.f32 %v6232_v16, %v6296_v35  ;;  %v8262_v54 = vadd.f32 %v6053_v33, %v3670_v57  ;;  %v8198_v25 = vpop.f32.mrb[50].mxu0 }
 0x320   : > { %6682 = vst.msk [vmem:[%s10407_s8 + $0xb8] sm:$0xf] %vm6635_vm8, %v7302_v4  ;;  %v7303_v48 = vpack.c.bf16 %v6362_v47, %v6362_v47  ;;  %v6237_v53 = vadd.f32 %v8261_v6, %v10397_v26  ;;  %v8263_v46 = vadd.f32 %v8198_v25, %v7934_v56  ;;  %v6056_v5 = vpop.f32.mrb[51].mxu0 }
 0x321   : > { %v7937_v23 = vpop.f32.mrb[52].mxu1  ;;  %6680 = vst.msk [vmem:[%s10407_s8 + $0xb0] sm:$0xf] %vm6635_vm8, %v7300_v52  ;;  %v7301_v15 = vpack.c.bf16 %v6360_v28, %v6360_v28  ;;  %v6235_v49 = vadd.f32 %v8262_v54, %v10397_v26  ;;  %v8264_v17 = vadd.f32 %v6056_v5, %v3673_v63 }
 0x322   : > { %v3686_v29 = vpop.f32.mrb[53].mxu1  ;;  %6683 = vst.msk [vmem:[%s10407_s8 + $0xbc] sm:$0xf] %vm6635_vm8, %v7303_v48  ;;  %v6301_v44 = vmul.f32 0.1, %v6237_v53  ;;  %v6238_v24 = vadd.f32 %v8263_v46, %v10397_v26 }
 0x323   : > { %v7938_v38 = vpop.f32.mrb[54].mxu1  ;;  %6681 = vst.msk [vmem:[%s10407_s8 + $0xb4] sm:$0xf] %vm6635_vm8, %v7301_v15  ;;  %v6299_v14 = vmul.f32 0.1, %v6235_v49  ;;  %v6236_v27 = vadd.f32 %v8264_v17, %v10397_v26 }
 0x324   : > { %v3689_v19 = vpop.f32.mrb[55].mxu1  ;;  %v6365_v10 = vmax.f32 %v6237_v53, %v6301_v44  ;;  %v6302_v8 = vmul.f32 0.1, %v6238_v24 }
 0x325   : > { %v6363_v39 = vmax.f32 %v6235_v49, %v6299_v14  ;;  %v6300_v13 = vmul.f32 0.1, %v6236_v27  ;;  %v8201_v7 = vpop.f32.mrb[52].mxu0 }
 0x326   : > { %v7306_v21 = vpack.c.bf16 %v6365_v10, %v6365_v10  ;;  %v6366_v2 = vmax.f32 %v6238_v24, %v6302_v8  ;;  %v8265_v36 = vadd.f32 %v8201_v7, %v7937_v23  ;;  %v6069_v18 = vpop.f32.mrb[53].mxu0 }
 0x327   : > { %v7304_v22 = vpack.c.bf16 %v6363_v39, %v6363_v39  ;;  %v6364_v3 = vmax.f32 %v6236_v27, %v6300_v13  ;;  %v8266_v32 = vadd.f32 %v6069_v18, %v3686_v29  ;;  %v8202_v31 = vpop.f32.mrb[54].mxu0 }
 0x328   : > { %6686 = vst.msk [vmem:[%s10407_s8 + $0xc8] sm:$0xf] %vm6635_vm8, %v7306_v21  ;;  %v7307_v55 = vpack.c.bf16 %v6366_v2, %v6366_v2  ;;  %v6241_v34 = vadd.f32 %v8265_v36, %v10397_v26  ;;  %v8267_v45 = vadd.f32 %v8202_v31, %v7938_v38  ;;  %v6072_v62 = vpop.f32.mrb[55].mxu0 }
 0x329   : > { %v7941_v30 = vpop.f32.mrb[56].mxu1  ;;  %6684 = vst.msk [vmem:[%s10407_s8 + $0xc0] sm:$0xf] %vm6635_vm8, %v7304_v22  ;;  %v7305_v1 = vpack.c.bf16 %v6364_v3, %v6364_v3  ;;  %v6239_v60 = vadd.f32 %v8266_v32, %v10397_v26  ;;  %v8268_v50 = vadd.f32 %v6072_v62, %v3689_v19 }
 0x32a   : > { %v3702_v43 = vpop.f32.mrb[57].mxu1  ;;  %6687 = vst.msk [vmem:[%s10407_s8 + $0xcc] sm:$0xf] %vm6635_vm8, %v7307_v55  ;;  %v6305_v12 = vmul.f32 0.1, %v6241_v34  ;;  %v6242_v58 = vadd.f32 %v8267_v45, %v10397_v26 }
 0x32b   : > { %v7942_v61 = vpop.f32.mrb[58].mxu1  ;;  %6685 = vst.msk [vmem:[%s10407_s8 + $0xc4] sm:$0xf] %vm6635_vm8, %v7305_v1  ;;  %v6303_v0 = vmul.f32 0.1, %v6239_v60  ;;  %v6240_v41 = vadd.f32 %v8268_v50, %v10397_v26 }
 0x32c   : > { %v3705_v37 = vpop.f32.mrb[59].mxu1  ;;  %v6369_v57 = vmax.f32 %v6241_v34, %v6305_v12  ;;  %v6306_v9 = vmul.f32 0.1, %v6242_v58 }
 0x32d   : > { %v6367_v51 = vmax.f32 %v6239_v60, %v6303_v0  ;;  %v6304_v56 = vmul.f32 0.1, %v6240_v41  ;;  %v8205_v42 = vpop.f32.mrb[56].mxu0 }
 0x32e   : > { %v7310_v16 = vpack.c.bf16 %v6369_v57, %v6369_v57  ;;  %v6370_v63 = vmax.f32 %v6242_v58, %v6306_v9  ;;  %v8269_v40 = vadd.f32 %v8205_v42, %v7941_v30  ;;  %v6085_v20 = vpop.f32.mrb[57].mxu0 }
 0x32f   : > { %v7308_v11 = vpack.c.bf16 %v6367_v51, %v6367_v51  ;;  %v6368_v35 = vmax.f32 %v6240_v41, %v6304_v56  ;;  %v8270_v59 = vadd.f32 %v6085_v20, %v3702_v43  ;;  %v8206_v4 = vpop.f32.mrb[58].mxu0 }
 0x330   : > { %6690 = vst.msk [vmem:[%s10407_s8 + $0xd8] sm:$0xf] %vm6635_vm8, %v7310_v16  ;;  %v7311_v47 = vpack.c.bf16 %v6370_v63, %v6370_v63  ;;  %v6245_v6 = vadd.f32 %v8269_v40, %v10397_v26  ;;  %v8271_v33 = vadd.f32 %v8206_v4, %v7942_v61  ;;  %v6088_v52 = vpop.f32.mrb[59].mxu0 }
 0x331   : > { %v7945_v28 = vpop.f32.mrb[60].mxu1  ;;  %6688 = vst.msk [vmem:[%s10407_s8 + $0xd0] sm:$0xf] %vm6635_vm8, %v7308_v11  ;;  %v7309_v54 = vpack.c.bf16 %v6368_v35, %v6368_v35  ;;  %v6243_v25 = vadd.f32 %v8270_v59, %v10397_v26  ;;  %v8272_v48 = vadd.f32 %v6088_v52, %v3705_v37 }
 0x332   : > { %v3718_v53 = vpop.f32.mrb[61].mxu1  ;;  %6691 = vst.msk [vmem:[%s10407_s8 + $0xdc] sm:$0xf] %vm6635_vm8, %v7311_v47  ;;  %v6309_v46 = vmul.f32 0.1, %v6245_v6  ;;  %v6246_v5 = vadd.f32 %v8271_v33, %v10397_v26 }
 0x333   : > { %v7946_v23 = vpop.f32.mrb[62].mxu1  ;;  %6689 = vst.msk [vmem:[%s10407_s8 + $0xd4] sm:$0xf] %vm6635_vm8, %v7309_v54  ;;  %v6307_v15 = vmul.f32 0.1, %v6243_v25  ;;  %v6244_v49 = vadd.f32 %v8272_v48, %v10397_v26 }
 0x334   : > { %v3721_v17 = vpop.f32.mrb[63].mxu1  ;;  %v6373_v29 = vmax.f32 %v6245_v6, %v6309_v46  ;;  %v6310_v44 = vmul.f32 0.1, %v6246_v5 }
 0x335   : > { %v6371_v24 = vmax.f32 %v6243_v25, %v6307_v15  ;;  %v6308_v38 = vmul.f32 0.1, %v6244_v49  ;;  %v8209_v14 = vpop.f32.mrb[60].mxu0 }
 0x336   : > { %v7314_v27 = vpack.c.bf16 %v6373_v29, %v6373_v29  ;;  %v6374_v19 = vmax.f32 %v6246_v5, %v6310_v44  ;;  %v8273_v10 = vadd.f32 %v8209_v14, %v7945_v28  ;;  %v6101_v8 = vpop.f32.mrb[61].mxu0 }
 0x337   : > { %v7312_v39 = vpack.c.bf16 %v6371_v24, %v6371_v24  ;;  %v6372_v13 = vmax.f32 %v6244_v49, %v6308_v38  ;;  %v8274_v7 = vadd.f32 %v6101_v8, %v3718_v53  ;;  %v8210_v21 = vpop.f32.mrb[62].mxu0 }
 0x338   : > { %6694 = vst.msk [vmem:[%s10407_s8 + $0xe8] sm:$0xf] %vm6635_vm8, %v7314_v27  ;;  %v7315_v2 = vpack.c.bf16 %v6374_v19, %v6374_v19  ;;  %v6249_v36 = vadd.f32 %v8273_v10, %v10397_v26  ;;  %v8275_v18 = vadd.f32 %v8210_v21, %v7946_v23  ;;  %v6104_v22 = vpop.f32.mrb[63].mxu0 }
 0x339   : > { %6692 = vst.msk [vmem:[%s10407_s8 + $0xe0] sm:$0xf] %vm6635_vm8, %v7312_v39  ;;  %v7313_v3 = vpack.c.bf16 %v6372_v13, %v6372_v13  ;;  %v6247_v32 = vadd.f32 %v8274_v7, %v10397_v26  ;;  %v8276_v31 = vadd.f32 %v6104_v22, %v3721_v17 }
 0x33a   : > { %6695 = vst.msk [vmem:[%s10407_s8 + $0xec] sm:$0xf] %vm6635_vm8, %v7315_v2  ;;  %v6313_v55 = vmul.f32 0.1, %v6249_v36  ;;  %v6250_v34 = vadd.f32 %v8275_v18, %v10397_v26 }
 0x33b   : > { %6693 = vst.msk [vmem:[%s10407_s8 + $0xe4] sm:$0xf] %vm6635_vm8, %v7313_v3  ;;  %v6311_v45 = vmul.f32 0.1, %v6247_v32  ;;  %v6248_v62 = vadd.f32 %v8276_v31, %v10397_v26 }
 0x33c   : > { %v6377_v30 = vmax.f32 %v6249_v36, %v6313_v55  ;;  %v6314_v1 = vmul.f32 0.1, %v6250_v34 }
 0x33d   : > { %v6375_v60 = vmax.f32 %v6247_v32, %v6311_v45  ;;  %v6312_v50 = vmul.f32 0.1, %v6248_v62 }
 0x33e   : > { %v7318_v43 = vpack.c.bf16 %v6377_v30, %v6377_v30  ;;  %v6378_v12 = vmax.f32 %v6250_v34, %v6314_v1 }
 0x33f   : > { %v7316_v58 = vpack.c.bf16 %v6375_v60, %v6375_v60  ;;  %v6376_v61 = vmax.f32 %v6248_v62, %v6312_v50 }
 0x340   : > { %6698 = vst.msk [vmem:[%s10407_s8 + $0xf8] sm:$0xf] %vm6635_vm8, %v7318_v43  ;;  %v7319_v0 = vpack.c.bf16 %v6378_v12, %v6378_v12 }
 0x341   : > { %6696 = vst.msk [vmem:[%s10407_s8 + $0xf0] sm:$0xf] %vm6635_vm8, %v7316_v58  ;;  %v7317_v41 = vpack.c.bf16 %v6376_v61, %v6376_v61 }
 0x342   : > { %6699 = vst.msk [vmem:[%s10407_s8 + $0xfc] sm:$0xf] %vm6635_vm8, %v7319_v0 }
 0x343   : > { %6697 = vst.msk [vmem:[%s10407_s8 + $0xf4] sm:$0xf] %vm6635_vm8, %v7317_v41 }
 0x344 PF: > { %s14_s17 = sadd.s32 1, %s8882_s17   ;;  %s10723_s15 = smov %s8878_s16 }
 0x345   : > { %p11_p7 = scmp.ge.s32.totalorder %s14_s17, 7   ;;  %s10724_s16 = smov %s10726_s18 }
 0x347   :  { %13 = sbr.rel (!%p11_p7) target bundleno = 2 (0x2), region = 87 }

</bundles_post_ra>
